<compile_context>
chip_gen: v5e
topology: v5e:2x2
jax: 0.10.0
libtpu: 0.0.40
codegen_flags: <defaults>
</compile_context>

<pallas_src>
import numpy as np
import jax
import jax.numpy as jnp
from jax.experimental import pallas as pl
from jax.experimental.pallas import tpu as pltpu


def _cdiv(a, b):
    return -(-a // b)


# ---------------------------------------------------------------------------
# Pallas kernel: one grid step == one block of B samples (batch on lanes).
# ---------------------------------------------------------------------------
def graphnet_kernel(
    x_ref,                                   # (N, P, B)  node-major, batch on lanes
    wr1a_ref, wr1b_ref, br1_ref,             # fr1 receiver / sender halves
    wr2_ref, br2_ref, wr3_ref, br3_ref,
    wo1x_ref, wo1e_ref, bo1_ref,             # fo1 x / Ebar halves
    wo2_ref, bo2_ref, wo3_ref, bo3_ref,
    wc1_ref, bc1_ref, wc2_ref, bc2_ref, wc3_ref, bc3_ref,
    out_ref,                                 # (n_targets, B)  lane-dense logits
):
    f32 = jnp.float32
    N, P, B = x_ref.shape
    cdt = wr2_ref.dtype                      # compute dtype for big intermediates

    def mm(w_ref, act):
        # W @ act: weights stay (out, in); activations are (features, rows)
        # with the big "rows" axis on the 128-lane dimension.  f32 accumulation.
        w = w_ref[...]
        return jnp.dot(w, act.astype(w.dtype), preferred_element_type=f32)

    relu = lambda v: jnp.maximum(v, 0.0)

    x = x_ref[...]                                               # (N, P, B) f32
    # (P, N*B): per-node slabs concatenated along lanes (lane-aligned copies,
    # no relayout) -> node index is major, batch is minor on the lane axis.
    xflat = jnp.concatenate([x[n] for n in range(N)], axis=1)    # (P, N*B)

    # ---- fr layer 1 at node level (split of the [x_r ; x_s] concat weight) ----
    hA = (mm(wr1a_ref, xflat) + br1_ref[...]).astype(cdt)        # (H, N*B) receiver + bias
    hB = mm(wr1b_ref, xflat).astype(cdt)                         # (H, N*B) sender

    # ---- all N*N ordered pairs, rows ordered (receiver r, sender s, batch) ----
    # Lane-aligned whole-chunk copies only (every chunk is a multiple of 128 lanes).
    hA_pair = jnp.concatenate(
        [hA[:, r * B:(r + 1) * B] for r in range(N) for _ in range(N)], axis=1)
    hB_pair = jnp.concatenate([hB] * N, axis=1)
    h1 = relu(hA_pair + hB_pair)                                 # (H, N*N*B)

    # ---- fr layers 2-3: single lane-dense matmuls over all pair rows ----
    h2 = relu(mm(wr2_ref, h1) + br2_ref[...]).astype(cdt)        # (H/2, N*N*B)
    E = relu(mm(wr3_ref, h2) + br3_ref[...]).astype(cdt)         # (De,  N*N*B)

    # ---- aggregate: Ebar[r] = sum_{s != r} E[(r, s)] ----
    # Lane-aligned slice adds; the r == s diagonal is simply skipped (no mask).
    eb_chunks = []
    for r in range(N):
        acc = None
        for s in range(N):
            if s == r:
                continue
            piece = E[:, (r * N + s) * B:(r * N + s + 1) * B]    # (De, B)
            acc = piece if acc is None else acc + piece
        eb_chunks.append(acc)
    Ebar = jnp.concatenate(eb_chunks, axis=1)                    # (De, N*B)

    # ---- object network fo (fo1 split into x-half and Ebar-half, no concat) ----
    g1 = relu(mm(wo1x_ref, xflat) + mm(wo1e_ref, Ebar) + bo1_ref[...]).astype(cdt)
    g2 = relu(mm(wo2_ref, g1) + bo2_ref[...]).astype(cdt)        # (H/2, N*B)
    O = relu(mm(wo3_ref, g2) + bo3_ref[...])                     # (Do,  N*B) f32

    # ---- sum over constituents: lane-aligned chunk adds ----
    Osum = O[:, 0:B]
    for n in range(1, N):
        Osum = Osum + O[:, n * B:(n + 1) * B]                    # (Do, B)

    # ---- classifier fc: batch stays on the lane axis end-to-end ----
    c1 = relu(mm(wc1_ref, Osum) + bc1_ref[...]).astype(cdt)      # (H, B)
    c2 = relu(mm(wc2_ref, c1) + bc2_ref[...]).astype(cdt)        # (H/2, B)
    logits = mm(wc3_ref, c2) + bc3_ref[...]                      # (n_targets, B)

    out_ref[...] = logits.astype(out_ref.dtype)                  # unmasked lane-dense store


# ---------------------------------------------------------------------------
# Wrapper: parameter re-layout, batch blocking / padding, pallas_call plumbing.
# ---------------------------------------------------------------------------
def graphnet_pallas(x, params, *, block_b=256, dot_dtype=jnp.float32):
    """x: (batch, P, N) as in the PyTorch module.  Returns (batch, n_targets).

    dot_dtype=jnp.bfloat16 enables bf16 weights and bf16 big intermediates
    (v6e / v7x fast path); accumulation is always f32.  Default f32 (v5e safe).
    """
    Bsz, P, N = x.shape
    n_targets = params["wc3"].shape[0]

    # Batch lives on the 128-lane axis -> blocks are multiples of 128; aim for
    # >= 2 grid blocks when the batch allows it (v7x has 2 TensorCores and the
    # grid axis is marked "parallel").
    block_b = max(128, _cdiv(int(block_b), 128) * 128)
    if Bsz <= 128:
        B_BLK = 128
    else:
        B_BLK = int(min(block_b, _cdiv(_cdiv(Bsz, 2), 128) * 128))
    Bsz_pad = _cdiv(Bsz, B_BLK) * B_BLK
    num_blocks = Bsz_pad // B_BLK

    # Fused transpose + pad + cast: (batch, P, N) -> (N, P, batch_pad).
    xT = jnp.transpose(x, (2, 1, 0)).astype(jnp.float32)
    if Bsz_pad != Bsz:
        xT = jnp.pad(xT, ((0, 0), (0, 0), (0, Bsz_pad - Bsz)))

    # PyTorch Linear weights stay (out, in); split the concat-input layers.
    w = lambda a: jnp.asarray(a, dtype=dot_dtype)
    b = lambda a: jnp.asarray(a, dtype=jnp.float32).reshape(-1, 1)   # (out, 1): sublane bias
    wr1 = params["wr1"]
    wo1 = params["wo1"]

    operands = [
        xT,
        w(wr1[:, :P]), w(wr1[:, P:]), b(params["br1"]),
        w(params["wr2"]), b(params["br2"]),
        w(params["wr3"]), b(params["br3"]),
        w(wo1[:, :P]), w(wo1[:, P:]), b(params["bo1"]),
        w(params["wo2"]), b(params["bo2"]),
        w(params["wo3"]), b(params["bo3"]),
        w(params["wc1"]), b(params["bc1"]),
        w(params["wc2"]), b(params["bc2"]),
        w(params["wc3"]), b(params["bc3"]),
    ]

    def full_spec(a):
        return pl.BlockSpec(a.shape, lambda blk, nd=a.ndim: (0,) * nd)

    in_specs = [pl.BlockSpec((N, P, B_BLK), lambda blk: (0, 0, blk))]
    in_specs += [full_spec(a) for a in operands[1:]]

    out = pl.pallas_call(
        graphnet_kernel,
        out_shape=jax.ShapeDtypeStruct((n_targets, Bsz_pad), jnp.float32),
        grid_spec=pltpu.PrefetchScalarGridSpec(
            num_scalar_prefetch=0,
            grid=(num_blocks,),
            in_specs=in_specs,
            out_specs=pl.BlockSpec((n_targets, B_BLK), lambda blk: (0, blk)),
        ),
        compiler_params=pltpu.CompilerParams(
            dimension_semantics=("parallel",),        # megacore sharding on v7x
            vmem_limit_bytes=32 * 1024 * 1024,        # ~8 MiB used at B_BLK=256
        ),
    )(*operands)

    # (n_targets, batch_pad) -> (batch, n_targets); tiny host-side transpose.
    return jnp.transpose(out[:, :Bsz])


# ---------------------------------------------------------------------------
# Pure-JAX reference (mirrors the PyTorch forward exactly, using explicit Rr/Rs).
# ---------------------------------------------------------------------------
def graphnet_reference(x, p, Rr, Rs):
    Bsz, P, N = x.shape
    lin = lambda v, W, b: v @ W.T + b
    Orr = jnp.einsum("bpn,nr->bpr", x, Rr)
    Ors = jnp.einsum("bpn,nr->bpr", x, Rs)
    Bm = jnp.concatenate([Orr, Ors], axis=1)               # (B, 2P, Nr)
    Bm = jnp.transpose(Bm, (0, 2, 1)).reshape(-1, 2 * P)
    h = jax.nn.relu(lin(Bm, p["wr1"], p["br1"]))
    h = jax.nn.relu(lin(h, p["wr2"], p["br2"]))
    E = jax.nn.relu(lin(h, p["wr3"], p["br3"])).reshape(Bsz, Rr.shape[1], -1)
    E = jnp.transpose(E, (0, 2, 1))                        # (B, De, Nr)
    Ebar = jnp.einsum("ber,rn->ben", E, jnp.transpose(Rr)) # (B, De, N)
    C = jnp.concatenate([x, Ebar], axis=1)                 # (B, P+De, N)
    C = jnp.transpose(C, (0, 2, 1)).reshape(-1, C.shape[1])
    g = jax.nn.relu(lin(C, p["wo1"], p["bo1"]))
    g = jax.nn.relu(lin(g, p["wo2"], p["bo2"]))
    O = jax.nn.relu(lin(g, p["wo3"], p["bo3"])).reshape(Bsz, N, -1)
    Osum = jnp.sum(O, axis=1)
    c = jax.nn.relu(lin(Osum, p["wc1"], p["bc1"]))
    c = jax.nn.relu(lin(c, p["wc2"], p["bc2"]))
    return lin(c, p["wc3"], p["bc3"])


# ---------------------------------------------------------------------------
if __name__ == "__main__":
    P = 16            # len(params) in the PyTorch script
    N = 8             # n_constituents
    Nr = N * (N - 1)  # 56
    hidden, De, Do, n_targets = 32, 8, 16, 4

    # Receiver / sender assignment matrices (same as assign_matrices()), used
    # only by the reference; the kernel exploits the all-pairs structure.
    pairs = [(r, s) for r in range(N) for s in range(N) if r != s]
    Rr_np = np.zeros((N, Nr), np.float32)
    Rs_np = np.zeros((N, Nr), np.float32)
    for i, (r, s) in enumerate(pairs):
        Rr_np[r, i] = 1.0
        Rs_np[s, i] = 1.0
    Rr, Rs = jnp.asarray(Rr_np), jnp.asarray(Rs_np)

    # Deterministic parameter init (PyTorch Linear-style uniform fan-in bound).
    key = jax.random.PRNGKey(0)

    def make_linear(key, out_dim, in_dim):
        k1, k2 = jax.random.split(key)
        bound = 1.0 / np.sqrt(in_dim)
        W = jax.random.uniform(k1, (out_dim, in_dim), jnp.float32, -bound, bound)
        b = jax.random.uniform(k2, (out_dim,), jnp.float32, -bound, bound)
        return W, b

    layer_dims = {
        "r1": (hidden, 2 * P), "r2": (hidden // 2, hidden), "r3": (De, hidden // 2),
        "o1": (hidden, P + De), "o2": (hidden // 2, hidden), "o3": (Do, hidden // 2),
        "c1": (hidden, Do), "c2": (hidden // 2, hidden), "c3": (n_targets, hidden // 2),
    }
    params_d = {}
    for name, (o, i) in layer_dims.items():
        key, sub = jax.random.split(key)
        W, b = make_linear(sub, o, i)
        params_d["w" + name] = W
        params_d["b" + name] = b

    # --- Test 1: small batch (padded to one 128-lane block), f32 ---
    batch = 2
    key, kx = jax.random.split(key)
    x = jax.random.normal(kx, (batch, P, N), jnp.float32)   # (batch, P, N) as in PyTorch
    out_pallas = jax.block_until_ready(graphnet_pallas(x, params_d))
    out_ref = jax.block_until_ready(graphnet_reference(x, params_d, Rr, Rs))
    np.testing.assert_allclose(np.asarray(out_pallas), np.asarray(out_ref),
                               rtol=1e-3, atol=1e-3)

    # --- Test 2: multi-block grid with batch padding (300 -> 2 blocks of 256), f32 ---
    batch2 = 300
    key, kx2 = jax.random.split(key)
    x2 = jax.random.normal(kx2, (batch2, P, N), jnp.float32)
    out_pallas2 = jax.block_until_ready(graphnet_pallas(x2, params_d, block_b=256))
    out_ref2 = jax.block_until_ready(graphnet_reference(x2, params_d, Rr, Rs))
    np.testing.assert_allclose(np.asarray(out_pallas2), np.asarray(out_ref2),
                               rtol=1e-3, atol=1e-3)

    # --- Test 3: bf16 weights + bf16 intermediates (v6e/v7x fast path) ---
    out_pallas3 = jax.block_until_ready(
        graphnet_pallas(x2, params_d, block_b=256, dot_dtype=jnp.bfloat16))
    np.testing.assert_allclose(np.asarray(out_pallas3), np.asarray(out_ref2),
                               rtol=2e-1, atol=2e-1)

    print("KERNEL_OK")
</pallas_src>

<mosaic_0001>
module attributes {stable_mosaic.version = 11 : i64} {
  func.func @graphnet_kernel(%arg0: i32, %arg1: memref<8x16x128xf32, #tpu.memory_space<vmem>>, %arg2: memref<32x16xf32, #tpu.memory_space<vmem>>, %arg3: memref<32x16xf32, #tpu.memory_space<vmem>>, %arg4: memref<32x1xf32, #tpu.memory_space<vmem>>, %arg5: memref<16x32xf32, #tpu.memory_space<vmem>>, %arg6: memref<16x1xf32, #tpu.memory_space<vmem>>, %arg7: memref<8x16xf32, #tpu.memory_space<vmem>>, %arg8: memref<8x1xf32, #tpu.memory_space<vmem>>, %arg9: memref<32x16xf32, #tpu.memory_space<vmem>>, %arg10: memref<32x8xf32, #tpu.memory_space<vmem>>, %arg11: memref<32x1xf32, #tpu.memory_space<vmem>>, %arg12: memref<16x32xf32, #tpu.memory_space<vmem>>, %arg13: memref<16x1xf32, #tpu.memory_space<vmem>>, %arg14: memref<16x16xf32, #tpu.memory_space<vmem>>, %arg15: memref<16x1xf32, #tpu.memory_space<vmem>>, %arg16: memref<32x16xf32, #tpu.memory_space<vmem>>, %arg17: memref<32x1xf32, #tpu.memory_space<vmem>>, %arg18: memref<16x32xf32, #tpu.memory_space<vmem>>, %arg19: memref<16x1xf32, #tpu.memory_space<vmem>>, %arg20: memref<4x16xf32, #tpu.memory_space<vmem>>, %arg21: memref<4x1xf32, #tpu.memory_space<vmem>>, %arg22: memref<4x128xf32, #tpu.memory_space<vmem>>) attributes {dimension_semantics = [#tpu.dimension_semantics<parallel>], iteration_bounds = array<i64: 1>, scalar_prefetch = 0 : i64, scratch_operands = 0 : i64, tpu.core_type = #tpu.core_type<tc>, window_params = [{transform_indices = @transform_0, window_bounds = array<i64: 8, 16, 128>}, {pipeline_mode = #tpu.pipeline_mode<synchronous>, transform_indices = @transform_1, window_bounds = array<i64: 32, 16>}, {pipeline_mode = #tpu.pipeline_mode<synchronous>, transform_indices = @transform_2, window_bounds = array<i64: 32, 16>}, {pipeline_mode = #tpu.pipeline_mode<synchronous>, transform_indices = @transform_3, window_bounds = array<i64: 32, 1>}, {pipeline_mode = #tpu.pipeline_mode<synchronous>, transform_indices = @transform_4, window_bounds = array<i64: 16, 32>}, {pipeline_mode = #tpu.pipeline_mode<synchronous>, transform_indices = @transform_5, window_bounds = array<i64: 16, 1>}, {pipeline_mode = #tpu.pipeline_mode<synchronous>, transform_indices = @transform_6, window_bounds = array<i64: 8, 16>}, {pipeline_mode = #tpu.pipeline_mode<synchronous>, transform_indices = @transform_7, window_bounds = array<i64: 8, 1>}, {pipeline_mode = #tpu.pipeline_mode<synchronous>, transform_indices = @transform_8, window_bounds = array<i64: 32, 16>}, {pipeline_mode = #tpu.pipeline_mode<synchronous>, transform_indices = @transform_9, window_bounds = array<i64: 32, 8>}, {pipeline_mode = #tpu.pipeline_mode<synchronous>, transform_indices = @transform_10, window_bounds = array<i64: 32, 1>}, {pipeline_mode = #tpu.pipeline_mode<synchronous>, transform_indices = @transform_11, window_bounds = array<i64: 16, 32>}, {pipeline_mode = #tpu.pipeline_mode<synchronous>, transform_indices = @transform_12, window_bounds = array<i64: 16, 1>}, {pipeline_mode = #tpu.pipeline_mode<synchronous>, transform_indices = @transform_13, window_bounds = array<i64: 16, 16>}, {pipeline_mode = #tpu.pipeline_mode<synchronous>, transform_indices = @transform_14, window_bounds = array<i64: 16, 1>}, {pipeline_mode = #tpu.pipeline_mode<synchronous>, transform_indices = @transform_15, window_bounds = array<i64: 32, 16>}, {pipeline_mode = #tpu.pipeline_mode<synchronous>, transform_indices = @transform_16, window_bounds = array<i64: 32, 1>}, {pipeline_mode = #tpu.pipeline_mode<synchronous>, transform_indices = @transform_17, window_bounds = array<i64: 16, 32>}, {pipeline_mode = #tpu.pipeline_mode<synchronous>, transform_indices = @transform_18, window_bounds = array<i64: 16, 1>}, {pipeline_mode = #tpu.pipeline_mode<synchronous>, transform_indices = @transform_19, window_bounds = array<i64: 4, 16>}, {pipeline_mode = #tpu.pipeline_mode<synchronous>, transform_indices = @transform_20, window_bounds = array<i64: 4, 1>}, {transform_indices = @transform_21, window_bounds = array<i64: 4, 128>}]} {
    %c0 = arith.constant 0 : index
    %c0_0 = arith.constant 0 : index
    %c0_1 = arith.constant 0 : index
    %0 = vector.load %arg1[%c0, %c0_0, %c0_1] : memref<8x16x128xf32, #tpu.memory_space<vmem>>, vector<8x16x128xf32>
    %1 = vector.extract_strided_slice %0 {offsets = [0, 0, 0], sizes = [1, 16, 128], strides = [1, 1, 1]} : vector<8x16x128xf32> to vector<1x16x128xf32>
    %2 = vector.shape_cast %1 : vector<1x16x128xf32> to vector<16x128xf32>
    %3 = vector.extract_strided_slice %0 {offsets = [1, 0, 0], sizes = [1, 16, 128], strides = [1, 1, 1]} : vector<8x16x128xf32> to vector<1x16x128xf32>
    %4 = vector.shape_cast %3 : vector<1x16x128xf32> to vector<16x128xf32>
    %5 = vector.extract_strided_slice %0 {offsets = [2, 0, 0], sizes = [1, 16, 128], strides = [1, 1, 1]} : vector<8x16x128xf32> to vector<1x16x128xf32>
    %6 = vector.shape_cast %5 : vector<1x16x128xf32> to vector<16x128xf32>
    %7 = vector.extract_strided_slice %0 {offsets = [3, 0, 0], sizes = [1, 16, 128], strides = [1, 1, 1]} : vector<8x16x128xf32> to vector<1x16x128xf32>
    %8 = vector.shape_cast %7 : vector<1x16x128xf32> to vector<16x128xf32>
    %9 = vector.extract_strided_slice %0 {offsets = [4, 0, 0], sizes = [1, 16, 128], strides = [1, 1, 1]} : vector<8x16x128xf32> to vector<1x16x128xf32>
    %10 = vector.shape_cast %9 : vector<1x16x128xf32> to vector<16x128xf32>
    %11 = vector.extract_strided_slice %0 {offsets = [5, 0, 0], sizes = [1, 16, 128], strides = [1, 1, 1]} : vector<8x16x128xf32> to vector<1x16x128xf32>
    %12 = vector.shape_cast %11 : vector<1x16x128xf32> to vector<16x128xf32>
    %13 = vector.extract_strided_slice %0 {offsets = [6, 0, 0], sizes = [1, 16, 128], strides = [1, 1, 1]} : vector<8x16x128xf32> to vector<1x16x128xf32>
    %14 = vector.shape_cast %13 : vector<1x16x128xf32> to vector<16x128xf32>
    %15 = vector.extract_strided_slice %0 {offsets = [7, 0, 0], sizes = [1, 16, 128], strides = [1, 1, 1]} : vector<8x16x128xf32> to vector<1x16x128xf32>
    %16 = vector.shape_cast %15 : vector<1x16x128xf32> to vector<16x128xf32>
    %17 = tpu.concatenate %2, %4, %6, %8, %10, %12, %14, %16 in 1 : vector<16x128xf32>, vector<16x128xf32>, vector<16x128xf32>, vector<16x128xf32>, vector<16x128xf32>, vector<16x128xf32>, vector<16x128xf32>, vector<16x128xf32> -> vector<16x1024xf32>
    %c0_2 = arith.constant 0 : index
    %c0_3 = arith.constant 0 : index
    %18 = vector.load %arg2[%c0_2, %c0_3] : memref<32x16xf32, #tpu.memory_space<vmem>>, vector<32x16xf32>
    %cst = arith.constant dense<0.000000e+00> : vector<32x1024xf32>
    %19 = tpu.matmul %18, %17, %cst {dimension_numbers = #tpu.dot_dimension_numbers<[1], [0], [0], [1], [0, 0, 1, 1], [], []>} : vector<32x16xf32>, vector<16x1024xf32>, vector<32x1024xf32> -> vector<32x1024xf32>
    %c0_4 = arith.constant 0 : index
    %c0_5 = arith.constant 0 : index
    %20 = vector.load %arg4[%c0_4, %c0_5] : memref<32x1xf32, #tpu.memory_space<vmem>>, vector<32x1xf32>
    %21 = vector.broadcast %20 : vector<32x1xf32> to vector<32x1024xf32>
    %22 = arith.addf %19, %21 : vector<32x1024xf32>
    %c0_6 = arith.constant 0 : index
    %c0_7 = arith.constant 0 : index
    %23 = vector.load %arg3[%c0_6, %c0_7] : memref<32x16xf32, #tpu.memory_space<vmem>>, vector<32x16xf32>
    %cst_8 = arith.constant dense<0.000000e+00> : vector<32x1024xf32>
    %24 = tpu.matmul %23, %17, %cst_8 {dimension_numbers = #tpu.dot_dimension_numbers<[1], [0], [0], [1], [0, 0, 1, 1], [], []>} : vector<32x16xf32>, vector<16x1024xf32>, vector<32x1024xf32> -> vector<32x1024xf32>
    %25 = vector.extract_strided_slice %22 {offsets = [0, 0], sizes = [32, 128], strides = [1, 1]} : vector<32x1024xf32> to vector<32x128xf32>
    %26 = vector.extract_strided_slice %22 {offsets = [0, 0], sizes = [32, 128], strides = [1, 1]} : vector<32x1024xf32> to vector<32x128xf32>
    %27 = vector.extract_strided_slice %22 {offsets = [0, 0], sizes = [32, 128], strides = [1, 1]} : vector<32x1024xf32> to vector<32x128xf32>
    %28 = vector.extract_strided_slice %22 {offsets = [0, 0], sizes = [32, 128], strides = [1, 1]} : vector<32x1024xf32> to vector<32x128xf32>
    %29 = vector.extract_strided_slice %22 {offsets = [0, 0], sizes = [32, 128], strides = [1, 1]} : vector<32x1024xf32> to vector<32x128xf32>
    %30 = vector.extract_strided_slice %22 {offsets = [0, 0], sizes = [32, 128], strides = [1, 1]} : vector<32x1024xf32> to vector<32x128xf32>
    %31 = vector.extract_strided_slice %22 {offsets = [0, 0], sizes = [32, 128], strides = [1, 1]} : vector<32x1024xf32> to vector<32x128xf32>
    %32 = vector.extract_strided_slice %22 {offsets = [0, 0], sizes = [32, 128], strides = [1, 1]} : vector<32x1024xf32> to vector<32x128xf32>
    %33 = vector.extract_strided_slice %22 {offsets = [0, 128], sizes = [32, 128], strides = [1, 1]} : vector<32x1024xf32> to vector<32x128xf32>
    %34 = vector.extract_strided_slice %22 {offsets = [0, 128], sizes = [32, 128], strides = [1, 1]} : vector<32x1024xf32> to vector<32x128xf32>
    %35 = vector.extract_strided_slice %22 {offsets = [0, 128], sizes = [32, 128], strides = [1, 1]} : vector<32x1024xf32> to vector<32x128xf32>
    %36 = vector.extract_strided_slice %22 {offsets = [0, 128], sizes = [32, 128], strides = [1, 1]} : vector<32x1024xf32> to vector<32x128xf32>
    %37 = vector.extract_strided_slice %22 {offsets = [0, 128], sizes = [32, 128], strides = [1, 1]} : vector<32x1024xf32> to vector<32x128xf32>
    %38 = vector.extract_strided_slice %22 {offsets = [0, 128], sizes = [32, 128], strides = [1, 1]} : vector<32x1024xf32> to vector<32x128xf32>
    %39 = vector.extract_strided_slice %22 {offsets = [0, 128], sizes = [32, 128], strides = [1, 1]} : vector<32x1024xf32> to vector<32x128xf32>
    %40 = vector.extract_strided_slice %22 {offsets = [0, 128], sizes = [32, 128], strides = [1, 1]} : vector<32x1024xf32> to vector<32x128xf32>
    %41 = vector.extract_strided_slice %22 {offsets = [0, 256], sizes = [32, 128], strides = [1, 1]} : vector<32x1024xf32> to vector<32x128xf32>
    %42 = vector.extract_strided_slice %22 {offsets = [0, 256], sizes = [32, 128], strides = [1, 1]} : vector<32x1024xf32> to vector<32x128xf32>
    %43 = vector.extract_strided_slice %22 {offsets = [0, 256], sizes = [32, 128], strides = [1, 1]} : vector<32x1024xf32> to vector<32x128xf32>
    %44 = vector.extract_strided_slice %22 {offsets = [0, 256], sizes = [32, 128], strides = [1, 1]} : vector<32x1024xf32> to vector<32x128xf32>
    %45 = vector.extract_strided_slice %22 {offsets = [0, 256], sizes = [32, 128], strides = [1, 1]} : vector<32x1024xf32> to vector<32x128xf32>
    %46 = vector.extract_strided_slice %22 {offsets = [0, 256], sizes = [32, 128], strides = [1, 1]} : vector<32x1024xf32> to vector<32x128xf32>
    %47 = vector.extract_strided_slice %22 {offsets = [0, 256], sizes = [32, 128], strides = [1, 1]} : vector<32x1024xf32> to vector<32x128xf32>
    %48 = vector.extract_strided_slice %22 {offsets = [0, 256], sizes = [32, 128], strides = [1, 1]} : vector<32x1024xf32> to vector<32x128xf32>
    %49 = vector.extract_strided_slice %22 {offsets = [0, 384], sizes = [32, 128], strides = [1, 1]} : vector<32x1024xf32> to vector<32x128xf32>
    %50 = vector.extract_strided_slice %22 {offsets = [0, 384], sizes = [32, 128], strides = [1, 1]} : vector<32x1024xf32> to vector<32x128xf32>
    %51 = vector.extract_strided_slice %22 {offsets = [0, 384], sizes = [32, 128], strides = [1, 1]} : vector<32x1024xf32> to vector<32x128xf32>
    %52 = vector.extract_strided_slice %22 {offsets = [0, 384], sizes = [32, 128], strides = [1, 1]} : vector<32x1024xf32> to vector<32x128xf32>
    %53 = vector.extract_strided_slice %22 {offsets = [0, 384], sizes = [32, 128], strides = [1, 1]} : vector<32x1024xf32> to vector<32x128xf32>
    %54 = vector.extract_strided_slice %22 {offsets = [0, 384], sizes = [32, 128], strides = [1, 1]} : vector<32x1024xf32> to vector<32x128xf32>
    %55 = vector.extract_strided_slice %22 {offsets = [0, 384], sizes = [32, 128], strides = [1, 1]} : vector<32x1024xf32> to vector<32x128xf32>
    %56 = vector.extract_strided_slice %22 {offsets = [0, 384], sizes = [32, 128], strides = [1, 1]} : vector<32x1024xf32> to vector<32x128xf32>
    %57 = vector.extract_strided_slice %22 {offsets = [0, 512], sizes = [32, 128], strides = [1, 1]} : vector<32x1024xf32> to vector<32x128xf32>
    %58 = vector.extract_strided_slice %22 {offsets = [0, 512], sizes = [32, 128], strides = [1, 1]} : vector<32x1024xf32> to vector<32x128xf32>
    %59 = vector.extract_strided_slice %22 {offsets = [0, 512], sizes = [32, 128], strides = [1, 1]} : vector<32x1024xf32> to vector<32x128xf32>
    %60 = vector.extract_strided_slice %22 {offsets = [0, 512], sizes = [32, 128], strides = [1, 1]} : vector<32x1024xf32> to vector<32x128xf32>
    %61 = vector.extract_strided_slice %22 {offsets = [0, 512], sizes = [32, 128], strides = [1, 1]} : vector<32x1024xf32> to vector<32x128xf32>
    %62 = vector.extract_strided_slice %22 {offsets = [0, 512], sizes = [32, 128], strides = [1, 1]} : vector<32x1024xf32> to vector<32x128xf32>
    %63 = vector.extract_strided_slice %22 {offsets = [0, 512], sizes = [32, 128], strides = [1, 1]} : vector<32x1024xf32> to vector<32x128xf32>
    %64 = vector.extract_strided_slice %22 {offsets = [0, 512], sizes = [32, 128], strides = [1, 1]} : vector<32x1024xf32> to vector<32x128xf32>
    %65 = vector.extract_strided_slice %22 {offsets = [0, 640], sizes = [32, 128], strides = [1, 1]} : vector<32x1024xf32> to vector<32x128xf32>
    %66 = vector.extract_strided_slice %22 {offsets = [0, 640], sizes = [32, 128], strides = [1, 1]} : vector<32x1024xf32> to vector<32x128xf32>
    %67 = vector.extract_strided_slice %22 {offsets = [0, 640], sizes = [32, 128], strides = [1, 1]} : vector<32x1024xf32> to vector<32x128xf32>
    %68 = vector.extract_strided_slice %22 {offsets = [0, 640], sizes = [32, 128], strides = [1, 1]} : vector<32x1024xf32> to vector<32x128xf32>
    %69 = vector.extract_strided_slice %22 {offsets = [0, 640], sizes = [32, 128], strides = [1, 1]} : vector<32x1024xf32> to vector<32x128xf32>
    %70 = vector.extract_strided_slice %22 {offsets = [0, 640], sizes = [32, 128], strides = [1, 1]} : vector<32x1024xf32> to vector<32x128xf32>
    %71 = vector.extract_strided_slice %22 {offsets = [0, 640], sizes = [32, 128], strides = [1, 1]} : vector<32x1024xf32> to vector<32x128xf32>
    %72 = vector.extract_strided_slice %22 {offsets = [0, 640], sizes = [32, 128], strides = [1, 1]} : vector<32x1024xf32> to vector<32x128xf32>
    %73 = vector.extract_strided_slice %22 {offsets = [0, 768], sizes = [32, 128], strides = [1, 1]} : vector<32x1024xf32> to vector<32x128xf32>
    %74 = vector.extract_strided_slice %22 {offsets = [0, 768], sizes = [32, 128], strides = [1, 1]} : vector<32x1024xf32> to vector<32x128xf32>
    %75 = vector.extract_strided_slice %22 {offsets = [0, 768], sizes = [32, 128], strides = [1, 1]} : vector<32x1024xf32> to vector<32x128xf32>
    %76 = vector.extract_strided_slice %22 {offsets = [0, 768], sizes = [32, 128], strides = [1, 1]} : vector<32x1024xf32> to vector<32x128xf32>
    %77 = vector.extract_strided_slice %22 {offsets = [0, 768], sizes = [32, 128], strides = [1, 1]} : vector<32x1024xf32> to vector<32x128xf32>
    %78 = vector.extract_strided_slice %22 {offsets = [0, 768], sizes = [32, 128], strides = [1, 1]} : vector<32x1024xf32> to vector<32x128xf32>
    %79 = vector.extract_strided_slice %22 {offsets = [0, 768], sizes = [32, 128], strides = [1, 1]} : vector<32x1024xf32> to vector<32x128xf32>
    %80 = vector.extract_strided_slice %22 {offsets = [0, 768], sizes = [32, 128], strides = [1, 1]} : vector<32x1024xf32> to vector<32x128xf32>
    %81 = vector.extract_strided_slice %22 {offsets = [0, 896], sizes = [32, 128], strides = [1, 1]} : vector<32x1024xf32> to vector<32x128xf32>
    %82 = vector.extract_strided_slice %22 {offsets = [0, 896], sizes = [32, 128], strides = [1, 1]} : vector<32x1024xf32> to vector<32x128xf32>
    %83 = vector.extract_strided_slice %22 {offsets = [0, 896], sizes = [32, 128], strides = [1, 1]} : vector<32x1024xf32> to vector<32x128xf32>
    %84 = vector.extract_strided_slice %22 {offsets = [0, 896], sizes = [32, 128], strides = [1, 1]} : vector<32x1024xf32> to vector<32x128xf32>
    %85 = vector.extract_strided_slice %22 {offsets = [0, 896], sizes = [32, 128], strides = [1, 1]} : vector<32x1024xf32> to vector<32x128xf32>
    %86 = vector.extract_strided_slice %22 {offsets = [0, 896], sizes = [32, 128], strides = [1, 1]} : vector<32x1024xf32> to vector<32x128xf32>
    %87 = vector.extract_strided_slice %22 {offsets = [0, 896], sizes = [32, 128], strides = [1, 1]} : vector<32x1024xf32> to vector<32x128xf32>
    %88 = vector.extract_strided_slice %22 {offsets = [0, 896], sizes = [32, 128], strides = [1, 1]} : vector<32x1024xf32> to vector<32x128xf32>
    %89 = tpu.concatenate %25, %26, %27, %28, %29, %30, %31, %32, %33, %34, %35, %36, %37, %38, %39, %40 in 1 : vector<32x128xf32>, vector<32x128xf32>, vector<32x128xf32>, vector<32x128xf32>, vector<32x128xf32>, vector<32x128xf32>, vector<32x128xf32>, vector<32x128xf32>, vector<32x128xf32>, vector<32x128xf32>, vector<32x128xf32>, vector<32x128xf32>, vector<32x128xf32>, vector<32x128xf32>, vector<32x128xf32>, vector<32x128xf32> -> vector<32x2048xf32>
    %90 = tpu.concatenate %41, %42, %43, %44, %45, %46, %47, %48, %49, %50, %51, %52, %53, %54, %55, %56 in 1 : vector<32x128xf32>, vector<32x128xf32>, vector<32x128xf32>, vector<32x128xf32>, vector<32x128xf32>, vector<32x128xf32>, vector<32x128xf32>, vector<32x128xf32>, vector<32x128xf32>, vector<32x128xf32>, vector<32x128xf32>, vector<32x128xf32>, vector<32x128xf32>, vector<32x128xf32>, vector<32x128xf32>, vector<32x128xf32> -> vector<32x2048xf32>
    %91 = tpu.concatenate %57, %58, %59, %60, %61, %62, %63, %64, %65, %66, %67, %68, %69, %70, %71, %72 in 1 : vector<32x128xf32>, vector<32x128xf32>, vector<32x128xf32>, vector<32x128xf32>, vector<32x128xf32>, vector<32x128xf32>, vector<32x128xf32>, vector<32x128xf32>, vector<32x128xf32>, vector<32x128xf32>, vector<32x128xf32>, vector<32x128xf32>, vector<32x128xf32>, vector<32x128xf32>, vector<32x128xf32>, vector<32x128xf32> -> vector<32x2048xf32>
    %92 = tpu.concatenate %73, %74, %75, %76, %77, %78, %79, %80, %81, %82, %83, %84, %85, %86, %87, %88 in 1 : vector<32x128xf32>, vector<32x128xf32>, vector<32x128xf32>, vector<32x128xf32>, vector<32x128xf32>, vector<32x128xf32>, vector<32x128xf32>, vector<32x128xf32>, vector<32x128xf32>, vector<32x128xf32>, vector<32x128xf32>, vector<32x128xf32>, vector<32x128xf32>, vector<32x128xf32>, vector<32x128xf32>, vector<32x128xf32> -> vector<32x2048xf32>
    %93 = tpu.concatenate %89, %90, %91, %92 in 1 : vector<32x2048xf32>, vector<32x2048xf32>, vector<32x2048xf32>, vector<32x2048xf32> -> vector<32x8192xf32>
    %94 = tpu.concatenate %24, %24, %24, %24, %24, %24, %24, %24 in 1 : vector<32x1024xf32>, vector<32x1024xf32>, vector<32x1024xf32>, vector<32x1024xf32>, vector<32x1024xf32>, vector<32x1024xf32>, vector<32x1024xf32>, vector<32x1024xf32> -> vector<32x8192xf32>
    %95 = arith.addf %93, %94 : vector<32x8192xf32>
    %cst_9 = arith.constant 0.000000e+00 : f32
    %96 = vector.broadcast %cst_9 : f32 to vector<32x8192xf32>
    %97 = arith.maximumf %95, %96 : vector<32x8192xf32>
    %c0_10 = arith.constant 0 : index
    %c0_11 = arith.constant 0 : index
    %98 = vector.load %arg5[%c0_10, %c0_11] : memref<16x32xf32, #tpu.memory_space<vmem>>, vector<16x32xf32>
    %cst_12 = arith.constant dense<0.000000e+00> : vector<16x8192xf32>
    %99 = tpu.matmul %98, %97, %cst_12 {dimension_numbers = #tpu.dot_dimension_numbers<[1], [0], [0], [1], [0, 0, 1, 1], [], []>} : vector<16x32xf32>, vector<32x8192xf32>, vector<16x8192xf32> -> vector<16x8192xf32>
    %c0_13 = arith.constant 0 : index
    %c0_14 = arith.constant 0 : index
    %100 = vector.load %arg6[%c0_13, %c0_14] : memref<16x1xf32, #tpu.memory_space<vmem>>, vector<16x1xf32>
    %101 = vector.broadcast %100 : vector<16x1xf32> to vector<16x8192xf32>
    %102 = arith.addf %99, %101 : vector<16x8192xf32>
    %cst_15 = arith.constant 0.000000e+00 : f32
    %103 = vector.broadcast %cst_15 : f32 to vector<16x8192xf32>
    %104 = arith.maximumf %102, %103 : vector<16x8192xf32>
    %c0_16 = arith.constant 0 : index
    %c0_17 = arith.constant 0 : index
    %105 = vector.load %arg7[%c0_16, %c0_17] : memref<8x16xf32, #tpu.memory_space<vmem>>, vector<8x16xf32>
    %cst_18 = arith.constant dense<0.000000e+00> : vector<8x8192xf32>
    %106 = tpu.matmul %105, %104, %cst_18 {dimension_numbers = #tpu.dot_dimension_numbers<[1], [0], [0], [1], [0, 0, 1, 1], [], []>} : vector<8x16xf32>, vector<16x8192xf32>, vector<8x8192xf32> -> vector<8x8192xf32>
    %c0_19 = arith.constant 0 : index
    %c0_20 = arith.constant 0 : index
    %107 = vector.load %arg8[%c0_19, %c0_20] : memref<8x1xf32, #tpu.memory_space<vmem>>, vector<8x1xf32>
    %108 = vector.broadcast %107 : vector<8x1xf32> to vector<8x8192xf32>
    %109 = arith.addf %106, %108 : vector<8x8192xf32>
    %cst_21 = arith.constant 0.000000e+00 : f32
    %110 = vector.broadcast %cst_21 : f32 to vector<8x8192xf32>
    %111 = arith.maximumf %109, %110 : vector<8x8192xf32>
    %112 = vector.extract_strided_slice %111 {offsets = [0, 128], sizes = [8, 128], strides = [1, 1]} : vector<8x8192xf32> to vector<8x128xf32>
    %113 = vector.extract_strided_slice %111 {offsets = [0, 256], sizes = [8, 128], strides = [1, 1]} : vector<8x8192xf32> to vector<8x128xf32>
    %114 = arith.addf %112, %113 : vector<8x128xf32>
    %115 = vector.extract_strided_slice %111 {offsets = [0, 384], sizes = [8, 128], strides = [1, 1]} : vector<8x8192xf32> to vector<8x128xf32>
    %116 = arith.addf %114, %115 : vector<8x128xf32>
    %117 = vector.extract_strided_slice %111 {offsets = [0, 512], sizes = [8, 128], strides = [1, 1]} : vector<8x8192xf32> to vector<8x128xf32>
    %118 = arith.addf %116, %117 : vector<8x128xf32>
    %119 = vector.extract_strided_slice %111 {offsets = [0, 640], sizes = [8, 128], strides = [1, 1]} : vector<8x8192xf32> to vector<8x128xf32>
    %120 = arith.addf %118, %119 : vector<8x128xf32>
    %121 = vector.extract_strided_slice %111 {offsets = [0, 768], sizes = [8, 128], strides = [1, 1]} : vector<8x8192xf32> to vector<8x128xf32>
    %122 = arith.addf %120, %121 : vector<8x128xf32>
    %123 = vector.extract_strided_slice %111 {offsets = [0, 896], sizes = [8, 128], strides = [1, 1]} : vector<8x8192xf32> to vector<8x128xf32>
    %124 = arith.addf %122, %123 : vector<8x128xf32>
    %125 = vector.extract_strided_slice %111 {offsets = [0, 1024], sizes = [8, 128], strides = [1, 1]} : vector<8x8192xf32> to vector<8x128xf32>
    %126 = vector.extract_strided_slice %111 {offsets = [0, 1280], sizes = [8, 128], strides = [1, 1]} : vector<8x8192xf32> to vector<8x128xf32>
    %127 = arith.addf %125, %126 : vector<8x128xf32>
    %128 = vector.extract_strided_slice %111 {offsets = [0, 1408], sizes = [8, 128], strides = [1, 1]} : vector<8x8192xf32> to vector<8x128xf32>
    %129 = arith.addf %127, %128 : vector<8x128xf32>
    %130 = vector.extract_strided_slice %111 {offsets = [0, 1536], sizes = [8, 128], strides = [1, 1]} : vector<8x8192xf32> to vector<8x128xf32>
    %131 = arith.addf %129, %130 : vector<8x128xf32>
    %132 = vector.extract_strided_slice %111 {offsets = [0, 1664], sizes = [8, 128], strides = [1, 1]} : vector<8x8192xf32> to vector<8x128xf32>
    %133 = arith.addf %131, %132 : vector<8x128xf32>
    %134 = vector.extract_strided_slice %111 {offsets = [0, 1792], sizes = [8, 128], strides = [1, 1]} : vector<8x8192xf32> to vector<8x128xf32>
    %135 = arith.addf %133, %134 : vector<8x128xf32>
    %136 = vector.extract_strided_slice %111 {offsets = [0, 1920], sizes = [8, 128], strides = [1, 1]} : vector<8x8192xf32> to vector<8x128xf32>
    %137 = arith.addf %135, %136 : vector<8x128xf32>
    %138 = vector.extract_strided_slice %111 {offsets = [0, 2048], sizes = [8, 128], strides = [1, 1]} : vector<8x8192xf32> to vector<8x128xf32>
    %139 = vector.extract_strided_slice %111 {offsets = [0, 2176], sizes = [8, 128], strides = [1, 1]} : vector<8x8192xf32> to vector<8x128xf32>
    %140 = arith.addf %138, %139 : vector<8x128xf32>
    %141 = vector.extract_strided_slice %111 {offsets = [0, 2432], sizes = [8, 128], strides = [1, 1]} : vector<8x8192xf32> to vector<8x128xf32>
    %142 = arith.addf %140, %141 : vector<8x128xf32>
    %143 = vector.extract_strided_slice %111 {offsets = [0, 2560], sizes = [8, 128], strides = [1, 1]} : vector<8x8192xf32> to vector<8x128xf32>
    %144 = arith.addf %142, %143 : vector<8x128xf32>
    %145 = vector.extract_strided_slice %111 {offsets = [0, 2688], sizes = [8, 128], strides = [1, 1]} : vector<8x8192xf32> to vector<8x128xf32>
    %146 = arith.addf %144, %145 : vector<8x128xf32>
    %147 = vector.extract_strided_slice %111 {offsets = [0, 2816], sizes = [8, 128], strides = [1, 1]} : vector<8x8192xf32> to vector<8x128xf32>
    %148 = arith.addf %146, %147 : vector<8x128xf32>
    %149 = vector.extract_strided_slice %111 {offsets = [0, 2944], sizes = [8, 128], strides = [1, 1]} : vector<8x8192xf32> to vector<8x128xf32>
    %150 = arith.addf %148, %149 : vector<8x128xf32>
    %151 = vector.extract_strided_slice %111 {offsets = [0, 3072], sizes = [8, 128], strides = [1, 1]} : vector<8x8192xf32> to vector<8x128xf32>
    %152 = vector.extract_strided_slice %111 {offsets = [0, 3200], sizes = [8, 128], strides = [1, 1]} : vector<8x8192xf32> to vector<8x128xf32>
    %153 = arith.addf %151, %152 : vector<8x128xf32>
    %154 = vector.extract_strided_slice %111 {offsets = [0, 3328], sizes = [8, 128], strides = [1, 1]} : vector<8x8192xf32> to vector<8x128xf32>
    %155 = arith.addf %153, %154 : vector<8x128xf32>
    %156 = vector.extract_strided_slice %111 {offsets = [0, 3584], sizes = [8, 128], strides = [1, 1]} : vector<8x8192xf32> to vector<8x128xf32>
    %157 = arith.addf %155, %156 : vector<8x128xf32>
    %158 = vector.extract_strided_slice %111 {offsets = [0, 3712], sizes = [8, 128], strides = [1, 1]} : vector<8x8192xf32> to vector<8x128xf32>
    %159 = arith.addf %157, %158 : vector<8x128xf32>
    %160 = vector.extract_strided_slice %111 {offsets = [0, 3840], sizes = [8, 128], strides = [1, 1]} : vector<8x8192xf32> to vector<8x128xf32>
    %161 = arith.addf %159, %160 : vector<8x128xf32>
    %162 = vector.extract_strided_slice %111 {offsets = [0, 3968], sizes = [8, 128], strides = [1, 1]} : vector<8x8192xf32> to vector<8x128xf32>
    %163 = arith.addf %161, %162 : vector<8x128xf32>
    %164 = vector.extract_strided_slice %111 {offsets = [0, 4096], sizes = [8, 128], strides = [1, 1]} : vector<8x8192xf32> to vector<8x128xf32>
    %165 = vector.extract_strided_slice %111 {offsets = [0, 4224], sizes = [8, 128], strides = [1, 1]} : vector<8x8192xf32> to vector<8x128xf32>
    %166 = arith.addf %164, %165 : vector<8x128xf32>
    %167 = vector.extract_strided_slice %111 {offsets = [0, 4352], sizes = [8, 128], strides = [1, 1]} : vector<8x8192xf32> to vector<8x128xf32>
    %168 = arith.addf %166, %167 : vector<8x128xf32>
    %169 = vector.extract_strided_slice %111 {offsets = [0, 4480], sizes = [8, 128], strides = [1, 1]} : vector<8x8192xf32> to vector<8x128xf32>
    %170 = arith.addf %168, %169 : vector<8x128xf32>
    %171 = vector.extract_strided_slice %111 {offsets = [0, 4736], sizes = [8, 128], strides = [1, 1]} : vector<8x8192xf32> to vector<8x128xf32>
    %172 = arith.addf %170, %171 : vector<8x128xf32>
    %173 = vector.extract_strided_slice %111 {offsets = [0, 4864], sizes = [8, 128], strides = [1, 1]} : vector<8x8192xf32> to vector<8x128xf32>
    %174 = arith.addf %172, %173 : vector<8x128xf32>
    %175 = vector.extract_strided_slice %111 {offsets = [0, 4992], sizes = [8, 128], strides = [1, 1]} : vector<8x8192xf32> to vector<8x128xf32>
    %176 = arith.addf %174, %175 : vector<8x128xf32>
    %177 = vector.extract_strided_slice %111 {offsets = [0, 5120], sizes = [8, 128], strides = [1, 1]} : vector<8x8192xf32> to vector<8x128xf32>
    %178 = vector.extract_strided_slice %111 {offsets = [0, 5248], sizes = [8, 128], strides = [1, 1]} : vector<8x8192xf32> to vector<8x128xf32>
    %179 = arith.addf %177, %178 : vector<8x128xf32>
    %180 = vector.extract_strided_slice %111 {offsets = [0, 5376], sizes = [8, 128], strides = [1, 1]} : vector<8x8192xf32> to vector<8x128xf32>
    %181 = arith.addf %179, %180 : vector<8x128xf32>
    %182 = vector.extract_strided_slice %111 {offsets = [0, 5504], sizes = [8, 128], strides = [1, 1]} : vector<8x8192xf32> to vector<8x128xf32>
    %183 = arith.addf %181, %182 : vector<8x128xf32>
    %184 = vector.extract_strided_slice %111 {offsets = [0, 5632], sizes = [8, 128], strides = [1, 1]} : vector<8x8192xf32> to vector<8x128xf32>
    %185 = arith.addf %183, %184 : vector<8x128xf32>
    %186 = vector.extract_strided_slice %111 {offsets = [0, 5888], sizes = [8, 128], strides = [1, 1]} : vector<8x8192xf32> to vector<8x128xf32>
    %187 = arith.addf %185, %186 : vector<8x128xf32>
    %188 = vector.extract_strided_slice %111 {offsets = [0, 6016], sizes = [8, 128], strides = [1, 1]} : vector<8x8192xf32> to vector<8x128xf32>
    %189 = arith.addf %187, %188 : vector<8x128xf32>
    %190 = vector.extract_strided_slice %111 {offsets = [0, 6144], sizes = [8, 128], strides = [1, 1]} : vector<8x8192xf32> to vector<8x128xf32>
    %191 = vector.extract_strided_slice %111 {offsets = [0, 6272], sizes = [8, 128], strides = [1, 1]} : vector<8x8192xf32> to vector<8x128xf32>
    %192 = arith.addf %190, %191 : vector<8x128xf32>
    %193 = vector.extract_strided_slice %111 {offsets = [0, 6400], sizes = [8, 128], strides = [1, 1]} : vector<8x8192xf32> to vector<8x128xf32>
    %194 = arith.addf %192, %193 : vector<8x128xf32>
    %195 = vector.extract_strided_slice %111 {offsets = [0, 6528], sizes = [8, 128], strides = [1, 1]} : vector<8x8192xf32> to vector<8x128xf32>
    %196 = arith.addf %194, %195 : vector<8x128xf32>
    %197 = vector.extract_strided_slice %111 {offsets = [0, 6656], sizes = [8, 128], strides = [1, 1]} : vector<8x8192xf32> to vector<8x128xf32>
    %198 = arith.addf %196, %197 : vector<8x128xf32>
    %199 = vector.extract_strided_slice %111 {offsets = [0, 6784], sizes = [8, 128], strides = [1, 1]} : vector<8x8192xf32> to vector<8x128xf32>
    %200 = arith.addf %198, %199 : vector<8x128xf32>
    %201 = vector.extract_strided_slice %111 {offsets = [0, 7040], sizes = [8, 128], strides = [1, 1]} : vector<8x8192xf32> to vector<8x128xf32>
    %202 = arith.addf %200, %201 : vector<8x128xf32>
    %203 = vector.extract_strided_slice %111 {offsets = [0, 7168], sizes = [8, 128], strides = [1, 1]} : vector<8x8192xf32> to vector<8x128xf32>
    %204 = vector.extract_strided_slice %111 {offsets = [0, 7296], sizes = [8, 128], strides = [1, 1]} : vector<8x8192xf32> to vector<8x128xf32>
    %205 = arith.addf %203, %204 : vector<8x128xf32>
    %206 = vector.extract_strided_slice %111 {offsets = [0, 7424], sizes = [8, 128], strides = [1, 1]} : vector<8x8192xf32> to vector<8x128xf32>
    %207 = arith.addf %205, %206 : vector<8x128xf32>
    %208 = vector.extract_strided_slice %111 {offsets = [0, 7552], sizes = [8, 128], strides = [1, 1]} : vector<8x8192xf32> to vector<8x128xf32>
    %209 = arith.addf %207, %208 : vector<8x128xf32>
    %210 = vector.extract_strided_slice %111 {offsets = [0, 7680], sizes = [8, 128], strides = [1, 1]} : vector<8x8192xf32> to vector<8x128xf32>
    %211 = arith.addf %209, %210 : vector<8x128xf32>
    %212 = vector.extract_strided_slice %111 {offsets = [0, 7808], sizes = [8, 128], strides = [1, 1]} : vector<8x8192xf32> to vector<8x128xf32>
    %213 = arith.addf %211, %212 : vector<8x128xf32>
    %214 = vector.extract_strided_slice %111 {offsets = [0, 7936], sizes = [8, 128], strides = [1, 1]} : vector<8x8192xf32> to vector<8x128xf32>
    %215 = arith.addf %213, %214 : vector<8x128xf32>
    %216 = tpu.concatenate %124, %137, %150, %163, %176, %189, %202, %215 in 1 : vector<8x128xf32>, vector<8x128xf32>, vector<8x128xf32>, vector<8x128xf32>, vector<8x128xf32>, vector<8x128xf32>, vector<8x128xf32>, vector<8x128xf32> -> vector<8x1024xf32>
    %c0_22 = arith.constant 0 : index
    %c0_23 = arith.constant 0 : index
    %217 = vector.load %arg9[%c0_22, %c0_23] : memref<32x16xf32, #tpu.memory_space<vmem>>, vector<32x16xf32>
    %cst_24 = arith.constant dense<0.000000e+00> : vector<32x1024xf32>
    %218 = tpu.matmul %217, %17, %cst_24 {dimension_numbers = #tpu.dot_dimension_numbers<[1], [0], [0], [1], [0, 0, 1, 1], [], []>} : vector<32x16xf32>, vector<16x1024xf32>, vector<32x1024xf32> -> vector<32x1024xf32>
    %c0_25 = arith.constant 0 : index
    %c0_26 = arith.constant 0 : index
    %219 = vector.load %arg10[%c0_25, %c0_26] : memref<32x8xf32, #tpu.memory_space<vmem>>, vector<32x8xf32>
    %cst_27 = arith.constant dense<0.000000e+00> : vector<32x1024xf32>
    %220 = tpu.matmul %219, %216, %cst_27 {dimension_numbers = #tpu.dot_dimension_numbers<[1], [0], [0], [1], [0, 0, 1, 1], [], []>} : vector<32x8xf32>, vector<8x1024xf32>, vector<32x1024xf32> -> vector<32x1024xf32>
    %221 = arith.addf %218, %220 : vector<32x1024xf32>
    %c0_28 = arith.constant 0 : index
    %c0_29 = arith.constant 0 : index
    %222 = vector.load %arg11[%c0_28, %c0_29] : memref<32x1xf32, #tpu.memory_space<vmem>>, vector<32x1xf32>
    %223 = vector.broadcast %222 : vector<32x1xf32> to vector<32x1024xf32>
    %224 = arith.addf %221, %223 : vector<32x1024xf32>
    %cst_30 = arith.constant 0.000000e+00 : f32
    %225 = vector.broadcast %cst_30 : f32 to vector<32x1024xf32>
    %226 = arith.maximumf %224, %225 : vector<32x1024xf32>
    %c0_31 = arith.constant 0 : index
    %c0_32 = arith.constant 0 : index
    %227 = vector.load %arg12[%c0_31, %c0_32] : memref<16x32xf32, #tpu.memory_space<vmem>>, vector<16x32xf32>
    %cst_33 = arith.constant dense<0.000000e+00> : vector<16x1024xf32>
    %228 = tpu.matmul %227, %226, %cst_33 {dimension_numbers = #tpu.dot_dimension_numbers<[1], [0], [0], [1], [0, 0, 1, 1], [], []>} : vector<16x32xf32>, vector<32x1024xf32>, vector<16x1024xf32> -> vector<16x1024xf32>
    %c0_34 = arith.constant 0 : index
    %c0_35 = arith.constant 0 : index
    %229 = vector.load %arg13[%c0_34, %c0_35] : memref<16x1xf32, #tpu.memory_space<vmem>>, vector<16x1xf32>
    %230 = vector.broadcast %229 : vector<16x1xf32> to vector<16x1024xf32>
    %231 = arith.addf %228, %230 : vector<16x1024xf32>
    %cst_36 = arith.constant 0.000000e+00 : f32
    %232 = vector.broadcast %cst_36 : f32 to vector<16x1024xf32>
    %233 = arith.maximumf %231, %232 : vector<16x1024xf32>
    %c0_37 = arith.constant 0 : index
    %c0_38 = arith.constant 0 : index
    %234 = vector.load %arg14[%c0_37, %c0_38] : memref<16x16xf32, #tpu.memory_space<vmem>>, vector<16x16xf32>
    %cst_39 = arith.constant dense<0.000000e+00> : vector<16x1024xf32>
    %235 = tpu.matmul %234, %233, %cst_39 {dimension_numbers = #tpu.dot_dimension_numbers<[1], [0], [0], [1], [0, 0, 1, 1], [], []>} : vector<16x16xf32>, vector<16x1024xf32>, vector<16x1024xf32> -> vector<16x1024xf32>
    %c0_40 = arith.constant 0 : index
    %c0_41 = arith.constant 0 : index
    %236 = vector.load %arg15[%c0_40, %c0_41] : memref<16x1xf32, #tpu.memory_space<vmem>>, vector<16x1xf32>
    %237 = vector.broadcast %236 : vector<16x1xf32> to vector<16x1024xf32>
    %238 = arith.addf %235, %237 : vector<16x1024xf32>
    %cst_42 = arith.constant 0.000000e+00 : f32
    %239 = vector.broadcast %cst_42 : f32 to vector<16x1024xf32>
    %240 = arith.maximumf %238, %239 : vector<16x1024xf32>
    %241 = vector.extract_strided_slice %240 {offsets = [0, 0], sizes = [16, 128], strides = [1, 1]} : vector<16x1024xf32> to vector<16x128xf32>
    %242 = vector.extract_strided_slice %240 {offsets = [0, 128], sizes = [16, 128], strides = [1, 1]} : vector<16x1024xf32> to vector<16x128xf32>
    %243 = arith.addf %241, %242 : vector<16x128xf32>
    %244 = vector.extract_strided_slice %240 {offsets = [0, 256], sizes = [16, 128], strides = [1, 1]} : vector<16x1024xf32> to vector<16x128xf32>
    %245 = arith.addf %243, %244 : vector<16x128xf32>
    %246 = vector.extract_strided_slice %240 {offsets = [0, 384], sizes = [16, 128], strides = [1, 1]} : vector<16x1024xf32> to vector<16x128xf32>
    %247 = arith.addf %245, %246 : vector<16x128xf32>
    %248 = vector.extract_strided_slice %240 {offsets = [0, 512], sizes = [16, 128], strides = [1, 1]} : vector<16x1024xf32> to vector<16x128xf32>
    %249 = arith.addf %247, %248 : vector<16x128xf32>
    %250 = vector.extract_strided_slice %240 {offsets = [0, 640], sizes = [16, 128], strides = [1, 1]} : vector<16x1024xf32> to vector<16x128xf32>
    %251 = arith.addf %249, %250 : vector<16x128xf32>
    %252 = vector.extract_strided_slice %240 {offsets = [0, 768], sizes = [16, 128], strides = [1, 1]} : vector<16x1024xf32> to vector<16x128xf32>
    %253 = arith.addf %251, %252 : vector<16x128xf32>
    %254 = vector.extract_strided_slice %240 {offsets = [0, 896], sizes = [16, 128], strides = [1, 1]} : vector<16x1024xf32> to vector<16x128xf32>
    %255 = arith.addf %253, %254 : vector<16x128xf32>
    %c0_43 = arith.constant 0 : index
    %c0_44 = arith.constant 0 : index
    %256 = vector.load %arg16[%c0_43, %c0_44] : memref<32x16xf32, #tpu.memory_space<vmem>>, vector<32x16xf32>
    %cst_45 = arith.constant dense<0.000000e+00> : vector<32x128xf32>
    %257 = tpu.matmul %256, %255, %cst_45 {dimension_numbers = #tpu.dot_dimension_numbers<[1], [0], [0], [1], [0, 0, 1, 1], [], []>} : vector<32x16xf32>, vector<16x128xf32>, vector<32x128xf32> -> vector<32x128xf32>
    %c0_46 = arith.constant 0 : index
    %c0_47 = arith.constant 0 : index
    %258 = vector.load %arg17[%c0_46, %c0_47] : memref<32x1xf32, #tpu.memory_space<vmem>>, vector<32x1xf32>
    %259 = vector.broadcast %258 : vector<32x1xf32> to vector<32x128xf32>
    %260 = arith.addf %257, %259 : vector<32x128xf32>
    %cst_48 = arith.constant 0.000000e+00 : f32
    %261 = vector.broadcast %cst_48 : f32 to vector<32x128xf32>
    %262 = arith.maximumf %260, %261 : vector<32x128xf32>
    %c0_49 = arith.constant 0 : index
    %c0_50 = arith.constant 0 : index
    %263 = vector.load %arg18[%c0_49, %c0_50] : memref<16x32xf32, #tpu.memory_space<vmem>>, vector<16x32xf32>
    %cst_51 = arith.constant dense<0.000000e+00> : vector<16x128xf32>
    %264 = tpu.matmul %263, %262, %cst_51 {dimension_numbers = #tpu.dot_dimension_numbers<[1], [0], [0], [1], [0, 0, 1, 1], [], []>} : vector<16x32xf32>, vector<32x128xf32>, vector<16x128xf32> -> vector<16x128xf32>
    %c0_52 = arith.constant 0 : index
    %c0_53 = arith.constant 0 : index
    %265 = vector.load %arg19[%c0_52, %c0_53] : memref<16x1xf32, #tpu.memory_space<vmem>>, vector<16x1xf32>
    %266 = vector.broadcast %265 : vector<16x1xf32> to vector<16x128xf32>
    %267 = arith.addf %264, %266 : vector<16x128xf32>
    %cst_54 = arith.constant 0.000000e+00 : f32
    %268 = vector.broadcast %cst_54 : f32 to vector<16x128xf32>
    %269 = arith.maximumf %267, %268 : vector<16x128xf32>
    %c0_55 = arith.constant 0 : index
    %c0_56 = arith.constant 0 : index
    %270 = vector.load %arg20[%c0_55, %c0_56] : memref<4x16xf32, #tpu.memory_space<vmem>>, vector<4x16xf32>
    %cst_57 = arith.constant dense<0.000000e+00> : vector<4x128xf32>
    %271 = tpu.matmul %270, %269, %cst_57 {dimension_numbers = #tpu.dot_dimension_numbers<[1], [0], [0], [1], [0, 0, 1, 1], [], []>} : vector<4x16xf32>, vector<16x128xf32>, vector<4x128xf32> -> vector<4x128xf32>
    %c0_58 = arith.constant 0 : index
    %c0_59 = arith.constant 0 : index
    %272 = vector.load %arg21[%c0_58, %c0_59] : memref<4x1xf32, #tpu.memory_space<vmem>>, vector<4x1xf32>
    %273 = vector.broadcast %272 : vector<4x1xf32> to vector<4x128xf32>
    %274 = arith.addf %271, %273 : vector<4x128xf32>
    %c0_60 = arith.constant 0 : index
    %c0_61 = arith.constant 0 : index
    %275 = vector.load %arg22[%c0_60, %c0_61] : memref<4x128xf32, #tpu.memory_space<vmem>>, vector<4x128xf32>
    tpu.vector_store %arg22[%c0_60, %c0_61], %274 {strides = array<i32>} : memref<4x128xf32, #tpu.memory_space<vmem>>, vector<4x128xf32>,
    return
  }
  func.func @transform_0(%arg0: i32) -> (i32, i32, i32) {
    %c0_i32 = arith.constant 0 : i32
    %c0_i32_0 = arith.constant 0 : i32
    %c0_i32_1 = arith.constant 0 : i32
    return %c0_i32, %c0_i32_0, %arg0 : i32, i32, i32
  }
  func.func @transform_1(%arg0: i32) -> (i32, i32) {
    %c0_i32 = arith.constant 0 : i32
    %c0_i32_0 = arith.constant 0 : i32
    %c0_i32_1 = arith.constant 0 : i32
    return %c0_i32, %c0_i32_0 : i32, i32
  }
  func.func @transform_2(%arg0: i32) -> (i32, i32) {
    %c0_i32 = arith.constant 0 : i32
    %c0_i32_0 = arith.constant 0 : i32
    %c0_i32_1 = arith.constant 0 : i32
    return %c0_i32, %c0_i32_0 : i32, i32
  }
  func.func @transform_3(%arg0: i32) -> (i32, i32) {
    %c0_i32 = arith.constant 0 : i32
    %c0_i32_0 = arith.constant 0 : i32
    %c0_i32_1 = arith.constant 0 : i32
    return %c0_i32, %c0_i32_0 : i32, i32
  }
  func.func @transform_4(%arg0: i32) -> (i32, i32) {
    %c0_i32 = arith.constant 0 : i32
    %c0_i32_0 = arith.constant 0 : i32
    %c0_i32_1 = arith.constant 0 : i32
    return %c0_i32, %c0_i32_0 : i32, i32
  }
  func.func @transform_5(%arg0: i32) -> (i32, i32) {
    %c0_i32 = arith.constant 0 : i32
    %c0_i32_0 = arith.constant 0 : i32
    %c0_i32_1 = arith.constant 0 : i32
    return %c0_i32, %c0_i32_0 : i32, i32
  }
  func.func @transform_6(%arg0: i32) -> (i32, i32) {
    %c0_i32 = arith.constant 0 : i32
    %c0_i32_0 = arith.constant 0 : i32
    %c0_i32_1 = arith.constant 0 : i32
    return %c0_i32, %c0_i32_0 : i32, i32
  }
  func.func @transform_7(%arg0: i32) -> (i32, i32) {
    %c0_i32 = arith.constant 0 : i32
    %c0_i32_0 = arith.constant 0 : i32
    %c0_i32_1 = arith.constant 0 : i32
    return %c0_i32, %c0_i32_0 : i32, i32
  }
  func.func @transform_8(%arg0: i32) -> (i32, i32) {
    %c0_i32 = arith.constant 0 : i32
    %c0_i32_0 = arith.constant 0 : i32
    %c0_i32_1 = arith.constant 0 : i32
    return %c0_i32, %c0_i32_0 : i32, i32
  }
  func.func @transform_9(%arg0: i32) -> (i32, i32) {
    %c0_i32 = arith.constant 0 : i32
    %c0_i32_0 = arith.constant 0 : i32
    %c0_i32_1 = arith.constant 0 : i32
    return %c0_i32, %c0_i32_0 : i32, i32
  }
  func.func @transform_10(%arg0: i32) -> (i32, i32) {
    %c0_i32 = arith.constant 0 : i32
    %c0_i32_0 = arith.constant 0 : i32
    %c0_i32_1 = arith.constant 0 : i32
    return %c0_i32, %c0_i32_0 : i32, i32
  }
  func.func @transform_11(%arg0: i32) -> (i32, i32) {
    %c0_i32 = arith.constant 0 : i32
    %c0_i32_0 = arith.constant 0 : i32
    %c0_i32_1 = arith.constant 0 : i32
    return %c0_i32, %c0_i32_0 : i32, i32
  }
  func.func @transform_12(%arg0: i32) -> (i32, i32) {
    %c0_i32 = arith.constant 0 : i32
    %c0_i32_0 = arith.constant 0 : i32
    %c0_i32_1 = arith.constant 0 : i32
    return %c0_i32, %c0_i32_0 : i32, i32
  }
  func.func @transform_13(%arg0: i32) -> (i32, i32) {
    %c0_i32 = arith.constant 0 : i32
    %c0_i32_0 = arith.constant 0 : i32
    %c0_i32_1 = arith.constant 0 : i32
    return %c0_i32, %c0_i32_0 : i32, i32
  }
  func.func @transform_14(%arg0: i32) -> (i32, i32) {
    %c0_i32 = arith.constant 0 : i32
    %c0_i32_0 = arith.constant 0 : i32
    %c0_i32_1 = arith.constant 0 : i32
    return %c0_i32, %c0_i32_0 : i32, i32
  }
  func.func @transform_15(%arg0: i32) -> (i32, i32) {
    %c0_i32 = arith.constant 0 : i32
    %c0_i32_0 = arith.constant 0 : i32
    %c0_i32_1 = arith.constant 0 : i32
    return %c0_i32, %c0_i32_0 : i32, i32
  }
  func.func @transform_16(%arg0: i32) -> (i32, i32) {
    %c0_i32 = arith.constant 0 : i32
    %c0_i32_0 = arith.constant 0 : i32
    %c0_i32_1 = arith.constant 0 : i32
    return %c0_i32, %c0_i32_0 : i32, i32
  }
  func.func @transform_17(%arg0: i32) -> (i32, i32) {
    %c0_i32 = arith.constant 0 : i32
    %c0_i32_0 = arith.constant 0 : i32
    %c0_i32_1 = arith.constant 0 : i32
    return %c0_i32, %c0_i32_0 : i32, i32
  }
  func.func @transform_18(%arg0: i32) -> (i32, i32) {
    %c0_i32 = arith.constant 0 : i32
    %c0_i32_0 = arith.constant 0 : i32
    %c0_i32_1 = arith.constant 0 : i32
    return %c0_i32, %c0_i32_0 : i32, i32
  }
  func.func @transform_19(%arg0: i32) -> (i32, i32) {
    %c0_i32 = arith.constant 0 : i32
    %c0_i32_0 = arith.constant 0 : i32
    %c0_i32_1 = arith.constant 0 : i32
    return %c0_i32, %c0_i32_0 : i32, i32
  }
  func.func @transform_20(%arg0: i32) -> (i32, i32) {
    %c0_i32 = arith.constant 0 : i32
    %c0_i32_0 = arith.constant 0 : i32
    %c0_i32_1 = arith.constant 0 : i32
    return %c0_i32, %c0_i32_0 : i32, i32
  }
  func.func @transform_21(%arg0: i32) -> (i32, i32) {
    %c0_i32 = arith.constant 0 : i32
    %c0_i32_0 = arith.constant 0 : i32
    return %c0_i32, %arg0 : i32, i32
  }
}

</mosaic_0001>

<bundles_post_ra>
// kernel: tpu_custom_call.1
= control target key start
LH: loop header
LB: loop body
LE: loop exit
PB: predicated region body
PF: predicated region fallthrough
CT: control target
= control target key end

     0   :  { %s7495_s0 = inlined_call_operand.hbm [shape: f32[8,16,128], index: 0, kind: input, shape index: {}]   ;;  %s7496_s1 = inlined_call_operand.vmem [shape: f32[32,16], index: 1, kind: input, shape index: {}]   ;;  %s7497_s2 = inlined_call_operand.vmem [shape: f32[32,16], index: 2, kind: input, shape index: {}]   ;;  %s7498_s3 = inlined_call_operand.vmem [shape: f32[32,1], index: 3, kind: input, shape index: {}]   ;;  %s7499_s4 = inlined_call_operand.vmem [shape: f32[16,32], index: 4, kind: input, shape index: {}]   ;;  %s7500_s5 = inlined_call_operand.vmem [shape: f32[16,1], index: 5, kind: input, shape index: {}]   ;;  %s7501_s6 = inlined_call_operand.vmem [shape: f32[8,16], index: 6, kind: input, shape index: {}]   ;;  %s7502_s7 = inlined_call_operand.vmem [shape: f32[8,1], index: 7, kind: input, shape index: {}]   ;;  %s7503_s8 = inlined_call_operand.vmem [shape: f32[32,16], index: 8, kind: input, shape index: {}]   ;;  %s7504_s9 = inlined_call_operand.vmem [shape: f32[32,8], index: 9, kind: input, shape index: {}]   ;;  %s7505_s10 = inlined_call_operand.vmem [shape: f32[32,1], index: 10, kind: input, shape index: {}]   ;;  %s7506_s11 = inlined_call_operand.vmem [shape: f32[16,32], index: 11, kind: input, shape index: {}]   ;;  %s7507_s12 = inlined_call_operand.vmem [shape: f32[16,1], index: 12, kind: input, shape index: {}]   ;;  %s7508_s13 = inlined_call_operand.vmem [shape: f32[16,16], index: 13, kind: input, shape index: {}]   ;;  %s7509_s14 = inlined_call_operand.vmem [shape: f32[16,1], index: 14, kind: input, shape index: {}]   ;;  %s7510_s15 = inlined_call_operand.vmem [shape: f32[32,16], index: 15, kind: input, shape index: {}]   ;;  %s7511_s16 = inlined_call_operand.vmem [shape: f32[32,1], index: 16, kind: input, shape index: {}]   ;;  %s7512_s17 = inlined_call_operand.vmem [shape: f32[16,32], index: 17, kind: input, shape index: {}]   ;;  %s7513_s18 = inlined_call_operand.vmem [shape: f32[16,1], index: 18, kind: input, shape index: {}]   ;;  %s7514_s19 = inlined_call_operand.vmem [shape: f32[4,16], index: 19, kind: input, shape index: {}]   ;;  %s7515_s20 = inlined_call_operand.vmem [shape: f32[4,1], index: 20, kind: input, shape index: {}]   ;;  %s7516_s21 = inlined_call_operand.hbm [shape: f32[4,128], index: 21, kind: output, shape index: {}]  }
   0x1   :  { %7534 = sst [smem:[#allocation30_spill]] %s7495_s0 }
   0x2   :  { %7535 = sst [smem:[#allocation31_spill]] %s7496_s1 }
   0x3   :  { %7536 = sst [smem:[#allocation32_spill]] %s7497_s2 }
   0x4   :  { %7537 = sst [smem:[#allocation33_spill]] %s7498_s3 }
   0x5   :  { %7538 = sst [smem:[#allocation34_spill]] %s7499_s4 }
   0x6   :  { %7539 = sst [smem:[#allocation35_spill]] %s7500_s5 }
   0x7   :  { %26 = vsyncpa [#allocation3], 0 }
   0x8   :  { %27 = vsyncpa [#allocation4], 0  ;;  %s7540_s26 = sld [smem:[#allocation30_spill]]  ;;  %s5345_s3 = smov [#allocation2]  }
   0x9   :  { %s34_s28 = sshll.u32 %s5345_s3, 4  ;;  %s5346_s29 = smov 128   ;;  %s35_s28 = int_to_ptr.vmem [resolvable:$true] %s34_s28 }
   0xa   :  { %s5347_s0 = smov 8  }
   0xe   :  { %s32_s27 = sshll.u32 %s7540_s26, 4  ;;  %s33_s27 = int_to_ptr.hbm [resolvable:$true] %s32_s27 }
   0xf   :  { %40 = dma.hbm_to_vmem [thread:$0]  %s33_s27, 2048, %s35_s28, [#allocation3], %s5346_s29, %s5346_s29, %s5347_s0  }
  0x10   :  { %5341 = dma.done.wait [#allocation3], 2048  }
  0x11   :  { %5342 = vsyncadd [#allocation3], 4294965248  ;;  %v5348_v0 = vmov 0   ;;  %v86_v1 = vld [vmem:[#allocation2 + $0x8] sm:$0xff]  ;;  %v88_v2 = vld [vmem:[#allocation2 + $0x18] sm:$0xff]  ;;  %s7541_s5 = sld [smem:[#allocation31_spill]] }
  0x12   :  { %5272 = vset.pattern.permute.xlu0 %v5348_v0  ;;  %5273 = vset.pattern.permute.xlu1 %v5348_v0  ;;  %v90_v3 = vld [vmem:[#allocation2 + $0x28] sm:$0xff]  ;;  %v85_v4 = vld [vmem:[#allocation2] sm:$0xff]  ;;  %v87_v5 = vld [vmem:[#allocation2 + $0x10] sm:$0xff]  ;;  %vm129_vm0 = vcmask 130048   ;;  %s7542_s2 = sld [smem:[#allocation33_spill]]  ;;  %vm1084_vm1 = vcmask 261120  }
  0x13   :  { %5274 = vset.pattern.permute.xlu2 %v5348_v0  ;;  %156 = vmatpush.msra.mxu0 %v86_v1  ;;  %v89_v6 = vld [vmem:[#allocation2 + $0x20] sm:$0xff]  ;;  %v92_v10 = vld [vmem:[#allocation2 + $0x38] sm:$0xff]  ;;  %v94_v11 = vld [vmem:[#allocation2 + $0x48] sm:$0xff]  ;;  %s7543_s1 = sld [smem:[#allocation32_spill]]  ;;  %vm3733_vm2 = vcmask 64512  }
  0x14   :  { %5265 = vmatpush.msra.mxu3 %v86_v1  ;;  %185 = vmatpush.msra.mxu1 %v88_v2  ;;  %v91_v13 = vld [vmem:[#allocation2 + $0x30] sm:$0xff]  ;;  %v96_v14 = vld [vmem:[#allocation2 + $0x58] sm:$0xff]  ;;  %v93_v15 = vld [vmem:[#allocation2 + $0x40] sm:$0xff]  ;;  %s7567_s25 = sld [smem:[#allocation35_spill]] }
  0x15   :  { %214 = vmatpush.msra.mxu2 %v90_v3  ;;  %157 = vmatpush.msra.mxu0 %v85_v4  ;;  %v98_v16 = vld [vmem:[#allocation2 + $0x68] sm:$0xff]  ;;  %v95_v17 = vld [vmem:[#allocation2 + $0x50] sm:$0xff]  ;;  %v97_v18 = vld [vmem:[#allocation2 + $0x60] sm:$0xff] }
  0x16   :  { %5266 = vmatpush.msra.mxu3 %v85_v4  ;;  %186 = vmatpush.msra.mxu1 %v87_v5  ;;  %v100_v23 = vld [vmem:[#allocation2 + $0x78] sm:$0xff]  ;;  %v99_v24 = vld [vmem:[#allocation2 + $0x70] sm:$0xff]  ;;  %v2492_v27 = vld [vmem:[%s7502_s7] sm:$0xff]  ;;  %s4920_s7 = sshll.u32 %s7516_s21, 4  ;;  %s4921_s7 = int_to_ptr.hbm [resolvable:$true] %s4920_s7 }
  0x17   :  { %v5466_v7 = vld [vmem:[%s7541_s5] sm:$0xff]  ;;  %v5471_v8 = vld [vmem:[%s7541_s5 + $0x10] sm:$0xff]  ;;  %215 = vmatpush.msra.mxu2 %v89_v6  ;;  %272 = vmatpush.msrb.mxu0 %v94_v11  ;;  %v102_v19 = vld [vmem:[%s7541_s5 + $0x8] sm:$0xff] }
  0x18   :  { %v108_v9 = vld [vmem:[%s7542_s2 + $0x18] sm:$0xff]  ;;  %4930 = vmatmul.msk.f32.vlgmr.msra.gmra.mxu0 %vm129_vm0, %v5466_v7  ;;  %4932 = vmatmul.msk.f32.vlgmr.msra.gmra.mxu3 %vm129_vm0, %v5471_v8  ;;  %v106_v12 = vld [vmem:[%s7542_s2 + $0x8] sm:$0xff]  ;;  %v107_v21 = vld [vmem:[%s7542_s2 + $0x10] sm:$0xff] }
  0x19   :  { %4934 = vmatmul.msk.f32.vlgmr.msra.gmra.mxu1 %vm129_vm0, %v5466_v7  ;;  %4938 = vmatmul.msk.f32.vlgmr.msra.gmra.mxu2 %vm129_vm0, %v5466_v7  ;;  %v5493_v20 = vld [vmem:[%s7541_s5 + $0x18] sm:$0xff]  ;;  %v105_v22 = vld [vmem:[%s7542_s2] sm:$0xff]  ;;  %v375_v26 = vld [vmem:[%s7543_s1 + $0x8] sm:$0xff]  ;;  %s7564_s5 = sld [smem:[#allocation34_spill]] }
  0x1a   :  { %126 = vperm.xlu0 %5272, %v108_v9   ;;  %243 = vmatpush.msrb.mxu3 %v92_v10  ;;  %v374_v25 = vld [vmem:[%s7543_s1] sm:$0xff]  ;;  %v376_v28 = vld [vmem:[%s7543_s1 + $0x10] sm:$0xff]  ;;  %v4223_v29 = vld [vmem:[%s7505_s10 + $0x8] sm:$0xff] }
  0x1b   :  { %116 = vperm.xlu1 %5273, %v106_v12   ;;  %301 = vmatpush.msrb.mxu1 %v96_v14  ;;  %v4225_v30 = vld [vmem:[%s7505_s10 + $0x18] sm:$0xff]  ;;  %v4312_v32 = vld [vmem:[%s7507_s12] sm:$0xff]  ;;  %v4533_v35 = vld [vmem:[%s7509_s14 + $0x8] sm:$0xff] }
  0x1c   :  { %244 = vmatpush.msrb.mxu3 %v91_v13  ;;  %273 = vmatpush.msrb.mxu0 %v93_v15  ;;  %v377_v31 = vld [vmem:[%s7543_s1 + $0x18] sm:$0xff]  ;;  %v4222_v33 = vld [vmem:[%s7505_s10] sm:$0xff]  ;;  %v4770_v37 = vld [vmem:[%s7511_s16 + $0x10] sm:$0xff] }
  0x1d   :  { %330 = vmatpush.msrb.mxu2 %v98_v16  ;;  %302 = vmatpush.msrb.mxu1 %v95_v17  ;;  %v4771_v34 = vld [vmem:[%s7511_s16 + $0x18] sm:$0xff]  ;;  %v4768_v36 = vld [vmem:[%s7511_s16] sm:$0xff]  ;;  %v4840_v39 = vld [vmem:[%s7513_s18 + $0x8] sm:$0xff] }
  0x1e   :  { %404 = vmatpush.msra.mxu0 %v86_v1  ;;  %359 = vmatpush.msra.mxu3 %v100_v23  ;;  %v4883_v38 = vld [vmem:[%s7515_s20] sm:$0xf] }
  0x1f   :  { %331 = vmatpush.msrb.mxu2 %v97_v18  ;;  %433 = vmatpush.msra.mxu1 %v88_v2 }
  0x20   :  { %4931 = vmatmul.msk.f32.gmra.mxu0 %vm129_vm0, %v102_v19  ;;  %4933 = vmatmul.msk.f32.gmra.mxu3 %vm129_vm0, %v5493_v20 }
  0x21   :  { %4935 = vmatmul.msk.f32.gmra.mxu1 %vm129_vm0, %v102_v19  ;;  %4939 = vmatmul.msk.f32.gmra.mxu2 %vm129_vm0, %v102_v19 }
  0x22   :  { %121 = vperm.xlu0 %5272, %v107_v21   ;;  %405 = vmatpush.msra.mxu0 %v85_v4 }
  0x23   :  { %111 = vperm.xlu1 %5273, %v105_v22   ;;  %360 = vmatpush.msra.mxu3 %v99_v24 }
  0x24   :  { %462 = vmatpush.msra.mxu2 %v90_v3  ;;  %434 = vmatpush.msra.mxu1 %v87_v5 }
  0x26   :  { %463 = vmatpush.msra.mxu2 %v89_v6 }
  0x28   :  { %4942 = vmatmul.msk.f32.vlgmr.msrb.gmra.mxu3 %vm129_vm0, %v5466_v7  ;;  %4946 = vmatmul.msk.f32.vlgmr.msrb.gmra.mxu0 %vm129_vm0, %v5466_v7 }
  0x29   :  { %4936 = vmatmul.msk.f32.gmra.mxu1 %vm129_vm0, %v5471_v8  ;;  %4940 = vmatmul.msk.f32.gmra.mxu2 %vm129_vm0, %v5471_v8 }
  0x2a   :  { %491 = vmatpush.msrb.mxu3 %v92_v10  ;;  %520 = vmatpush.msrb.mxu0 %v94_v11 }
  0x2b   :  { %2495 = vperm.xlu0 %5272, %v2492_v27   ;;  %4243 = vperm.xlu1 %5273, %v4225_v30  }
  0x2c   :  { %492 = vmatpush.msrb.mxu3 %v91_v13  ;;  %521 = vmatpush.msrb.mxu0 %v93_v15 }
  0x30   :  { %4943 = vmatmul.msk.f32.gmra.mxu3 %vm129_vm0, %v102_v19  ;;  %4947 = vmatmul.msk.f32.gmra.mxu0 %vm129_vm0, %v102_v19 }
  0x31   :  { %4937 = vmatmul.msk.f32.gmra.mxu1 %vm129_vm0, %v5493_v20  ;;  %4941 = vmatmul.msk.f32.gmra.mxu2 %vm129_vm0, %v5493_v20 }
  0x33   :  { %4233 = vperm.xlu0 %5272, %v4223_v29   ;;  %4228 = vperm.xlu1 %5273, %v4222_v33  }
  0x38   :  { %4944 = vmatmul.msk.f32.gmra.mxu3 %vm129_vm0, %v5471_v8  ;;  %4948 = vmatmul.msk.f32.gmra.mxu0 %vm129_vm0, %v5471_v8 }
  0x39   :  { %4950 = vmatmul.msk.f32.vlgmr.msrb.gmra.mxu1 %vm129_vm0, %v5466_v7  ;;  %4954 = vmatmul.msk.f32.vlgmr.msrb.gmra.mxu2 %vm129_vm0, %v5466_v7 }
  0x3a   :  { %549 = vmatpush.msrb.mxu1 %v96_v14  ;;  %578 = vmatpush.msrb.mxu2 %v98_v16 }
  0x3b   :  { %4316 = vperm.xlu0 %5272, %v4312_v32   ;;  %4541 = vperm.xlu1 %5273, %v4533_v35  }
  0x3c   :  { %550 = vmatpush.msrb.mxu1 %v95_v17  ;;  %579 = vmatpush.msrb.mxu2 %v97_v18 }
  0x40   :  { %4945 = vmatmul.msk.f32.gmra.mxu3 %vm129_vm0, %v5493_v20  ;;  %4949 = vmatmul.msk.f32.gmra.mxu0 %vm129_vm0, %v5493_v20 }
  0x41   :  { %4951 = vmatmul.msk.f32.gmra.mxu1 %vm129_vm0, %v102_v19  ;;  %4955 = vmatmul.msk.f32.gmra.mxu2 %vm129_vm0, %v102_v19 }
  0x43   :  { %4789 = vperm.xlu0 %5272, %v4771_v34   ;;  %4784 = vperm.xlu1 %5273, %v4770_v37  }
  0x48   :  { %4958 = vmatmul.msk.f32.vlgmr.msra.gmra.mxu3 %vm129_vm0, %v5466_v7  ;;  %4962 = vmatmul.msk.f32.vlgmr.msra.gmra.mxu0 %vm129_vm0, %v374_v25 }
  0x49   :  { %4952 = vmatmul.msk.f32.gmra.mxu1 %vm129_vm0, %v5471_v8  ;;  %4956 = vmatmul.msk.f32.gmra.mxu2 %vm129_vm0, %v5471_v8 }
  0x4a   :  { %607 = vmatpush.msra.mxu3 %v100_v23 }
  0x4b   :  { %4774 = vperm.xlu0 %5272, %v4768_v36   ;;  %4848 = vperm.xlu1 %5273, %v4840_v39  }
  0x4c   :  { %608 = vmatpush.msra.mxu3 %v99_v24 }
  0x50   :  { %4959 = vmatmul.msk.f32.gmra.mxu3 %vm129_vm0, %v102_v19  ;;  %4963 = vmatmul.msk.f32.gmra.mxu0 %vm129_vm0, %v375_v26 }
  0x51   :  { %4953 = vmatmul.msk.f32.gmra.mxu1 %vm129_vm0, %v5493_v20  ;;  %4957 = vmatmul.msk.f32.gmra.mxu2 %vm129_vm0, %v5493_v20 }
  0x53   :  { %4886 = vperm.xlu0 %5272, %v4883_v38  }
  0x58   :  { %4960 = vmatmul.msk.f32.gmra.mxu3 %vm129_vm0, %v5471_v8  ;;  %4964 = vmatmul.msk.f32.gmra.mxu0 %vm129_vm0, %v376_v28 }
  0x59   :  { %4966 = vmatmul.msk.f32.vlgmr.msra.gmra.mxu1 %vm129_vm0, %v374_v25  ;;  %4970 = vmatmul.msk.f32.vlgmr.msra.gmra.mxu2 %vm129_vm0, %v374_v25 }
  0x60   :  { %4961 = vmatmul.msk.f32.gmra.mxu3 %vm129_vm0, %v5493_v20  ;;  %4965 = vmatmul.msk.f32.gmra.mxu0 %vm129_vm0, %v377_v31 }
  0x61   :  { %4967 = vmatmul.msk.f32.gmra.mxu1 %vm129_vm0, %v375_v26  ;;  %4971 = vmatmul.msk.f32.gmra.mxu2 %vm129_vm0, %v375_v26 }
  0x68   :  { %4974 = vmatmul.msk.f32.vlgmr.msrb.gmra.mxu3 %vm129_vm0, %v374_v25  ;;  %4978 = vmatmul.msk.f32.vlgmr.msrb.gmra.mxu0 %vm129_vm0, %v374_v25 }
  0x69   :  { %4968 = vmatmul.msk.f32.gmra.mxu1 %vm129_vm0, %v376_v28  ;;  %4972 = vmatmul.msk.f32.gmra.mxu2 %vm129_vm0, %v376_v28 }
  0x70   :  { %4975 = vmatmul.msk.f32.gmra.mxu3 %vm129_vm0, %v375_v26  ;;  %4979 = vmatmul.msk.f32.gmra.mxu0 %vm129_vm0, %v375_v26 }
  0x71   :  { %4969 = vmatmul.msk.f32.gmra.mxu1 %vm129_vm0, %v377_v31  ;;  %4973 = vmatmul.msk.f32.gmra.mxu2 %vm129_vm0, %v377_v31 }
  0x78   :  { %4976 = vmatmul.msk.f32.gmra.mxu3 %vm129_vm0, %v376_v28  ;;  %4980 = vmatmul.msk.f32.gmra.mxu0 %vm129_vm0, %v376_v28 }
  0x79   :  { %4982 = vmatmul.msk.f32.vlgmr.msrb.gmra.mxu1 %vm129_vm0, %v374_v25  ;;  %4986 = vmatmul.msk.f32.vlgmr.msrb.gmra.mxu2 %vm129_vm0, %v374_v25 }
  0x80   :  { %4977 = vmatmul.msk.f32.gmra.mxu3 %vm129_vm0, %v377_v31  ;;  %4981 = vmatmul.msk.f32.gmra.mxu0 %vm129_vm0, %v377_v31 }
  0x81   :  { %4983 = vmatmul.msk.f32.gmra.mxu1 %vm129_vm0, %v375_v26  ;;  %4987 = vmatmul.msk.f32.gmra.mxu2 %vm129_vm0, %v375_v26 }
  0x88   :  { %4990 = vmatmul.msk.f32.vlgmr.msra.gmra.mxu3 %vm129_vm0, %v374_v25 }
  0x89   :  { %4984 = vmatmul.msk.f32.gmra.mxu1 %vm129_vm0, %v376_v28  ;;  %4988 = vmatmul.msk.f32.gmra.mxu2 %vm129_vm0, %v376_v28 }
  0x8c   :  { %v5694_v14 = vpop.permute.xlu0 %126 }
  0x8d   :  { %v5702_v18 = vpop.permute.xlu1 %116 }
  0x90   :  { %4991 = vmatmul.msk.f32.gmra.mxu3 %vm129_vm0, %v375_v26 }
  0x91   :  { %4985 = vmatmul.msk.f32.gmra.mxu1 %vm129_vm0, %v377_v31  ;;  %4989 = vmatmul.msk.f32.gmra.mxu2 %vm129_vm0, %v377_v31 }
  0x94   :  { %v5706_v20 = vpop.permute.xlu0 %121 }
  0x95   :  { %v159_v40 = vpop.f32.mrf.mxu0  ;;  %v5729_v30 = vpop.permute.xlu1 %111 }
  0x96   :  { %v5624_v41 = vpop.f32.mrf.mxu1 }
  0x98   :  { %4992 = vmatmul.msk.f32.gmra.mxu3 %vm129_vm0, %v376_v28 }
  0x9b   :  { %v165_v42 = vpop.f32.mrf.mxu3 }
  0x9c   :  { %v5627_v43 = vpop.f32.mrf.mxu2  ;;  %v5713_v23 = vadd.f32 %v165_v42, %v5706_v20 }
  0x9d   :  { %v162_v44 = vpop.f32.mrf.mxu0 }
  0x9e   :  { %v5629_v45 = vpop.f32.mrf.mxu1  ;;  %v5723_v27 = vadd.f32 %v162_v44, %v5702_v18 }
  0xa0   :  { %4993 = vmatmul.msk.f32.gmra.mxu3 %vm129_vm0, %v377_v31  ;;  %v5732_v31 = vadd.f32 %v159_v40, %v5729_v30 }
  0xa3   :  { %v168_v46 = vpop.f32.mrf.mxu3 }
  0xa4   :  { %v5632_v47 = vpop.f32.mrf.mxu2  ;;  %v5716_v24 = vadd.f32 %v168_v46, %v5694_v14 }
  0xa5   :  { %v5634_v48 = vpop.f32.mrf.mxu0 }
  0xa6   :  { %7544 = vst [vmem:[#allocation8_spill] sm:$0xff] %v5634_v48  ;;  %v5636_v49 = vpop.f32.mrf.mxu1 }
  0xab   :  { %v5638_v50 = vpop.f32.mrf.mxu3 }
  0xac   :  { %v5640_v51 = vpop.f32.mrf.mxu2 }
  0xad   :  { %v5642_v52 = vpop.f32.mrf.mxu0 }
  0xae   :  { %7545 = vst [vmem:[#allocation9_spill] sm:$0xff] %v5642_v52  ;;  %v5644_v53 = vpop.f32.mrf.mxu1 }
  0xb3   :  { %v5646_v54 = vpop.f32.mrf.mxu3 }
  0xb4   :  { %v5648_v55 = vpop.f32.mrf.mxu2 }
  0xb5   :  { %v5650_v56 = vpop.f32.mrf.mxu0 }
  0xb6   :  { %7546 = vst [vmem:[#allocation10_spill] sm:$0xff] %v5650_v56  ;;  %v5652_v57 = vpop.f32.mrf.mxu1  ;;  %v5856_v56 = vadd.f32 %v5648_v55, %v5694_v14 }
  0xb7   :  { %7547 = vst [vmem:[#allocation11_spill] sm:$0xff] %v5652_v57 }
  0xbb   :  { %v5654_v58 = vpop.f32.mrf.mxu3 }
  0xbc   :  { %v5656_v59 = vpop.f32.mrf.mxu2 }
  0xbd   :  { %7548 = vst [vmem:[#allocation12_spill] sm:$0xff] %v5656_v59  ;;  %v5658_v60 = vpop.f32.mrf.mxu0 }
  0xbe   :  { %7549 = vst [vmem:[#allocation13_spill] sm:$0xff] %v5658_v60  ;;  %v5660_v61 = vpop.f32.mrf.mxu1  ;;  %v5868_v60 = vadd.f32 %v5640_v51, %v5706_v20 }
  0xbf   :  { %7550 = vst [vmem:[#allocation14_spill] sm:$0xff] %v5660_v61  ;;  %v5816_v61 = vadd.f32 %v5624_v41, %v5729_v30 }
  0xc3   :  { %v5662_v62 = vpop.f32.mrf.mxu3 }
  0xc4   :  { %v5664_v63 = vpop.f32.mrf.mxu2 }
  0xc5   :  { %7551 = vst [vmem:[#allocation15_spill] sm:$0xff] %v5664_v63  ;;  %v5666_v0 = vpop.f32.mrf.mxu0 }
  0xc6   :  { %v5668_v1 = vpop.f32.mrf.mxu1 }
  0xc7   :  { %7552 = vst [vmem:[#allocation16_spill] sm:$0xff] %v5668_v1 }
  0xcb   :  { %v5670_v2 = vpop.f32.mrf.mxu3 }
  0xcc   :  { %7553 = vst [vmem:[#allocation17_spill] sm:$0xff] %v5670_v2  ;;  %v5672_v3 = vpop.f32.mrf.mxu2 }
  0xcd   :  { %7554 = vst [vmem:[#allocation18_spill] sm:$0xff] %v5672_v3  ;;  %v5674_v4 = vpop.f32.mrf.mxu0  ;;  %v5806_v3 = vadd.f32 %v5629_v45, %v5702_v18 }
  0xce   :  { %v5676_v5 = vpop.f32.mrf.mxu1 }
  0xcf   :  { %7555 = vst [vmem:[#allocation19_spill] sm:$0xff] %v5676_v5  ;;  %v685_v5 = vadd.f32 %v5674_v4, %v5806_v3 }
  0xd3   :  { %v5678_v6 = vpop.f32.mrf.mxu3 }
  0xd4   :  { %7556 = vst [vmem:[#allocation20_spill] sm:$0xff] %v5678_v6  ;;  %v5680_v7 = vpop.f32.mrf.mxu2 }
  0xd5   :  { %7557 = vst [vmem:[#allocation21_spill] sm:$0xff] %v5680_v7  ;;  %v5682_v8 = vpop.f32.mrf.mxu0 }
  0xd6   :  { %v5684_v9 = vpop.f32.mrf.mxu1 }
  0xd7   :  { %v622_v36 = vadd.f32 %v5684_v9, %v5732_v31 }
  0xd9   :  { %v846_v46 = vmax.f32 %v622_v36, 0.0 }
  0xdb   :  { %v5686_v10 = vpop.f32.mrf.mxu3 }
  0xdc   :  { %7558 = vst [vmem:[#allocation22_spill] sm:$0xff] %v5686_v10  ;;  %v5688_v11 = vpop.f32.mrf.mxu2 }
  0xdd   :  { %v5690_v12 = vpop.f32.mrf.mxu0 }
  0xde   :  { %v5692_v13 = vpop.f32.mrf.mxu1 }
  0xdf   :  { %7559 = vst [vmem:[#allocation23_spill] sm:$0xff] %v5692_v13  ;;  %v678_v33 = vadd.f32 %v5692_v13, %v5723_v27 }
  0xe1   :  { %v902_v39 = vmax.f32 %v678_v33, 0.0 }
  0xe3   :  { %v5696_v15 = vpop.f32.mrf.mxu3 }
  0xe4   :  { %7560 = vst [vmem:[#allocation24_spill] sm:$0xff] %v5696_v15  ;;  %v5698_v16 = vpop.f32.mrf.mxu2 }
  0xe5   :  { %v5700_v17 = vpop.f32.mrf.mxu0 }
  0xe6   :  { %v5704_v19 = vpop.f32.mrf.mxu1 }
  0xe7   :  { %7561 = vst [vmem:[#allocation25_spill] sm:$0xff] %v5704_v19  ;;  %v734_v29 = vadd.f32 %v5704_v19, %v5713_v23  ;;  %v749_v51 = vadd.f32 %v5704_v19, %v5868_v60 }
  0xe9   :  { %v958_v35 = vmax.f32 %v734_v29, 0.0  ;;  %v679_v29 = vadd.f32 %v5698_v16, %v5723_v27 }
  0xeb   :  { %v5708_v21 = vpop.f32.mrf.mxu3 }
  0xec   :  { %v5710_v22 = vpop.f32.mrf.mxu2 }
  0xed   :  { %v5718_v25 = vpop.f32.mrf.mxu0  ;;  %v735_v42 = vadd.f32 %v5710_v22, %v5713_v23 }
  0xee   :  { %v5720_v26 = vpop.f32.mrf.mxu1 }
  0xef   :  { %7562 = vst [vmem:[#allocation26_spill] sm:$0xff] %v5720_v26  ;;  %v790_v28 = vadd.f32 %v5720_v26, %v5716_v24  ;;  %v959_v33 = vmax.f32 %v735_v42, 0.0  ;;  %v805_v55 = vadd.f32 %v5720_v26, %v5856_v56 }
  0xf1   :  { %v1014_v32 = vmax.f32 %v790_v28, 0.0 }
  0xf3   :  { %1103 = vmatpush.msra.mxu0 %v1014_v32  ;;  %v5736_v34 = vpop.f32.mrf.mxu3  ;;  %v5755_v32 = vld [vmem:[%s7564_s5] sm:$0xff] }
  0xf4   :  { %v5740_v37 = vpop.f32.mrf.mxu2 }
  0xf5   :  { %1104 = vmatpush.msra.mxu0 %v958_v35  ;;  %v5742_v38 = vpop.f32.mrf.mxu0  ;;  %v791_v40 = vadd.f32 %v5740_v37, %v5716_v24  ;;  %v623_v35 = vadd.f32 %v5688_v11, %v5732_v31 }
  0xf6   :  { %v5748_v44 = vpop.f32.mrf.mxu1 }
  0xf7   :  { %7563 = vst [vmem:[#allocation27_spill] sm:$0xff] %v5748_v44  ;;  %1105 = vmatpush.msra.mxu0 %v902_v39  ;;  %v1015_v28 = vmax.f32 %v791_v40, 0.0  ;;  %v903_v39 = vmax.f32 %v679_v29, 0.0  ;;  %v847_v6 = vmax.f32 %v623_v35, 0.0  ;;  %v5784_v35 = vadd.f32 %v5644_v53, %v5694_v14 }
  0xf9   :  { %1106 = vmatpush.msra.mxu0 %v846_v46  ;;  %1126 = vmatpush.msra.mxu1 %v1015_v28  ;;  %v737_v46 = vadd.f32 %v5742_v38, %v5713_v23  ;;  %v5776_v28 = vld [vmem:[%s7564_s5 + $0x8] sm:$0xff] }
  0xfa   :  { %4994 = vmatmul.msk.f32.vlgmr.msra.gmra.mxu0 %vm1084_vm1, %v5755_v32 }
  0xfb   :  { %1127 = vmatpush.msra.mxu1 %v959_v33  ;;  %v5761_v36 = vpop.f32.mrf.mxu3  ;;  %v681_v33 = vadd.f32 %v5718_v25, %v5723_v27 }
  0xfc   :  { %v5763_v40 = vpop.f32.mrf.mxu2 }
  0xfd   :  { %1128 = vmatpush.msra.mxu1 %v903_v39  ;;  %v5765_v2 = vpop.f32.mrf.mxu0  ;;  %v961_v39 = vmax.f32 %v737_v46, 0.0  ;;  %v905_v63 = vmax.f32 %v681_v33, 0.0  ;;  %v797_v46 = vadd.f32 %v5690_v12, %v5784_v35  ;;  %v627_v19 = vadd.f32 %v5763_v40, %v5732_v31 }
  0xfe   :  { %v5767_v10 = vpop.f32.mrf.mxu1  ;;  %v793_v42 = vadd.f32 %v5765_v2, %v5716_v24 }
  0xff   :  { %7565 = vst [vmem:[#allocation28_spill] sm:$0xff] %v5767_v10  ;;  %1129 = vmatpush.msra.mxu1 %v847_v6  ;;  %v625_v6 = vadd.f32 %v5700_v17, %v5732_v31  ;;  %v1021_v1 = vmax.f32 %v797_v46, 0.0  ;;  %v909_v46 = vmax.f32 %v685_v5, 0.0 }
 0x100   :  { %v1017_v29 = vmax.f32 %v793_v42, 0.0  ;;  %4996 = vmatmul.msk.f32.vlgmr.msra.gmra.mxu1 %vm1084_vm1, %v5755_v32  ;;  %v5792_v42 = vadd.f32 %v5636_v49, %v5706_v20 }
 0x101   :  { %v849_v57 = vmax.f32 %v625_v6, 0.0 }
 0x102   :  { %1172 = vmatpush.msrb.mxu3 %v1017_v29  ;;  %4995 = vmatmul.msk.f32.gmra.mxu0 %vm1084_vm1, %v5776_v28  ;;  %v736_v29 = vadd.f32 %v5761_v36, %v5713_v23  ;;  %v741_v33 = vadd.f32 %v5682_v8, %v5792_v42 }
 0x103   :  { %v5794_v15 = vpop.f32.mrf.mxu3 }
 0x104   :  { %v5796_v59 = vpop.f32.mrf.mxu2  ;;  %1173 = vmatpush.msrb.mxu3 %v961_v39  ;;  %v792_v53 = vadd.f32 %v5794_v15, %v5716_v24  ;;  %v680_v39 = vadd.f32 %v5736_v34, %v5723_v27  ;;  %v960_v45 = vmax.f32 %v736_v29, 0.0  ;;  %v965_v41 = vmax.f32 %v741_v33, 0.0 }
 0x105   :  { %v683_v26 = vadd.f32 %v5796_v59, %v5723_v27 }
 0x106   :  { %v5808_v49 = vpop.f32.mrf.mxu1  ;;  %1174 = vmatpush.msrb.mxu3 %v905_v63  ;;  %v1016_v7 = vmax.f32 %v792_v53, 0.0  ;;  %v624_v63 = vadd.f32 %v5708_v21, %v5732_v31  ;;  %v904_v6 = vmax.f32 %v680_v39, 0.0 }
 0x107   :  { %7566 = vst [vmem:[#allocation29_spill] sm:$0xff] %v5808_v49  ;;  %v738_v39 = vadd.f32 %v5808_v49, %v5713_v23 }
 0x108   :  { %1149 = vmatpush.msra.mxu2 %v1016_v7  ;;  %1175 = vmatpush.msrb.mxu3 %v849_v57  ;;  %v629_v57 = vadd.f32 %v5666_v0, %v5816_v61  ;;  %v848_v29 = vmax.f32 %v624_v63, 0.0 }
 0x109   :  { %5000 = vmatmul.msk.f32.vlgmr.msrb.gmra.mxu3 %vm1084_vm1, %v5755_v32  ;;  %4997 = vmatmul.msk.f32.gmra.mxu1 %vm1084_vm1, %v5776_v28 }
 0x10a   :  { %1264 = vmatpush.msra.mxu3 %v1021_v1  ;;  %1150 = vmatpush.msra.mxu2 %v960_v45  ;;  %v853_v52 = vmax.f32 %v629_v57, 0.0  ;;  %v745_v45 = vadd.f32 %v5808_v49, %v5792_v42  ;;  %v851_v49 = vmax.f32 %v627_v19, 0.0 }
 0x10b   :  { %v5828_v7 = vpop.f32.mrf.mxu3 }
 0x10c   :  { %v5830_v53 = vpop.f32.mrf.mxu2  ;;  %1265 = vmatpush.msra.mxu3 %v965_v41  ;;  %1151 = vmatpush.msra.mxu2 %v904_v6  ;;  %v682_v41 = vadd.f32 %v5767_v10, %v5723_v27  ;;  %v689_v6 = vadd.f32 %v5767_v10, %v5806_v3 }
 0x10e   :  { %v5832_v48 = vpop.f32.mrf.mxu1  ;;  %1266 = vmatpush.msra.mxu3 %v909_v46  ;;  %1152 = vmatpush.msra.mxu2 %v848_v29  ;;  %v962_v46 = vmax.f32 %v738_v39, 0.0  ;;  %v969_v29 = vmax.f32 %v745_v45, 0.0  ;;  %v798_v45 = vadd.f32 %v5740_v37, %v5784_v35 }
 0x10f   :  { %v794_v1 = vadd.f32 %v5832_v48, %v5716_v24  ;;  %v801_v33 = vadd.f32 %v5832_v48, %v5784_v35  ;;  %4998 = vmatmul.msk.f32.vlgmr.msra.gmra.mxu2 %vm1084_vm1, %v5755_v32 }
 0x110   :  { %1267 = vmatpush.msra.mxu3 %v853_v52  ;;  %v626_v52 = vadd.f32 %v5748_v44, %v5732_v31 }
 0x111   :  { %5001 = vmatmul.msk.f32.gmra.mxu3 %vm1084_vm1, %v5776_v28  ;;  %v1018_v5 = vmax.f32 %v794_v1, 0.0  ;;  %v1025_v63 = vmax.f32 %v801_v33, 0.0  ;;  %v633_v33 = vadd.f32 %v5748_v44, %v5816_v61  ;;  %v739_v44 = vadd.f32 %v5830_v53, %v5713_v23 }
 0x113   :  { %1195 = vmatpush.msrb.mxu0 %v1018_v5  ;;  %1356 = vmatpush.msrb.mxu3 %v1025_v63  ;;  %v5850_v57 = vpop.f32.mrf.mxu3  ;;  %v906_v5 = vmax.f32 %v682_v41, 0.0  ;;  %v913_v63 = vmax.f32 %v689_v6, 0.0  ;;  %v850_v41 = vmax.f32 %v626_v52, 0.0  ;;  %v857_v10 = vmax.f32 %v633_v33, 0.0 }
 0x114   :  { %v5858_v1 = vpop.f32.mrf.mxu2  ;;  %v5888_v52 = vadd.f32 %v5627_v43, %v5729_v30  ;;  %v1029_v33 = vmax.f32 %v805_v55, 0.0  ;;  %v973_v55 = vmax.f32 %v749_v51, 0.0  ;;  %v746_v51 = vadd.f32 %v5830_v53, %v5792_v42 }
 0x115   :  { %1196 = vmatpush.msrb.mxu0 %v962_v46  ;;  %1357 = vmatpush.msrb.mxu3 %v969_v29  ;;  %v795_v39 = vadd.f32 %v5858_v1, %v5716_v24  ;;  %v742_v46 = vadd.f32 %v5710_v22, %v5792_v42  ;;  %v5878_v29 = vadd.f32 %v5632_v47, %v5702_v18 }
 0x116   :  { %v686_v47 = vadd.f32 %v5698_v16, %v5806_v3 }
 0x117   :  { %1197 = vmatpush.msrb.mxu0 %v906_v5  ;;  %1358 = vmatpush.msrb.mxu3 %v913_v63  ;;  %v1019_v6 = vmax.f32 %v795_v39, 0.0  ;;  %v1022_v5 = vmax.f32 %v798_v45, 0.0  ;;  %v963_v63 = vmax.f32 %v739_v44, 0.0  ;;  %v693_v39 = vadd.f32 %v5692_v13, %v5878_v29 }
 0x118   :  { %4999 = vmatmul.msk.f32.gmra.mxu2 %vm1084_vm1, %v5776_v28  ;;  %v966_v45 = vmax.f32 %v742_v46, 0.0  ;;  %v907_v44 = vmax.f32 %v683_v26, 0.0  ;;  %v910_v13 = vmax.f32 %v686_v47, 0.0  ;;  %v687_v47 = vadd.f32 %v5736_v34, %v5806_v3 }
 0x119   :  { %1198 = vmatpush.msrb.mxu0 %v850_v41  ;;  %1218 = vmatpush.msrb.mxu1 %v1019_v6  ;;  %v799_v41 = vadd.f32 %v5794_v15, %v5784_v35  ;;  %v637_v6 = vadd.f32 %v5684_v9, %v5888_v52  ;;  %v917_v46 = vmax.f32 %v693_v39, 0.0  ;;  %v690_v39 = vadd.f32 %v5796_v59, %v5806_v3 }
 0x11a   :  { %1359 = vmatpush.msrb.mxu3 %v857_v10  ;;  %5002 = vmatmul.msk.f32.vlgmr.msrb.gmra.mxu0 %vm1084_vm1, %v5755_v32  ;;  %v630_v10 = vadd.f32 %v5688_v11, %v5816_v61 }
 0x11b   :  { %5008 = vmatmul.msk.f32.vlgmr.msra.gmra.mxu3 %vm1084_vm1, %v5755_v32  ;;  %1287 = vmatpush.msra.mxu0 %v1022_v5  ;;  %v5900_v43 = vpop.f32.mrf.mxu3  ;;  %v802_v5 = vadd.f32 %v5858_v1, %v5784_v35 }
 0x11c   :  { %1448 = vmatpush.msra.mxu3 %v1029_v33  ;;  %1219 = vmatpush.msrb.mxu1 %v963_v63  ;;  %v743_v33 = vadd.f32 %v5761_v36, %v5792_v42  ;;  %v854_v26 = vmax.f32 %v630_v10, 0.0  ;;  %v1023_v63 = vmax.f32 %v799_v41, 0.0  ;;  %v631_v10 = vadd.f32 %v5708_v21, %v5816_v61 }
 0x11d   :  { %1288 = vmatpush.msra.mxu0 %v966_v45  ;;  %v861_v45 = vmax.f32 %v637_v6, 0.0  ;;  %v1026_v19 = vmax.f32 %v802_v5, 0.0  ;;  %v911_v41 = vmax.f32 %v687_v47, 0.0  ;;  %v1073_v47 = vld [vmem:[%s7567_s25 + $0x8] sm:$0xff] }
 0x11e   :  { %1449 = vmatpush.msra.mxu3 %v973_v55  ;;  %1220 = vmatpush.msrb.mxu1 %v907_v44  ;;  %v634_v44 = vadd.f32 %v5763_v40, %v5816_v61 }
 0x11f   :  { %1289 = vmatpush.msra.mxu0 %v910_v13  ;;  %v967_v13 = vmax.f32 %v743_v33, 0.0  ;;  %v914_v33 = vmax.f32 %v690_v39, 0.0  ;;  %1081 = vperm.xlu2 %5274, %v1073_v47   ;;  %v800_v47 = vadd.f32 %v5765_v2, %v5784_v35 }
 0x120   :  { %1450 = vmatpush.msra.mxu3 %v917_v46  ;;  %1221 = vmatpush.msrb.mxu1 %v851_v49  ;;  %v970_v49 = vmax.f32 %v746_v51, 0.0  ;;  %v740_v46 = vadd.f32 %v5900_v43, %v5713_v23  ;;  %v747_v23 = vadd.f32 %v5900_v43, %v5792_v42 }
 0x121   :  { %5004 = vmatmul.msk.f32.vlgmr.msrb.gmra.mxu1 %vm1084_vm1, %v5755_v32  ;;  %1290 = vmatpush.msra.mxu0 %v854_v26  ;;  %v855_v26 = vmax.f32 %v631_v10, 0.0  ;;  %v684_v10 = vadd.f32 %v5850_v57, %v5723_v27 }
 0x122   :  { %1310 = vmatpush.msra.mxu1 %v1023_v63  ;;  %1451 = vmatpush.msra.mxu3 %v861_v45  ;;  %v809_v45 = vadd.f32 %v5858_v1, %v5856_v56  ;;  %v964_v39 = vmax.f32 %v740_v46, 0.0  ;;  %v971_v46 = vmax.f32 %v747_v23, 0.0 }
 0x123   :  { %1379 = vmatpush.msrb.mxu0 %v1026_v19  ;;  %5009 = vmatmul.msk.f32.gmra.mxu3 %vm1084_vm1, %v5776_v28  ;;  %v5924_v55 = vpop.f32.mrf.mxu3  ;;  %v806_v19 = vadd.f32 %v5794_v15, %v5856_v56 }
 0x124   :  { %5003 = vmatmul.msk.f32.gmra.mxu0 %vm1084_vm1, %v5776_v28  ;;  %1311 = vmatpush.msra.mxu1 %v967_v13  ;;  %v796_v6 = vadd.f32 %v5924_v55, %v5716_v24  ;;  %v803_v5 = vadd.f32 %v5924_v55, %v5784_v35  ;;  %v858_v24 = vmax.f32 %v634_v44, 0.0  ;;  %v753_v13 = vadd.f32 %v5830_v53, %v5868_v60 }
 0x125   :  { %1380 = vmatpush.msrb.mxu0 %v970_v49  ;;  %v750_v49 = vadd.f32 %v5761_v36, %v5868_v60  ;;  %v691_v44 = vadd.f32 %v5850_v57, %v5806_v3  ;;  %v1030_v27 = vmax.f32 %v806_v19, 0.0  ;;  %v744_v35 = vadd.f32 %v5742_v38, %v5792_v42 }
 0x126   :  { %1312 = vmatpush.msra.mxu1 %v911_v41  ;;  %v1020_v51 = vmax.f32 %v796_v6, 0.0  ;;  %v1027_v63 = vmax.f32 %v803_v5, 0.0  ;;  %v1033_v41 = vmax.f32 %v809_v45, 0.0  ;;  %v697_v6 = vadd.f32 %v5796_v59, %v5878_v29 }
 0x127   :  { %1381 = vmatpush.msrb.mxu0 %v914_v33  ;;  %v628_v5 = vadd.f32 %v5828_v7, %v5732_v31  ;;  %v694_v33 = vadd.f32 %v5736_v34, %v5878_v29  ;;  %v974_v31 = vmax.f32 %v750_v49, 0.0  ;;  %v915_v45 = vmax.f32 %v691_v44, 0.0 }
 0x128   :  { %1313 = vmatpush.msra.mxu1 %v855_v26  ;;  %1241 = vmatpush.msrb.mxu2 %v1020_v51  ;;  %v635_v26 = vadd.f32 %v5828_v7, %v5816_v61  ;;  %v977_v51 = vmax.f32 %v753_v13, 0.0  ;;  %v921_v19 = vmax.f32 %v697_v6, 0.0  ;;  %v641_v13 = vadd.f32 %v5763_v40, %v5888_v52 }
 0x129   :  { %1382 = vmatpush.msrb.mxu0 %v858_v24  ;;  %5005 = vmatmul.msk.f32.gmra.mxu1 %vm1084_vm1, %v5776_v28  ;;  %v638_v24 = vadd.f32 %v5708_v21, %v5888_v52  ;;  %v852_v23 = vmax.f32 %v628_v5, 0.0  ;;  %v751_v44 = vadd.f32 %v5742_v38, %v5868_v60  ;;  %v688_v5 = vadd.f32 %v5718_v25, %v5806_v3 }
 0x12a   :  { %1402 = vmatpush.msrb.mxu1 %v1027_v63  ;;  %1242 = vmatpush.msrb.mxu2 %v964_v39  ;;  %v908_v63 = vmax.f32 %v684_v10, 0.0  ;;  %v807_v39 = vadd.f32 %v5765_v2, %v5856_v56  ;;  %v918_v10 = vmax.f32 %v694_v33, 0.0  ;;  %v859_v49 = vmax.f32 %v635_v26, 0.0 }
 0x12b   :  { %5016 = vmatmul.msk.f32.vlgmr.msrb.gmra.mxu3 %vm1084_vm1, %v5755_v32  ;;  %v862_v6 = vmax.f32 %v638_v24, 0.0  ;;  %v865_v42 = vmax.f32 %v641_v13, 0.0  ;;  %v968_v33 = vmax.f32 %v744_v35, 0.0  ;;  %v632_v26 = vadd.f32 %v5700_v17, %v5816_v61 }
 0x12c   :  { %5010 = vmatmul.msk.f32.vlgmr.msra.gmra.mxu0 %vm1084_vm1, %v5755_v32  ;;  %1540 = vmatpush.msrb.mxu3 %v1033_v41  ;;  %v1024_v41 = vmax.f32 %v800_v47, 0.0  ;;  %v975_v3 = vmax.f32 %v751_v44, 0.0  ;;  %v748_v47 = vadd.f32 %v5682_v8, %v5868_v60  ;;  %v6004_v24 = vadd.f32 %v5662_v62, %v5694_v14 }
 0x12d   :  { %1471 = vmatpush.msra.mxu0 %v1030_v27  ;;  %1403 = vmatpush.msrb.mxu1 %v971_v46  ;;  %v1031_v27 = vmax.f32 %v807_v39, 0.0  ;;  %v695_v46 = vadd.f32 %v5718_v25, %v5878_v29  ;;  %v810_v13 = vadd.f32 %v5924_v55, %v5856_v56  ;;  %v692_v62 = vadd.f32 %v5674_v4, %v5878_v29 }
 0x12e   :  { %1541 = vmatpush.msrb.mxu3 %v977_v51  ;;  %1243 = vmatpush.msrb.mxu2 %v908_v63  ;;  %v639_v51 = vadd.f32 %v5700_v17, %v5888_v52  ;;  %v804_v63 = vadd.f32 %v5690_v12, %v5856_v56  ;;  %v972_v35 = vmax.f32 %v748_v47, 0.0  ;;  %v754_v44 = vadd.f32 %v5900_v43, %v5868_v60 }
 0x12f   :  { %1472 = vmatpush.msra.mxu0 %v974_v31  ;;  %1404 = vmatpush.msrb.mxu1 %v915_v45  ;;  %v1072_v31 = vld [vmem:[%s7567_s25] sm:$0xff]  ;;  %v912_v45 = vmax.f32 %v688_v5, 0.0  ;;  %v919_v61 = vmax.f32 %v695_v46, 0.0  ;;  %v1034_v5 = vmax.f32 %v810_v13, 0.0 }
 0x130   :  { %1542 = vmatpush.msrb.mxu3 %v921_v19  ;;  %1244 = vmatpush.msrb.mxu2 %v852_v23  ;;  %v856_v19 = vmax.f32 %v632_v26, 0.0  ;;  %v863_v23 = vmax.f32 %v639_v51, 0.0  ;;  %v1028_v39 = vmax.f32 %v804_v63, 0.0  ;;  %v978_v26 = vmax.f32 %v754_v44, 0.0 }
 0x131   :  { %1473 = vmatpush.msra.mxu0 %v918_v10  ;;  %1405 = vmatpush.msrb.mxu1 %v859_v49  ;;  %v6010_v10 = vadd.f32 %v5654_v58, %v5706_v20  ;;  %v813_v49 = vadd.f32 %v5740_v37, %v6004_v24 }
 0x132   :  { %5006 = vmatmul.msk.f32.vlgmr.msrb.gmra.mxu2 %vm1084_vm1, %v5755_v32  ;;  %5012 = vmatmul.msk.f32.vlgmr.msra.gmra.mxu1 %vm1084_vm1, %v5755_v32 }
 0x133   :  { %1333 = vmatpush.msra.mxu2 %v1024_v41  ;;  %1474 = vmatpush.msra.mxu0 %v862_v6  ;;  %v6020_v41 = vadd.f32 %v5646_v54, %v5702_v18  ;;  %v757_v58 = vadd.f32 %v5710_v22, %v6010_v10  ;;  %v636_v6 = vadd.f32 %v5666_v0, %v5888_v52  ;;  %v1037_v54 = vmax.f32 %v813_v49, 0.0 }
 0x134   :  { %1494 = vmatpush.msra.mxu1 %v1031_v27  ;;  %1543 = vmatpush.msrb.mxu3 %v865_v42  ;;  %v698_v27 = vadd.f32 %v5850_v57, %v5878_v29  ;;  %v916_v42 = vmax.f32 %v692_v62, 0.0  ;;  %v7569_v62 = vld [vmem:[#allocation28_spill] sm:$0xff] }
 0x135   :  { %5011 = vmatmul.msk.f32.gmra.mxu0 %vm1084_vm1, %v5776_v28  ;;  %1334 = vmatpush.msra.mxu2 %v968_v33  ;;  %v701_v46 = vadd.f32 %v5698_v16, %v6020_v41  ;;  %v6038_v33 = vadd.f32 %v5638_v50, %v5729_v30  ;;  %v981_v51 = vmax.f32 %v757_v58, 0.0  ;;  %v860_v63 = vmax.f32 %v636_v6, 0.0  ;;  %v7570_v6 = vld [vmem:[#allocation27_spill] sm:$0xff] }
 0x136   :  { %5017 = vmatmul.msk.f32.gmra.mxu3 %vm1084_vm1, %v5776_v28  ;;  %1495 = vmatpush.msra.mxu1 %v975_v3  ;;  %v808_v3 = vadd.f32 %v5832_v48, %v5856_v56  ;;  %v922_v50 = vmax.f32 %v698_v27, 0.0  ;;  %v7568_v56 = vld [vmem:[#allocation29_spill] sm:$0xff] }
 0x137   :  { %1335 = vmatpush.msra.mxu2 %v912_v45  ;;  %1076 = vperm.xlu2 %5274, %v1072_v31   ;;  %v642_v31 = vadd.f32 %v5828_v7, %v5888_v52  ;;  %v811_v45 = vadd.f32 %v5690_v12, %v6004_v24  ;;  %v925_v47 = vmax.f32 %v701_v46, 0.0 }
 0x138   :  { %1496 = vmatpush.msra.mxu1 %v919_v61  ;;  %v645_v61 = vadd.f32 %v5688_v11, %v6038_v33 }
 0x139   :  { %1336 = vmatpush.msra.mxu2 %v856_v19  ;;  %v752_v19 = vadd.f32 %v7568_v56, %v5868_v60  ;;  %v866_v13 = vmax.f32 %v642_v31, 0.0  ;;  %v1035_v49 = vmax.f32 %v811_v45, 0.0  ;;  %v699_v60 = vadd.f32 %v5674_v4, %v6020_v41 }
 0x13a   :  { %1497 = vmatpush.msra.mxu1 %v863_v23  ;;  %5007 = vmatmul.msk.f32.gmra.mxu2 %vm1084_vm1, %v5776_v28  ;;  %v1032_v23 = vmax.f32 %v808_v3, 0.0  ;;  %v869_v44 = vmax.f32 %v645_v61, 0.0  ;;  %v817_v3 = vadd.f32 %v5924_v55, %v6004_v24  ;;  %v702_v45 = vadd.f32 %v5718_v25, %v6020_v41 }
 0x13b   :  { %1425 = vmatpush.msrb.mxu2 %v1028_v39  ;;  %5013 = vmatmul.msk.f32.gmra.mxu1 %vm1084_vm1, %v5776_v28  ;;  %v755_v39 = vadd.f32 %v5682_v8, %v6010_v10  ;;  %v976_v58 = vmax.f32 %v752_v19, 0.0  ;;  %v705_v61 = vadd.f32 %v5850_v57, %v6020_v41  ;;  %v7571_v19 = vld [vmem:[#allocation26_spill] sm:$0xff] }
 0x13d   :  { %1426 = vmatpush.msrb.mxu2 %v972_v35  ;;  %5018 = vmatmul.msk.f32.vlgmr.msrb.gmra.mxu0 %vm1084_vm1, %v5755_v32  ;;  %v696_v35 = vadd.f32 %v7569_v62, %v5878_v29  ;;  %v979_v27 = vmax.f32 %v755_v39, 0.0  ;;  %v643_v29 = vadd.f32 %v5666_v0, %v6038_v33 }
 0x13e   :  { %5024 = vmatmul.msk.f32.vlgmr.msra.gmra.mxu3 %vm1084_vm1, %v5755_v32  ;;  %1563 = vmatpush.msrb.mxu0 %v1034_v5  ;;  %v640_v5 = vadd.f32 %v7570_v6, %v5888_v52  ;;  %v814_v52 = vadd.f32 %v5765_v2, %v6004_v24 }
 0x13f   :  { %1632 = vmatpush.msra.mxu3 %v1037_v54  ;;  %1427 = vmatpush.msrb.mxu2 %v916_v42  ;;  %v920_v54 = vmax.f32 %v696_v35, 0.0  ;;  %v923_v42 = vmax.f32 %v699_v60, 0.0  ;;  %v926_v35 = vmax.f32 %v702_v45, 0.0  ;;  %v929_v60 = vmax.f32 %v705_v61, 0.0 }
 0x140   :  { %1564 = vmatpush.msrb.mxu0 %v978_v26  ;;  %v864_v46 = vmax.f32 %v640_v5, 0.0  ;;  %v867_v26 = vmax.f32 %v643_v29, 0.0  ;;  %v1038_v31 = vmax.f32 %v814_v52, 0.0  ;;  %v759_v29 = vadd.f32 %v7568_v56, %v6010_v10 }
 0x141   :  { %1633 = vmatpush.msra.mxu3 %v981_v51  ;;  %1428 = vmatpush.msrb.mxu2 %v860_v63  ;;  %v758_v51 = vadd.f32 %v5742_v38, %v6010_v10  ;;  %v761_v63 = vadd.f32 %v5900_v43, %v6010_v10  ;;  %v647_v45 = vadd.f32 %v7570_v6, %v6038_v33 }
 0x142   :  { %1565 = vmatpush.msrb.mxu0 %v922_v50  ;;  %5014 = vmatmul.msk.f32.vlgmr.msra.gmra.mxu2 %vm1084_vm1, %v5755_v32  ;;  %v1041_v50 = vmax.f32 %v817_v3, 0.0  ;;  %v703_v3 = vadd.f32 %v7569_v62, %v6020_v41 }
 0x143   :  { %1634 = vmatpush.msra.mxu3 %v925_v47  ;;  %5020 = vmatmul.msk.f32.vlgmr.msrb.gmra.mxu1 %vm1084_vm1, %v5755_v32  ;;  %v982_v47 = vmax.f32 %v758_v51, 0.0  ;;  %v985_v39 = vmax.f32 %v761_v63, 0.0  ;;  %v644_v63 = vadd.f32 %v5684_v9, %v6038_v33 }
 0x144   :  { %1517 = vmatpush.msra.mxu2 %v1032_v23  ;;  %1566 = vmatpush.msrb.mxu0 %v866_v13  ;;  %v812_v23 = vadd.f32 %v7571_v19, %v6004_v24  ;;  %v646_v13 = vadd.f32 %v5700_v17, %v6038_v33 }
 0x145   :  { %1586 = vmatpush.msrb.mxu1 %v1035_v49  ;;  %1635 = vmatpush.msra.mxu3 %v869_v44  ;;  %v815_v49 = vadd.f32 %v5832_v48, %v6004_v24  ;;  %v649_v44 = vadd.f32 %v5828_v7, %v6038_v33 }
 0x146   :  { %5019 = vmatmul.msk.f32.gmra.mxu0 %vm1084_vm1, %v5776_v28  ;;  %5025 = vmatmul.msk.f32.gmra.mxu3 %vm1084_vm1, %v5776_v28 }
 0x147   :  { %1518 = vmatpush.msra.mxu2 %v976_v58  ;;  %1587 = vmatpush.msrb.mxu1 %v979_v27  ;;  %v7572_v58 = vld [vmem:[#allocation25_spill] sm:$0xff]  ;;  %v1036_v27 = vmax.f32 %v812_v23, 0.0  ;;  %v927_v23 = vmax.f32 %v703_v3, 0.0 }
 0x148   :  { %v756_v5 = vadd.f32 %v7572_v58, %v6010_v10 }
 0x149   :  { %1519 = vmatpush.msra.mxu2 %v920_v54  ;;  %1588 = vmatpush.msrb.mxu1 %v923_v42  ;;  %v870_v54 = vmax.f32 %v646_v13, 0.0  ;;  %v1039_v42 = vmax.f32 %v815_v49, 0.0  ;;  %v868_v49 = vmax.f32 %v644_v63, 0.0 }
 0x14a   :  { %5015 = vmatmul.msk.f32.gmra.mxu2 %vm1084_vm1, %v5776_v28  ;;  %v980_v51 = vmax.f32 %v756_v5, 0.0  ;;  %v7576_v5 = vld [vmem:[#allocation9_spill] sm:$0xff] }
 0x14b   :  { %1520 = vmatpush.msra.mxu2 %v864_v46  ;;  %1589 = vmatpush.msrb.mxu1 %v867_v26  ;;  %v7573_v46 = vld [vmem:[#allocation23_spill] sm:$0xff]  ;;  %v873_v26 = vmax.f32 %v649_v44, 0.0  ;;  %v871_v44 = vmax.f32 %v647_v45, 0.0  ;;  %v816_v45 = vadd.f32 %v5858_v1, %v6004_v24 }
 0x14c   :  { %5021 = vmatmul.msk.f32.gmra.mxu1 %vm1084_vm1, %v5776_v28  ;;  %v700_v52 = vadd.f32 %v7573_v46, %v6020_v41 }
 0x14d   :  { %v1040_v24 = vmax.f32 %v816_v45, 0.0 }
 0x14e   :  { %5026 = vmatmul.msk.f32.vlgmr.msra.gmra.mxu0 %vm1084_vm1, %v5755_v32  ;;  %5032 = vmatmul.msk.f32.vlgmr.msrb.gmra.mxu3 %vm1084_vm1, %v5755_v32 }
 0x14f   :  { %1655 = vmatpush.msra.mxu0 %v1038_v31  ;;  %1724 = vmatpush.msrb.mxu3 %v1041_v50  ;;  %v983_v31 = vmax.f32 %v759_v29, 0.0  ;;  %v7574_v50 = vld [vmem:[#allocation13_spill] sm:$0xff] }
 0x150   :  { %v6118_v61 = vadd.f32 %v7574_v50, %v5694_v14 }
 0x151   :  { %1656 = vmatpush.msra.mxu0 %v982_v47  ;;  %1725 = vmatpush.msrb.mxu3 %v985_v39  ;;  %v924_v47 = vmax.f32 %v700_v52, 0.0  ;;  %v7575_v39 = vld [vmem:[#allocation10_spill] sm:$0xff] }
 0x152   :  { %5022 = vmatmul.msk.f32.vlgmr.msrb.gmra.mxu2 %vm1084_vm1, %v5755_v32  ;;  %v6124_v13 = vadd.f32 %v7575_v39, %v5706_v20 }
 0x153   :  { %1657 = vmatpush.msra.mxu0 %v926_v35  ;;  %1726 = vmatpush.msrb.mxu3 %v929_v60  ;;  %v818_v35 = vadd.f32 %v5690_v12, %v6118_v61  ;;  %v821_v60 = vadd.f32 %v5794_v15, %v6118_v61 }
 0x154   :  { %5028 = vmatmul.msk.f32.vlgmr.msra.gmra.mxu1 %vm1084_vm1, %v5755_v32  ;;  %1609 = vmatpush.msrb.mxu2 %v1036_v27  ;;  %v6132_v27 = vadd.f32 %v7576_v5, %v5702_v18  ;;  %v762_v29 = vadd.f32 %v5682_v8, %v6124_v13 }
 0x155   :  { %1658 = vmatpush.msra.mxu0 %v870_v54  ;;  %1678 = vmatpush.msra.mxu1 %v1039_v42  ;;  %v765_v54 = vadd.f32 %v5761_v36, %v6124_v13  ;;  %v1042_v42 = vmax.f32 %v818_v35, 0.0 }
 0x156   :  { %1727 = vmatpush.msrb.mxu3 %v873_v26  ;;  %5027 = vmatmul.msk.f32.gmra.mxu0 %vm1084_vm1, %v5776_v28  ;;  %v706_v52 = vadd.f32 %v5674_v4, %v6132_v27  ;;  %v7577_v26 = vld [vmem:[#allocation8_spill] sm:$0xff]  ;;  %v709_v63 = vadd.f32 %v5736_v34, %v6132_v27 }
 0x157   :  { %5033 = vmatmul.msk.f32.gmra.mxu3 %vm1084_vm1, %v5776_v28  ;;  %1610 = vmatpush.msrb.mxu2 %v980_v51  ;;  %v6146_v3 = vadd.f32 %v7577_v26, %v5729_v30  ;;  %v1045_v51 = vmax.f32 %v821_v60, 0.0  ;;  %v989_v50 = vmax.f32 %v765_v54, 0.0  ;;  %v763_v60 = vadd.f32 %v7572_v58, %v6124_v13 }
 0x158   :  { %1679 = vmatpush.msra.mxu1 %v983_v31  ;;  %v986_v31 = vmax.f32 %v762_v29, 0.0  ;;  %v930_v39 = vmax.f32 %v706_v52, 0.0  ;;  %v933_v35 = vmax.f32 %v709_v63, 0.0  ;;  %v704_v54 = vadd.f32 %v5796_v59, %v6020_v41 }
 0x159   :  { %1611 = vmatpush.msrb.mxu2 %v924_v47  ;;  %v650_v47 = vadd.f32 %v5666_v0, %v6146_v3  ;;  %v648_v26 = vadd.f32 %v5763_v40, %v6038_v33  ;;  %v987_v41 = vmax.f32 %v763_v60, 0.0  ;;  %v766_v60 = vadd.f32 %v7568_v56, %v6124_v13 }
 0x15a   :  { %1680 = vmatpush.msra.mxu1 %v927_v23  ;;  %5023 = vmatmul.msk.f32.gmra.mxu2 %vm1084_vm1, %v5776_v28  ;;  %v819_v23 = vadd.f32 %v7571_v19, %v6118_v61  ;;  %v928_v45 = vmax.f32 %v704_v54, 0.0 }
 0x15b   :  { %1612 = vmatpush.msrb.mxu2 %v868_v49  ;;  %v653_v49 = vadd.f32 %v5708_v21, %v6146_v3  ;;  %v874_v5 = vmax.f32 %v650_v47, 0.0 }
 0x15c   :  { %1681 = vmatpush.msra.mxu1 %v871_v44  ;;  %v760_v44 = vadd.f32 %v5830_v53, %v6010_v10  ;;  %v1043_v29 = vmax.f32 %v819_v23, 0.0  ;;  %v707_v10 = vadd.f32 %v7573_v46, %v6132_v27  ;;  %v872_v23 = vmax.f32 %v648_v26, 0.0 }
 0x15d   :  { %5029 = vmatmul.msk.f32.gmra.mxu1 %vm1084_vm1, %v5776_v28 }
 0x15e   :  { %5034 = vmatmul.msk.f32.vlgmr.msrb.gmra.mxu0 %vm1084_vm1, %v5755_v32  ;;  %v984_v52 = vmax.f32 %v760_v44, 0.0  ;;  %v931_v47 = vmax.f32 %v707_v10, 0.0  ;;  %v710_v10 = vadd.f32 %v7569_v62, %v6132_v27 }
 0x15f   :  { %5040 = vmatmul.msk.f32.vlgmr.msra.gmra.mxu3 %vm1084_vm1, %v5755_v32  ;;  %1747 = vmatpush.msrb.mxu0 %v1042_v42  ;;  %v877_v42 = vmax.f32 %v653_v49, 0.0  ;;  %v7580_v49 = vld [vmem:[#allocation14_spill] sm:$0xff] }
 0x160   :  { %1816 = vmatpush.msra.mxu3 %v1045_v51  ;;  %v7578_v51 = vld [vmem:[#allocation19_spill] sm:$0xff] }
 0x161   :  { %1748 = vmatpush.msrb.mxu0 %v986_v31  ;;  %v6178_v63 = vadd.f32 %v7578_v51, %v5694_v14  ;;  %v651_v31 = vadd.f32 %v5684_v9, %v6146_v3  ;;  %v990_v51 = vmax.f32 %v766_v60, 0.0 }
 0x162   :  { %1817 = vmatpush.msra.mxu3 %v989_v50  ;;  %5030 = vmatmul.msk.f32.vlgmr.msra.gmra.mxu2 %vm1084_vm1, %v5755_v32  ;;  %v7579_v50 = vld [vmem:[#allocation16_spill] sm:$0xff] }
 0x163   :  { %1749 = vmatpush.msrb.mxu0 %v930_v39  ;;  %1701 = vmatpush.msra.mxu2 %v1040_v24  ;;  %v6188_v33 = vadd.f32 %v7579_v50, %v5706_v20  ;;  %v822_v39 = vadd.f32 %v5832_v48, %v6118_v61  ;;  %v875_v44 = vmax.f32 %v651_v31, 0.0  ;;  %v825_v24 = vadd.f32 %v5690_v12, %v6178_v63 }
 0x164   :  { %1818 = vmatpush.msra.mxu3 %v933_v35  ;;  %v6194_v35 = vadd.f32 %v7580_v49, %v5702_v18  ;;  %v823_v50 = vadd.f32 %v5858_v1, %v6118_v61  ;;  %v764_v49 = vadd.f32 %v5710_v22, %v6124_v13 }
 0x165   :  { %5036 = vmatmul.msk.f32.vlgmr.msrb.gmra.mxu1 %vm1084_vm1, %v5755_v32  ;;  %1750 = vmatpush.msrb.mxu0 %v874_v5  ;;  %v769_v5 = vadd.f32 %v5682_v8, %v6188_v33 }
 0x166   :  { %1770 = vmatpush.msrb.mxu1 %v1043_v29  ;;  %1819 = vmatpush.msra.mxu3 %v877_v42  ;;  %v7581_v29 = vld [vmem:[#allocation11_spill] sm:$0xff]  ;;  %v1046_v42 = vmax.f32 %v822_v39, 0.0  ;;  %v713_v26 = vadd.f32 %v5674_v4, %v6194_v35 }
 0x167   :  { %5035 = vmatmul.msk.f32.gmra.mxu0 %vm1084_vm1, %v5776_v28  ;;  %5041 = vmatmul.msk.f32.gmra.mxu3 %vm1084_vm1, %v5776_v28  ;;  %v6206_v54 = vadd.f32 %v7581_v29, %v5729_v30  ;;  %v993_v31 = vmax.f32 %v769_v5, 0.0  ;;  %v1047_v5 = vmax.f32 %v823_v50, 0.0  ;;  %v708_v29 = vadd.f32 %v5698_v16, %v6132_v27 }
 0x168   :  { %1702 = vmatpush.msra.mxu2 %v984_v52  ;;  %1771 = vmatpush.msrb.mxu1 %v987_v41  ;;  %v1049_v52 = vmax.f32 %v825_v24, 0.0  ;;  %v820_v41 = vadd.f32 %v5740_v37, %v6118_v61  ;;  %v937_v39 = vmax.f32 %v713_v26, 0.0  ;;  %v767_v24 = vadd.f32 %v5830_v53, %v6124_v13 }
 0x169   :  { %v652_v26 = vadd.f32 %v5688_v11, %v6146_v3 }
 0x16a   :  { %1703 = vmatpush.msra.mxu2 %v928_v45  ;;  %1772 = vmatpush.msrb.mxu1 %v931_v47  ;;  %v654_v45 = vadd.f32 %v7570_v6, %v6146_v3  ;;  %v934_v47 = vmax.f32 %v710_v10, 0.0  ;;  %v711_v10 = vadd.f32 %v5796_v59, %v6132_v27 }
 0x16b   :  { %5031 = vmatmul.msk.f32.gmra.mxu2 %vm1084_vm1, %v5776_v28  ;;  %v876_v50 = vmax.f32 %v652_v26, 0.0  ;;  %v658_v26 = vadd.f32 %v5684_v9, %v6206_v54 }
 0x16c   :  { %1704 = vmatpush.msra.mxu2 %v872_v23  ;;  %1773 = vmatpush.msrb.mxu1 %v875_v44  ;;  %v657_v23 = vadd.f32 %v5666_v0, %v6206_v54  ;;  %v1044_v44 = vmax.f32 %v820_v41, 0.0  ;;  %v878_v60 = vmax.f32 %v654_v45, 0.0  ;;  %v655_v41 = vadd.f32 %v5763_v40, %v6146_v3 }
 0x16d   :  { %5037 = vmatmul.msk.f32.gmra.mxu1 %vm1084_vm1, %v5776_v28  ;;  %v935_v45 = vmax.f32 %v711_v10, 0.0 }
 0x16f   :  { %5042 = vmatmul.msk.f32.vlgmr.msra.gmra.mxu0 %vm1084_vm1, %v5755_v32  ;;  %5048 = vmatmul.msk.f32.vlgmr.msrb.gmra.mxu3 %vm1084_vm1, %v5755_v32 }
 0x170   :  { %1839 = vmatpush.msra.mxu0 %v1046_v42  ;;  %1908 = vmatpush.msrb.mxu3 %v1049_v52  ;;  %v881_v42 = vmax.f32 %v657_v23, 0.0  ;;  %v988_v52 = vmax.f32 %v764_v49, 0.0  ;;  %v879_v23 = vmax.f32 %v655_v41, 0.0  ;;  %v4224_v49 = vld [vmem:[%s7505_s10 + $0x10] sm:$0xff]  ;;  %s5349_s10 = smov [#allocation5]  }
 0x171   :  { %4238 = vperm.xlu2 %5274, %v4224_v49  }
 0x172   :  { %1840 = vmatpush.msra.mxu0 %v990_v51  ;;  %1909 = vmatpush.msrb.mxu3 %v993_v31  ;;  %v991_v51 = vmax.f32 %v767_v24, 0.0  ;;  %v932_v31 = vmax.f32 %v708_v29, 0.0  ;;  %v773_v24 = vadd.f32 %v5742_v38, %v6188_v33 }
 0x173   :  { %5038 = vmatmul.msk.f32.vlgmr.msrb.gmra.mxu2 %vm1084_vm1, %v5755_v32 }
 0x174   :  { %1841 = vmatpush.msra.mxu0 %v934_v47  ;;  %1910 = vmatpush.msrb.mxu3 %v937_v39  ;;  %v826_v47 = vadd.f32 %v7571_v19, %v6178_v63  ;;  %v829_v39 = vadd.f32 %v5765_v2, %v6178_v63 }
 0x175   :  { %5044 = vmatmul.msk.f32.vlgmr.msra.gmra.mxu1 %vm1084_vm1, %v5755_v32  ;;  %1793 = vmatpush.msrb.mxu2 %v1044_v44  ;;  %v770_v44 = vadd.f32 %v7572_v58, %v6188_v33 }
 0x176   :  { %1842 = vmatpush.msra.mxu0 %v878_v60  ;;  %1862 = vmatpush.msra.mxu1 %v1047_v5  ;;  %v1050_v60 = vmax.f32 %v826_v47, 0.0  ;;  %v714_v5 = vadd.f32 %v7573_v46, %v6194_v35  ;;  %v1053_v29 = vmax.f32 %v829_v39, 0.0  ;;  %v6289_v39 = vld [vmem:[%s7564_s5] sm:$0xff] }
 0x177   :  { %1911 = vmatpush.msrb.mxu3 %v881_v42  ;;  %5043 = vmatmul.msk.f32.gmra.mxu0 %vm1084_vm1, %v5776_v28  ;;  %v717_v42 = vadd.f32 %v5718_v25, %v6194_v35  ;;  %v994_v10 = vmax.f32 %v770_v44, 0.0  ;;  %v6275_v41 = vpop.f32.mrf.mxu0  ;;  %v712_v44 = vadd.f32 %v5850_v57, %v6132_v27  ;;  %v6308_v27 = vld [vmem:[%s7564_s5 + $0x8] sm:$0xff] }
 0x178   :  { %5049 = vmatmul.msk.f32.gmra.mxu3 %vm1084_vm1, %v5776_v28  ;;  %1794 = vmatpush.msrb.mxu2 %v988_v52  ;;  %v824_v52 = vadd.f32 %v5924_v55, %v6118_v61  ;;  %v768_v61 = vadd.f32 %v5900_v43, %v6124_v13  ;;  %v882_v13 = vmax.f32 %v658_v26, 0.0 }
 0x179   :  { %1863 = vmatpush.msra.mxu1 %v991_v51  ;;  %v827_v51 = vadd.f32 %v5740_v37, %v6178_v63 }
 0x17a   :  { %1795 = vmatpush.msrb.mxu2 %v932_v31  ;;  %v938_v31 = vmax.f32 %v714_v5, 0.0  ;;  %v1048_v47 = vmax.f32 %v824_v52, 0.0  ;;  %v992_v5 = vmax.f32 %v768_v61, 0.0 }
 0x17b   :  { %1864 = vmatpush.msra.mxu1 %v935_v45  ;;  %5039 = vmatmul.msk.f32.gmra.mxu2 %vm1084_vm1, %v5776_v28  ;;  %v941_v45 = vmax.f32 %v717_v42, 0.0  ;;  %v1051_v49 = vmax.f32 %v827_v51, 0.0  ;;  %v7582_v42 = vld [vmem:[#allocation21_spill] sm:$0xff]  ;;  %v7584_v51 = vld [vmem:[#allocation18_spill] sm:$0xff] }
 0x17c   :  { %1796 = vmatpush.msrb.mxu2 %v876_v50  ;;  %v4313_v50 = vld [vmem:[%s7507_s12 + $0x8] sm:$0xff] }
 0x17d   :  { %1865 = vmatpush.msra.mxu1 %v879_v23  ;;  %v771_v23 = vadd.f32 %v5710_v22, %v6188_v33  ;;  %4321 = vperm.xlu2 %5274, %v4313_v50   ;;  %v6314_v26 = vpop.f32.mrf.mxu1  ;;  %v830_v50 = vadd.f32 %v5858_v1, %v6178_v63 }
 0x17e   :  { %5045 = vmatmul.msk.f32.gmra.mxu1 %vm1084_vm1, %v5776_v28  ;;  %v997_v28 = vmax.f32 %v773_v24, 0.0  ;;  %7583 = vst [vmem:[#allocation29_spill] sm:$0xff] %v6314_v26  ;;  %v775_v26 = vadd.f32 %v5900_v43, %v6188_v33 }
 0x17f   :  { %5050 = vmatmul.msk.f32.vlgmr.msrb.gmra.mxu0 %vm1084_vm1, %v5755_v32  ;;  %v995_v52 = vmax.f32 %v771_v23, 0.0  ;;  %v7585_v23 = vld [vmem:[#allocation15_spill] sm:$0xff] }
 0x180   :  { %5056 = vmatmul.msk.f32.vlgmr.msra.gmra.mxu3 %vm1084_vm1, %v5755_v32  ;;  %1931 = vmatpush.msrb.mxu0 %v1050_v60  ;;  %v661_v32 = vadd.f32 %v5700_v17, %v6206_v54  ;;  %v715_v60 = vadd.f32 %v5698_v16, %v6194_v35 }
 0x181   :  { %2000 = vmatpush.msra.mxu3 %v1053_v29  ;;  %v656_v29 = vadd.f32 %v5828_v7, %v6146_v3  ;;  %v936_v3 = vmax.f32 %v712_v44, 0.0 }
 0x182   :  { %1932 = vmatpush.msrb.mxu0 %v994_v10  ;;  %v885_v24 = vmax.f32 %v661_v32, 0.0  ;;  %v6303_v10 = vadd.f32 %v7582_v42, %v5694_v14  ;;  %v939_v32 = vmax.f32 %v715_v60, 0.0  ;;  %v774_v60 = vadd.f32 %v5830_v53, %v6188_v33 }
 0x183   :  { %2001 = vmatpush.msra.mxu3 %v997_v28  ;;  %5046 = vmatmul.msk.f32.vlgmr.msra.gmra.mxu2 %vm1084_vm1, %v6289_v39  ;;  %v659_v28 = vadd.f32 %v5688_v11, %v6206_v54  ;;  %v880_v61 = vmax.f32 %v656_v29, 0.0  ;;  %v7586_v29 = vld [vmem:[#allocation12_spill] sm:$0xff] }
 0x184   :  { %1933 = vmatpush.msrb.mxu0 %v938_v31  ;;  %1885 = vmatpush.msra.mxu2 %v1048_v47  ;;  %v6320_v31 = vadd.f32 %v7584_v51, %v5706_v20  ;;  %v6326_v47 = vpop.f32.mrf.mxu0  ;;  %v833_v44 = vadd.f32 %v7571_v19, %v6303_v10  ;;  %v6345_v42 = vadd.f32 %v7586_v29, %v5729_v30 }
 0x185   :  { %2002 = vmatpush.msra.mxu3 %v941_v45 }
 0x186   :  { %5052 = vmatmul.msk.f32.vlgmr.msrb.gmra.mxu1 %vm1084_vm1, %v6289_v39  ;;  %1934 = vmatpush.msrb.mxu0 %v882_v13  ;;  %v6330_v13 = vadd.f32 %v7585_v23, %v5702_v18  ;;  %v662_v23 = vadd.f32 %v5763_v40, %v6206_v54 }
 0x187   :  { %1954 = vmatpush.msrb.mxu1 %v1051_v49  ;;  %2003 = vmatpush.msra.mxu3 %v885_v24  ;;  %v883_v49 = vmax.f32 %v659_v28, 0.0  ;;  %v4532_v24 = vld [vmem:[%s7509_s14] sm:$0xff]  ;;  %v718_v28 = vadd.f32 %v5796_v59, %v6194_v35 }
 0x188   :  { %5051 = vmatmul.msk.f32.gmra.mxu0 %vm1084_vm1, %v6308_v27  ;;  %5057 = vmatmul.msk.f32.gmra.mxu3 %vm1084_vm1, %v6308_v27  ;;  %v721_v51 = vadd.f32 %v7573_v46, %v6330_v13 }
 0x189   :  { %1886 = vmatpush.msra.mxu2 %v992_v5  ;;  %1955 = vmatpush.msrb.mxu1 %v995_v52  ;;  %v777_v5 = vadd.f32 %v7572_v58, %v6320_v31  ;;  %v1054_v52 = vmax.f32 %v830_v50, 0.0  ;;  %v942_v29 = vmax.f32 %v718_v28, 0.0  ;;  %v886_v28 = vmax.f32 %v662_v23, 0.0 }
 0x18a   :  { %4536 = vperm.xlu2 %5274, %v4532_v24   ;;  %v999_v23 = vmax.f32 %v775_v26, 0.0 }
 0x18b   :  { %1887 = vmatpush.msra.mxu2 %v936_v3  ;;  %1956 = vmatpush.msrb.mxu1 %v939_v32  ;;  %v1057_v3 = vmax.f32 %v833_v44, 0.0  ;;  %v998_v32 = vmax.f32 %v774_v60, 0.0  ;;  %v1001_v50 = vmax.f32 %v777_v5, 0.0  ;;  %v6363_v44 = vpop.f32.mrf.mxu1  ;;  %v665_v60 = vadd.f32 %v5684_v9, %v6345_v42 }
 0x18c   :  { %v6322_v45 = vpop.f32.mrf.mxu3  ;;  %5047 = vmatmul.msk.f32.gmra.mxu2 %vm1084_vm1, %v6308_v27  ;;  %7587 = vst [vmem:[#allocation28_spill] sm:$0xff] %v6363_v44  ;;  %v772_v5 = vadd.f32 %v5761_v36, %v6188_v33  ;;  %v719_v33 = vadd.f32 %v5850_v57, %v6194_v35 }
 0x18d   :  { %1888 = vmatpush.msra.mxu2 %v880_v61  ;;  %1957 = vmatpush.msrb.mxu1 %v883_v49  ;;  %v828_v61 = vadd.f32 %v5794_v15, %v6178_v63  ;;  %v831_v49 = vadd.f32 %v5924_v55, %v6178_v63 }
 0x18e   :  { %5053 = vmatmul.msk.f32.gmra.mxu1 %vm1084_vm1, %v6308_v27 }
 0x18f   :  { %v1052_v63 = vmax.f32 %v828_v61, 0.0  ;;  %v889_v61 = vmax.f32 %v665_v60, 0.0 }
 0x190   :  { %5058 = vmatmul.msk.f32.vlgmr.msra.gmra.mxu0 %vm1084_vm1, %v6289_v39  ;;  %5064 = vmatmul.msk.f32.vlgmr.msrb.gmra.mxu3 %vm1084_vm1, %v6289_v39 }
 0x191   :  { %2023 = vmatpush.msra.mxu0 %v1054_v52  ;;  %2092 = vmatpush.msrb.mxu3 %v1057_v3  ;;  %v945_v52 = vmax.f32 %v721_v51, 0.0  ;;  %v4769_v3 = vld [vmem:[%s7511_s16 + $0x8] sm:$0xff]  ;;  %v1055_v51 = vmax.f32 %v831_v49, 0.0  ;;  %v663_v49 = vadd.f32 %v5828_v7, %v6206_v54 }
 0x192   :  { %4779 = vperm.xlu2 %5274, %v4769_v3  }
 0x193   :  { %2024 = vmatpush.msra.mxu0 %v998_v32  ;;  %2093 = vmatpush.msrb.mxu3 %v1001_v50  ;;  %v716_v32 = vadd.f32 %v5736_v34, %v6194_v35  ;;  %v996_v50 = vmax.f32 %v772_v5, 0.0  ;;  %v943_v35 = vmax.f32 %v719_v33, 0.0  ;;  %v834_v5 = vadd.f32 %v5740_v37, %v6303_v10  ;;  %v6413_v33 = vpop.f32.mrf.mxu2 }
 0x194   :  { %v6365_v24 = vpop.f32.mrf.mxu3  ;;  %5054 = vmatmul.msk.f32.vlgmr.msrb.gmra.mxu2 %vm1084_vm1, %v6289_v39  ;;  %v887_v26 = vmax.f32 %v663_v49, 0.0  ;;  %7591 = vst [vmem:[#allocation23_spill] sm:$0xff] %v6413_v33  ;;  %v725_v49 = vadd.f32 %v7569_v62, %v6330_v13  ;;  %v779_v33 = vadd.f32 %v5761_v36, %v6320_v31 }
 0x195   :  { %2025 = vmatpush.msra.mxu0 %v942_v29  ;;  %2094 = vmatpush.msrb.mxu3 %v945_v52  ;;  %v660_v29 = vadd.f32 %v5708_v21, %v6206_v54  ;;  %v940_v60 = vmax.f32 %v716_v32, 0.0  ;;  %v837_v54 = vadd.f32 %v5832_v48, %v6303_v10  ;;  %v781_v32 = vadd.f32 %v7568_v56, %v6320_v31 }
 0x196   :  { %5060 = vmatmul.msk.f32.vlgmr.msra.gmra.mxu1 %vm1084_vm1, %v6289_v39  ;;  %1977 = vmatpush.msrb.mxu2 %v1052_v63 }
 0x197   :  { %v6376_v44 = vpop.f32.mrf.mxu0  ;;  %2026 = vmatpush.msra.mxu0 %v886_v28  ;;  %2046 = vmatpush.msra.mxu1 %v1055_v51  ;;  %v884_v52 = vmax.f32 %v660_v29, 0.0  ;;  %v4839_v28 = vld [vmem:[%s7513_s18] sm:$0xff]  ;;  %v778_v51 = vadd.f32 %v5710_v22, %v6320_v31  ;;  %v722_v29 = vadd.f32 %v5698_v16, %v6330_v13 }
 0x198   :  { %7588 = vst [vmem:[#allocation27_spill] sm:$0xff] %v6376_v44  ;;  %2095 = vmatpush.msrb.mxu3 %v889_v61  ;;  %5059 = vmatmul.msk.f32.gmra.mxu0 %vm1084_vm1, %v6308_v27 }
 0x199   :  { %5065 = vmatmul.msk.f32.gmra.mxu3 %vm1084_vm1, %v6308_v27  ;;  %1978 = vmatpush.msrb.mxu2 %v996_v50  ;;  %v1058_v50 = vmax.f32 %v834_v5, 0.0  ;;  %v666_v5 = vadd.f32 %v5688_v11, %v6345_v42 }
 0x19a   :  { %2047 = vmatpush.msra.mxu1 %v999_v23  ;;  %4843 = vperm.xlu2 %5274, %v4839_v28   ;;  %v1061_v23 = vmax.f32 %v837_v54, 0.0  ;;  %v946_v54 = vmax.f32 %v722_v29, 0.0  ;;  %v669_v28 = vadd.f32 %v7570_v6, %v6345_v42 }
 0x19b   :  { %1979 = vmatpush.msrb.mxu2 %v940_v60  ;;  %v1002_v60 = vmax.f32 %v778_v51, 0.0  ;;  %v949_v51 = vmax.f32 %v725_v49, 0.0  ;;  %v890_v29 = vmax.f32 %v666_v5, 0.0  ;;  %v664_v5 = vadd.f32 %v5666_v0, %v6345_v42 }
 0x19c   :  { %2048 = vmatpush.msra.mxu1 %v943_v35  ;;  %5055 = vmatmul.msk.f32.gmra.mxu2 %vm1084_vm1, %v6308_v27  ;;  %v832_v35 = vadd.f32 %v5690_v12, %v6303_v10  ;;  %v893_v49 = vmax.f32 %v669_v28, 0.0 }
 0x19d   :  { %1980 = vmatpush.msrb.mxu2 %v884_v52  ;;  %v1005_v52 = vmax.f32 %v781_v32, 0.0  ;;  %v776_v32 = vadd.f32 %v5682_v8, %v6320_v31 }
 0x19e   :  { %v6396_v3 = vpop.f32.mrf.mxu1  ;;  %v6398_v63 = vpop.f32.mrf.mxu3  ;;  %2049 = vmatpush.msra.mxu1 %v887_v26  ;;  %v835_v26 = vadd.f32 %v5794_v15, %v6303_v10 }
 0x19f   :  { %7589 = vst [vmem:[#allocation26_spill] sm:$0xff] %v6396_v3  ;;  %5061 = vmatmul.msk.f32.gmra.mxu1 %vm1084_vm1, %v6308_v27 }
 0x1a0   :  { %7590 = vst [vmem:[#allocation25_spill] sm:$0xff] %v6398_v63  ;;  %5066 = vmatmul.msk.f32.vlgmr.msrb.gmra.mxu0 %vm1084_vm1, %v6289_v39 }
 0x1a1   :  { %v6411_v61 = vpop.f32.mrf.mxu0  ;;  %5072 = vmatmul.msk.f32.vlgmr.msra.gmra.mxu3 %vm1084_vm1, %v6289_v39  ;;  %2115 = vmatpush.msrb.mxu0 %v1058_v50 }
 0x1a2   :  { %2184 = vmatpush.msra.mxu3 %v1061_v23  ;;  %v1056_v23 = vmax.f32 %v832_v35, 0.0  ;;  %v723_v35 = vadd.f32 %v5736_v34, %v6330_v13 }
 0x1a3   :  { %2116 = vmatpush.msrb.mxu0 %v1002_v60  ;;  %v1059_v60 = vmax.f32 %v835_v26, 0.0  ;;  %v6453_v26 = vpop.f32.mrf.mxu2 }
 0x1a4   :  { %2185 = vmatpush.msra.mxu3 %v1005_v52  ;;  %5062 = vmatmul.msk.f32.vlgmr.msra.gmra.mxu2 %vm1084_vm1, %v6289_v39  ;;  %v1000_v52 = vmax.f32 %v776_v32, 0.0  ;;  %7594 = vst [vmem:[#allocation9_spill] sm:$0xff] %v6453_v26  ;;  %v7595_v32 = vld [vmem:[#allocation24_spill] sm:$0xff]  ;;  %v7596_v26 = vld [vmem:[#allocation22_spill] sm:$0xff] }
 0x1a5   :  { %2117 = vmatpush.msrb.mxu0 %v946_v54  ;;  %2069 = vmatpush.msra.mxu2 %v1056_v23  ;;  %v1003_v54 = vmax.f32 %v779_v33, 0.0  ;;  %v6463_v23 = vadd.f32 %v7595_v32, %v5694_v14  ;;  %v6473_v44 = vadd.f32 %v7596_v26, %v5706_v20 }
 0x1a6   :  { %v6433_v3 = vpop.f32.mrf.mxu1  ;;  %v6435_v50 = vpop.f32.mrf.mxu3  ;;  %2186 = vmatpush.msra.mxu3 %v949_v51  ;;  %v667_v51 = vadd.f32 %v5708_v21, %v6345_v42 }
 0x1a7   :  { %7592 = vst [vmem:[#allocation13_spill] sm:$0xff] %v6433_v3  ;;  %v720_v3 = vadd.f32 %v5674_v4, %v6330_v13  ;;  %5068 = vmatmul.msk.f32.vlgmr.msrb.gmra.mxu1 %vm1084_vm1, %v6289_v39  ;;  %2118 = vmatpush.msrb.mxu0 %v890_v29  ;;  %v947_v29 = vmax.f32 %v723_v35, 0.0  ;;  %v841_v14 = vadd.f32 %v5740_v37, %v6463_v23 }
 0x1a8   :  { %2138 = vmatpush.msrb.mxu1 %v1059_v60  ;;  %2187 = vmatpush.msra.mxu3 %v893_v49  ;;  %v888_v60 = vmax.f32 %v664_v5, 0.0  ;;  %v838_v49 = vadd.f32 %v5924_v55, %v6303_v10  ;;  %v782_v35 = vadd.f32 %v5900_v43, %v6320_v31  ;;  %v785_v20 = vadd.f32 %v5710_v22, %v6473_v44 }
 0x1a9   :  { %v6445_v63 = vpop.f32.mrf.mxu0  ;;  %5067 = vmatmul.msk.f32.gmra.mxu0 %vm1084_vm1, %v6308_v27  ;;  %5073 = vmatmul.msk.f32.gmra.mxu3 %vm1084_vm1, %v6308_v27  ;;  %v944_v28 = vmax.f32 %v720_v3, 0.0  ;;  %v891_v3 = vmax.f32 %v667_v51, 0.0  ;;  %v726_v43 = vadd.f32 %v5850_v57, %v6330_v13 }
 0x1aa   :  { %7593 = vst [vmem:[#allocation10_spill] sm:$0xff] %v6445_v63  ;;  %2070 = vmatpush.msra.mxu2 %v1000_v52  ;;  %2139 = vmatpush.msrb.mxu1 %v1003_v54  ;;  %v7597_v52 = vld [vmem:[#allocation20_spill] sm:$0xff]  ;;  %v1062_v37 = vmax.f32 %v838_v49, 0.0  ;;  %v7598_v54 = vld [vmem:[#allocation17_spill] sm:$0xff]  ;;  %v1006_v22 = vmax.f32 %v782_v35, 0.0  ;;  %v1009_v32 = vmax.f32 %v785_v20, 0.0 }
 0x1ab   :  { %v6481_v55 = vadd.f32 %v7597_v52, %v5702_v18  ;;  %v1065_v18 = vmax.f32 %v841_v14, 0.0  ;;  %v6499_v51 = vadd.f32 %v7598_v54, %v5729_v30  ;;  %v950_v30 = vmax.f32 %v726_v43, 0.0 }
 0x1ac   :  { %2071 = vmatpush.msra.mxu2 %v944_v28  ;;  %2140 = vmatpush.msrb.mxu1 %v947_v29  ;;  %v836_v28 = vadd.f32 %v5765_v2, %v6303_v10  ;;  %v670_v29 = vadd.f32 %v5828_v7, %v6345_v42  ;;  %v780_v10 = vadd.f32 %v5742_v38, %v6320_v31 }
 0x1ad   :  { %5063 = vmatmul.msk.f32.gmra.mxu2 %vm1084_vm1, %v6308_v27  ;;  %v729_v26 = vadd.f32 %v5698_v16, %v6481_v55  ;;  %v839_v16 = vadd.f32 %v5690_v12, %v6463_v23  ;;  %v783_v7 = vadd.f32 %v5682_v8, %v6473_v44  ;;  %v724_v52 = vadd.f32 %v5718_v25, %v6330_v13 }
 0x1ae   :  { %v6469_v63 = vpop.f32.mrf.mxu3  ;;  %2072 = vmatpush.msra.mxu2 %v888_v60  ;;  %2141 = vmatpush.msrb.mxu1 %v891_v3  ;;  %v673_v60 = vadd.f32 %v5688_v11, %v6499_v51  ;;  %v1060_v14 = vmax.f32 %v836_v28, 0.0  ;;  %v894_v12 = vmax.f32 %v670_v29, 0.0  ;;  %v727_v8 = vadd.f32 %v5674_v4, %v6481_v55 }
 0x1af   :  { %v6467_v33 = vpop.f32.mrf.mxu1  ;;  %5069 = vmatmul.msk.f32.gmra.mxu1 %vm1084_vm1, %v6308_v27  ;;  %v953_v49 = vmax.f32 %v729_v26, 0.0  ;;  %v1063_v11 = vmax.f32 %v839_v16, 0.0  ;;  %v668_v43 = vadd.f32 %v5700_v17, %v6345_v42  ;;  %v1007_v13 = vmax.f32 %v783_v7, 0.0  ;;  %v6571_v7 = vpop.permute.xlu2 %1081 }
 0x1b0   :  { %v897_v31 = vmax.f32 %v673_v60, 0.0  ;;  %v948_v26 = vmax.f32 %v724_v52, 0.0  ;;  %v951_v54 = vmax.f32 %v727_v8, 0.0  ;;  %v842_v42 = vadd.f32 %v5794_v15, %v6463_v23 }
 0x1b1   :  { %5074 = vmatmul.msk.f32.vlgmr.msra.gmra.mxu0 %vm1084_vm1, %v6289_v39  ;;  %5080 = vmatmul.msk.f32.vlgmr.msrb.gmra.mxu3 %vm1084_vm1, %v6289_v39  ;;  %v786_v16 = vadd.f32 %v5761_v36, %v6473_v44  ;;  %v789_v15 = vadd.f32 %v5830_v53, %v6473_v44  ;;  %v730_v60 = vadd.f32 %v5736_v34, %v6481_v55 }
 0x1b2   :  { %v6487_v5 = vpop.f32.mrf.mxu0  ;;  %2207 = vmatpush.msra.mxu0 %v1062_v37  ;;  %2276 = vmatpush.msrb.mxu3 %v1065_v18  ;;  %v1004_v37 = vmax.f32 %v780_v10, 0.0  ;;  %v671_v18 = vadd.f32 %v5666_v0, %v6499_v51  ;;  %v840_v10 = vadd.f32 %v7571_v19, %v6463_v23  ;;  %v677_v52 = vadd.f32 %v5763_v40, %v6499_v51 }
 0x1b3   :  { %v1010_v53 = vmax.f32 %v786_v16, 0.0  ;;  %v1013_v34 = vmax.f32 %v789_v15, 0.0  ;;  %v784_v19 = vadd.f32 %v7572_v58, %v6473_v44  ;;  %v731_v58 = vadd.f32 %v5718_v25, %v6481_v55 }
 0x1b4   :  { %2208 = vmatpush.msra.mxu0 %v1006_v22  ;;  %2277 = vmatpush.msrb.mxu3 %v1009_v32  ;;  %v892_v22 = vmax.f32 %v668_v43, 0.0  ;;  %v895_v28 = vmax.f32 %v671_v18, 0.0  ;;  %v845_v32 = vadd.f32 %v5858_v1, %v6463_v23  ;;  %v1066_v1 = vmax.f32 %v842_v42, 0.0 }
 0x1b5   :  { %v6505_v57 = vpop.f32.mrf.mxu2  ;;  %5070 = vmatmul.msk.f32.vlgmr.msrb.gmra.mxu2 %vm1084_vm1, %v6289_v39  ;;  %v1064_v8 = vmax.f32 %v840_v10, 0.0  ;;  %v1112_v16 = vadd.f32 %v6326_v47, %v6571_v7  ;;  %v844_v10 = vadd.f32 %v5832_v48, %v6463_v23 }
 0x1b6   :  { %2209 = vmatpush.msra.mxu0 %v950_v30  ;;  %2278 = vmatpush.msrb.mxu3 %v953_v49  ;;  %v1069_v36 = vmax.f32 %v845_v32, 0.0  ;;  %v733_v49 = vadd.f32 %v5796_v59, %v6481_v55  ;;  %v843_v59 = vadd.f32 %v5765_v2, %v6463_v23 }
 0x1b7   :  { %5076 = vmatmul.msk.f32.vlgmr.msra.gmra.mxu1 %vm1084_vm1, %v6289_v39  ;;  %2161 = vmatpush.msrb.mxu2 %v1060_v14  ;;  %v6607_v32 = vpop.permute.xlu2 %1076 }
 0x1b8   :  { %v6515_v3 = vpop.f32.mrf.mxu1  ;;  %2210 = vmatpush.msra.mxu0 %v894_v12  ;;  %2230 = vmatpush.msra.mxu1 %v1063_v11  ;;  %v674_v12 = vadd.f32 %v5708_v21, %v6499_v51  ;;  %v954_v11 = vmax.f32 %v730_v60, 0.0  ;;  %v1067_v40 = vmax.f32 %v843_v59, 0.0  ;;  %v1178_v47 = vadd.f32 %v6322_v45, %v6607_v32 }
 0x1b9   :  { %v6519_v35 = vpop.f32.mrf.mxu3  ;;  %2279 = vmatpush.msrb.mxu3 %v897_v31  ;;  %5075 = vmatmul.msk.f32.gmra.mxu0 %vm1084_vm1, %v6308_v27  ;;  %v957_v31 = vmax.f32 %v733_v49, 0.0 }
 0x1ba   :  { %v6525_v20 = vpop.f32.mrf.mxu0  ;;  %5081 = vmatmul.msk.f32.gmra.mxu3 %vm1084_vm1, %v6308_v27  ;;  %2162 = vmatpush.msrb.mxu2 %v1004_v37  ;;  %v787_v37 = vadd.f32 %v5742_v38, %v6473_v44  ;;  %v898_v2 = vmax.f32 %v674_v12, 0.0  ;;  %v901_v38 = vmax.f32 %v677_v52, 0.0  ;;  %v2382_v45 = vmax.f32 %v1178_v47, 0.0  ;;  %v7599_v12 = vld [vmem:[#allocation28_spill] sm:$0xff]  ;;  %v7600_v52 = vld [vmem:[#allocation29_spill] sm:$0xff] }
 0x1bb   :  { %2231 = vmatpush.msra.mxu1 %v1007_v13  ;;  %v728_v13 = vadd.f32 %v7573_v46, %v6481_v55  ;;  %v1135_v59 = vadd.f32 %v7599_v12, %v6571_v7 }
 0x1bc   :  { %2163 = vmatpush.msrb.mxu2 %v948_v26  ;;  %v1008_v26 = vmax.f32 %v784_v19, 0.0  ;;  %v1011_v46 = vmax.f32 %v787_v37, 0.0  ;;  %v1068_v19 = vmax.f32 %v844_v10, 0.0 }
 0x1bd   :  { %v6539_v4 = vpop.f32.mrf.mxu2  ;;  %2232 = vmatpush.msra.mxu1 %v951_v54  ;;  %5071 = vmatmul.msk.f32.gmra.mxu2 %vm1084_vm1, %v6308_v27  ;;  %v672_v54 = vadd.f32 %v5684_v9, %v6499_v51  ;;  %v952_v42 = vmax.f32 %v728_v13, 0.0  ;;  %v2436_v37 = vmax.f32 %v1135_v59, 0.0  ;;  %v1204_v13 = vadd.f32 %v6411_v61, %v6571_v7 }
 0x1be   :  { %2164 = vmatpush.msrb.mxu2 %v892_v22  ;;  %v675_v22 = vadd.f32 %v5700_v17, %v6499_v51  ;;  %v1181_v17 = vadd.f32 %v6365_v24, %v6571_v7  ;;  %v2435_v24 = vmax.f32 %v1112_v16, 0.0 }
 0x1bf   :  { %2233 = vmatpush.msra.mxu1 %v895_v28  ;;  %v955_v28 = vmax.f32 %v731_v58, 0.0  ;;  %v896_v9 = vmax.f32 %v672_v54, 0.0  ;;  %v2439_v61 = vmax.f32 %v1204_v13, 0.0  ;;  %v1362_v13 = vadd.f32 %v6469_v63, %v6607_v32 }
 0x1c0   :  { %v6545_v0 = vpop.f32.mrf.mxu1  ;;  %5077 = vmatmul.msk.f32.gmra.mxu1 %vm1084_vm1, %v6308_v27  ;;  %v899_v15 = vmax.f32 %v675_v22, 0.0  ;;  %v1250_v63 = vadd.f32 %v6539_v4, %v6571_v7 }
 0x1c1   :  { %v6547_v29 = vpop.f32.mrf.mxu3  ;;  %5082 = vmatmul.msk.f32.vlgmr.msrb.gmra.mxu0 %vm1084_vm1, %v6289_v39 }
 0x1c2   :  { %5088 = vmatmul.msk.f32.vlgmr.msra.gmra.mxu3 %vm1084_vm1, %v6289_v39  ;;  %2299 = vmatpush.msrb.mxu0 %v1066_v1 }
 0x1c3   :  { %v6555_v30 = vpop.f32.mrf.mxu0  ;;  %2368 = vmatpush.msra.mxu3 %v1069_v36  ;;  %v1109_v36 = vadd.f32 %v6275_v41, %v6607_v32 }
 0x1c4   :  { %2300 = vmatpush.msrb.mxu0 %v1010_v53  ;;  %v2438_v53 = vmax.f32 %v1181_v17, 0.0  ;;  %v1388_v4 = vadd.f32 %v6555_v30, %v6571_v7 }
 0x1c5   :  { %v6569_v14 = vpop.f32.mrf.mxu2  ;;  %2369 = vmatpush.msra.mxu3 %v1013_v34  ;;  %5078 = vmatmul.msk.f32.vlgmr.msra.gmra.mxu2 %vm1084_vm1, %v6289_v39  ;;  %v2379_v41 = vmax.f32 %v1109_v36, 0.0 }
 0x1c6   :  { %2301 = vmatpush.msrb.mxu0 %v954_v11  ;;  %2253 = vmatpush.msra.mxu2 %v1064_v8  ;;  %v788_v11 = vadd.f32 %v7568_v56, %v6473_v44  ;;  %v732_v8 = vadd.f32 %v7569_v62, %v6481_v55  ;;  %v676_v44 = vadd.f32 %v7570_v6, %v6499_v51  ;;  %v7601_v51 = vld [vmem:[#allocation27_spill] sm:$0xff] }
 0x1c7   :  { %2370 = vmatpush.msra.mxu3 %v957_v31  ;;  %v1132_v31 = vadd.f32 %v7600_v52, %v6607_v32  ;;  %v1273_v6 = vadd.f32 %v6435_v50, %v6571_v7  ;;  %v1201_v58 = vadd.f32 %v7601_v51, %v6607_v32 }
 0x1c8   :  { %5084 = vmatmul.msk.f32.vlgmr.msrb.gmra.mxu1 %vm1084_vm1, %v6289_v39  ;;  %2302 = vmatpush.msrb.mxu0 %v898_v2  ;;  %v1012_v56 = vmax.f32 %v788_v11, 0.0  ;;  %v956_v55 = vmax.f32 %v732_v8, 0.0  ;;  %v1296_v8 = vadd.f32 %v6487_v5, %v6571_v7 }
 0x1c9   :  { %v6583_v43 = vpop.f32.mrf.mxu1  ;;  %v6585_v21 = vpop.f32.mrf.mxu3  ;;  %2322 = vmatpush.msrb.mxu1 %v1067_v40  ;;  %2371 = vmatpush.msra.mxu3 %v901_v38  ;;  %v2380_v62 = vmax.f32 %v1132_v31, 0.0  ;;  %v900_v38 = vmax.f32 %v676_v44, 0.0  ;;  %v2442_v50 = vmax.f32 %v1273_v6, 0.0  ;;  %v2383_v16 = vmax.f32 %v1201_v58, 0.0  ;;  %v7607_v44 = vld [vmem:[#allocation10_spill] sm:$0xff] }
 0x1ca   :  { %5083 = vmatmul.msk.f32.gmra.mxu0 %vm1084_vm1, %v6308_v27  ;;  %5089 = vmatmul.msk.f32.gmra.mxu3 %vm1084_vm1, %v6308_v27  ;;  %v2443_v6 = vmax.f32 %v1296_v8, 0.0 }
 0x1cb   :  { %v6591_v18 = vpop.f32.mrf.mxu0  ;;  %2254 = vmatpush.msra.mxu2 %v1008_v26  ;;  %2323 = vmatpush.msrb.mxu1 %v1011_v46  ;;  %v7602_v46 = vld [vmem:[#allocation25_spill] sm:$0xff] }
 0x1cc   :  { %v1270_v22 = vadd.f32 %v7602_v46, %v6607_v32  ;;  %v2390_v46 = vmax.f32 %v1362_v13, 0.0 }
 0x1cd   :  { %v6605_v25 = vpop.f32.mrf.mxu2  ;;  %2255 = vmatpush.msra.mxu2 %v952_v42  ;;  %2324 = vmatpush.msrb.mxu1 %v955_v28  ;;  %v7603_v28 = vld [vmem:[#allocation9_spill] sm:$0xff] }
 0x1ce   :  { %5079 = vmatmul.msk.f32.gmra.mxu2 %vm1084_vm1, %v6308_v27  ;;  %v2386_v36 = vmax.f32 %v1270_v22, 0.0  ;;  %v1319_v22 = vadd.f32 %v6515_v3, %v6571_v7  ;;  %v1385_v3 = vadd.f32 %v6525_v20, %v6607_v32 }
 0x1cf   :  { %2256 = vmatpush.msra.mxu2 %v896_v9  ;;  %2325 = vmatpush.msrb.mxu1 %v899_v15  ;;  %v1158_v9 = vadd.f32 %v7603_v28, %v6571_v7  ;;  %v7604_v15 = vld [vmem:[#allocation13_spill] sm:$0xff]  ;;  %v1316_v28 = vadd.f32 %v6467_v33, %v6607_v32 }
 0x1d0   :  { %5085 = vmatmul.msk.f32.gmra.mxu1 %vm1084_vm1, %v6308_v27  ;;  %v1227_v17 = vadd.f32 %v7604_v15, %v6571_v7  ;;  %v2444_v15 = vmax.f32 %v1319_v22, 0.0 }
 0x1d1   :  { %v6613_v1 = vpop.f32.mrf.mxu1  ;;  %v6615_v60 = vpop.f32.mrf.mxu3 }
 0x1d2   :  { %5090 = vmatmul.msk.f32.vlgmr.msra.gmra.mxu0 %vm1084_vm1, %v6289_v39  ;;  %5096 = vmatmul.msk.f32.vlgmr.msrb.gmra.mxu3 %vm1084_vm1, %v6289_v39  ;;  %v2440_v12 = vmax.f32 %v1227_v17, 0.0  ;;  %v1454_v17 = vadd.f32 %v6547_v29, %v6607_v32  ;;  %v2391_v29 = vmax.f32 %v1385_v3, 0.0 }
 0x1d3   :  { %v6623_v49 = vpop.f32.mrf.mxu0  ;;  %2515 = vmatpush.msra.mxu0 %v2435_v24  ;;  %2575 = vmatpush.msrb.mxu3 %v2438_v53  ;;  %v7605_v24 = vld [vmem:[#allocation23_spill] sm:$0xff] }
 0x1d4   :  { %v1155_v53 = vadd.f32 %v7605_v24, %v6607_v32  ;;  %v1411_v24 = vadd.f32 %v6583_v43, %v6571_v7 }
 0x1d5   :  { %v6633_v34 = vpop.f32.mrf.mxu2  ;;  %2516 = vmatpush.msra.mxu0 %v2379_v41  ;;  %2576 = vmatpush.msrb.mxu3 %v2382_v45  ;;  %v7606_v41 = vld [vmem:[#allocation26_spill] sm:$0xff]  ;;  %v2437_v45 = vmax.f32 %v1158_v9, 0.0  ;;  %v2441_v9 = vmax.f32 %v1250_v63, 0.0 }
 0x1d6   :  { %5086 = vmatmul.msk.f32.vlgmr.msrb.gmra.mxu2 %vm1084_vm1, %v6289_v39  ;;  %v1224_v10 = vadd.f32 %v7606_v41, %v6607_v32  ;;  %v2381_v52 = vmax.f32 %v1155_v53, 0.0  ;;  %v2394_v53 = vmax.f32 %v1454_v17, 0.0  ;;  %v1480_v41 = vadd.f32 %v6623_v49, %v6571_v7 }
 0x1d7   :  { %2345 = vmatpush.msrb.mxu2 %v1068_v19  ;;  %v2448_v43 = vmax.f32 %v1411_v24, 0.0 }
 0x1d8   :  { %5092 = vmatmul.msk.f32.vlgmr.msra.gmra.mxu1 %vm1084_vm1, %v6289_v39  ;;  %v2384_v19 = vmax.f32 %v1224_v10, 0.0  ;;  %v1408_v10 = vadd.f32 %v6545_v0, %v6607_v32  ;;  %v2451_v49 = vmax.f32 %v1480_v41, 0.0 }
 0x1d9   :  { %2535 = vmatpush.msra.mxu1 %v2436_v37  ;;  %2346 = vmatpush.msrb.mxu2 %v1012_v56  ;;  %v1365_v56 = vadd.f32 %v6519_v35, %v6571_v7 }
 0x1da   :  { %v6643_v48 = vpop.f32.mrf.mxu1  ;;  %v6645_v23 = vpop.f32.mrf.mxu3  ;;  %5091 = vmatmul.msk.f32.gmra.mxu0 %vm1084_vm1, %v6308_v27  ;;  %5097 = vmatmul.msk.f32.gmra.mxu3 %vm1084_vm1, %v6308_v27  ;;  %v2392_v8 = vmax.f32 %v1408_v10, 0.0 }
 0x1db   :  { %v6649_v2 = vpop.f32.mrf.mxu0  ;;  %2536 = vmatpush.msra.mxu1 %v2380_v62  ;;  %2347 = vmatpush.msrb.mxu2 %v956_v55  ;;  %v1293_v62 = vadd.f32 %v7607_v44, %v6607_v32  ;;  %v6718_v55 = vld [vmem:[%s7501_s6] sm:$0xff]  ;;  %v2446_v35 = vmax.f32 %v1365_v56, 0.0 }
 0x1dd   :  { %v6659_v40 = vpop.f32.mrf.mxu2  ;;  %2348 = vmatpush.msrb.mxu2 %v900_v38  ;;  %v2387_v58 = vmax.f32 %v1293_v62, 0.0  ;;  %v1503_v62 = vadd.f32 %v6643_v48, %v6571_v7 }
 0x1de   :  { %5087 = vmatmul.msk.f32.gmra.mxu2 %vm1084_vm1, %v6308_v27 }
 0x1df   :  { %v2452_v48 = vmax.f32 %v1503_v62, 0.0 }
 0x1e0   :  { %5093 = vmatmul.msk.f32.gmra.mxu1 %vm1084_vm1, %v6308_v27 }
 0x1e2   :  { %v6667_v26 = vpop.f32.mrf.mxu1  ;;  %v6669_v54 = vpop.f32.mrf.mxu3  ;;  %5098 = vmatmul.msk.f32.vlgmr.msrb.gmra.mxu0 %vm1084_vm1, %v6289_v39  ;;  %5104 = vmatmul.msk.f32.vlgmr.msra.gmra.mxu3 %vm1084_vm1, %v6289_v39 }
 0x1e3   :  { %2595 = vmatpush.msrb.mxu0 %v2439_v61  ;;  %2655 = vmatpush.msra.mxu3 %v2442_v50  ;;  %v1247_v61 = vadd.f32 %v6505_v57, %v6607_v32 }
 0x1e4   :  { %v6677_v42 = vpop.f32.mrf.mxu0 }
 0x1e5   :  { %v6687_v47 = vpop.f32.mrf.mxu2  ;;  %2596 = vmatpush.msrb.mxu0 %v2383_v16  ;;  %2656 = vmatpush.msra.mxu3 %v2386_v36  ;;  %v1457_v16 = vadd.f32 %v6585_v21, %v6571_v7  ;;  %v2385_v57 = vmax.f32 %v1247_v61, 0.0  ;;  %v2388_v21 = vmax.f32 %v1316_v28, 0.0  ;;  %v2447_v36 = vmax.f32 %v1388_v4, 0.0 }
 0x1e6   :  { %5094 = vmatmul.msk.f32.vlgmr.msra.gmra.mxu2 %vm1084_vm1, %v6289_v39  ;;  %v1572_v13 = vadd.f32 %v6677_v42, %v6571_v7  ;;  %v1569_v42 = vadd.f32 %v6649_v2, %v6607_v32  ;;  %v1434_v28 = vadd.f32 %v6659_v40, %v6571_v7  ;;  %v1523_v10 = vadd.f32 %v6687_v47, %v6607_v32 }
 0x1e7   :  { %2555 = vmatpush.msra.mxu2 %v2437_v45  ;;  %v1549_v45 = vadd.f32 %v6645_v23, %v6571_v7 }
 0x1e8   :  { %5100 = vmatmul.msk.f32.vlgmr.msrb.gmra.mxu1 %vm1084_vm1, %v6289_v39  ;;  %v2399_v4 = vmax.f32 %v1569_v42, 0.0  ;;  %v2449_v17 = vmax.f32 %v1434_v28, 0.0  ;;  %v2397_v47 = vmax.f32 %v1523_v10, 0.0 }
 0x1e9   :  { %2615 = vmatpush.msrb.mxu1 %v2440_v12  ;;  %2556 = vmatpush.msra.mxu2 %v2381_v52  ;;  %v1477_v52 = vadd.f32 %v6591_v18, %v6607_v32  ;;  %v2454_v56 = vmax.f32 %v1549_v45, 0.0 }
 0x1ea   :  { %v6695_v59 = vpop.f32.mrf.mxu1  ;;  %v6697_v11 = vpop.f32.mrf.mxu3  ;;  %5099 = vmatmul.msk.f32.gmra.mxu0 %vm1084_vm1, %v6308_v27  ;;  %5105 = vmatmul.msk.f32.gmra.mxu3 %vm1084_vm1, %v6308_v27 }
 0x1eb   :  { %2616 = vmatpush.msrb.mxu1 %v2384_v19  ;;  %v1546_v19 = vadd.f32 %v6615_v60, %v6607_v32  ;;  %v2395_v18 = vmax.f32 %v1477_v52, 0.0  ;;  %v1342_v60 = vadd.f32 %v6605_v25, %v6571_v7  ;;  %v1641_v25 = vadd.f32 %v6697_v11, %v6571_v7 }
 0x1ec   :  { %v6701_v31 = vpop.f32.mrf.mxu0  ;;  %v1638_v11 = vadd.f32 %v6669_v54, %v6607_v32 }
 0x1ed   :  { %v2398_v44 = vmax.f32 %v1546_v19, 0.0  ;;  %v2445_v63 = vmax.f32 %v1342_v60, 0.0  ;;  %v2458_v22 = vmax.f32 %v1641_v25, 0.0 }
 0x1ee   :  { %v6709_v37 = vpop.f32.mrf.mxu2  ;;  %5095 = vmatmul.msk.f32.gmra.mxu2 %vm1084_vm1, %v6308_v27  ;;  %v2402_v3 = vmax.f32 %v1638_v11, 0.0 }
 0x1f0   :  { %5101 = vmatmul.msk.f32.gmra.mxu1 %vm1084_vm1, %v6308_v27 }
 0x1f2   :  { %v6724_v5 = vpop.f32.mrf.mxu1  ;;  %v6726_v38 = vpop.f32.mrf.mxu3  ;;  %5106 = vmatmul.msk.f32.vlgmr.msra.gmra.mxu0 %vm129_vm0, %v6718_v55  ;;  %5109 = vmatmul.msk.f32.vlgmr.msrb.gmra.mxu3 %vm129_vm0, %v6718_v55 }
 0x1f3   :  { %2675 = vmatpush.msra.mxu0 %v2443_v6  ;;  %2735 = vmatpush.msrb.mxu3 %v2446_v35  ;;  %v1339_v6 = vadd.f32 %v6569_v14, %v6607_v32  ;;  %v1500_v35 = vadd.f32 %v6613_v1, %v6607_v32 }
 0x1f4   :  { %v6732_v51 = vpop.f32.mrf.mxu0 }
 0x1f5   :  { %2676 = vmatpush.msra.mxu0 %v2387_v58  ;;  %2736 = vmatpush.msrb.mxu3 %v2390_v46  ;;  %v2455_v46 = vmax.f32 %v1572_v13, 0.0  ;;  %v2389_v14 = vmax.f32 %v1339_v6, 0.0  ;;  %v2396_v1 = vmax.f32 %v1500_v35, 0.0 }
 0x1f6   :  { %v6742_v50 = vpop.f32.mrf.mxu2  ;;  %5102 = vmatmul.msk.f32.vlgmr.msrb.gmra.mxu2 %vm1084_vm1, %v6289_v39  ;;  %v2450_v39 = vmax.f32 %v1457_v16, 0.0  ;;  %v1664_v16 = vadd.f32 %v6732_v51, %v6571_v7  ;;  %v1661_v51 = vadd.f32 %v6701_v31, %v6607_v32 }
 0x1f7   :  { %2635 = vmatpush.msrb.mxu2 %v2441_v9  ;;  %v1595_v9 = vadd.f32 %v6695_v59, %v6571_v7  ;;  %v1615_v6 = vadd.f32 %v6742_v50, %v6607_v32 }
 0x1f8   :  { %5107 = vmatmul.msk.f32.vlgmr.msra.gmra.mxu1 %vm129_vm0, %v6718_v55 }
 0x1f9   :  { %2695 = vmatpush.msra.mxu1 %v2444_v15  ;;  %2636 = vmatpush.msrb.mxu2 %v2385_v57  ;;  %v1431_v15 = vadd.f32 %v6633_v34, %v6607_v32  ;;  %v1592_v57 = vadd.f32 %v6667_v26, %v6607_v32 }
 0x1fa   :  { %5110 = vmatmul.msk.f32.vlgmr.msrb.gmra.mxu0 %vm129_vm0, %v6718_v55  ;;  %5113 = vmatmul.msk.f32.vlgmr.msra.gmra.mxu3 %vm129_vm0, %v6718_v55 }
 0x1fb   :  { %v6758_v33 = vpop.f32.mrf.mxu1  ;;  %v6760_v30 = vpop.f32.mrf.mxu3  ;;  %2696 = vmatpush.msra.mxu1 %v2388_v21  ;;  %2755 = vmatpush.msrb.mxu0 %v2447_v36  ;;  %v2456_v21 = vmax.f32 %v1595_v9, 0.0  ;;  %v2459_v36 = vmax.f32 %v1664_v16, 0.0  ;;  %v2393_v34 = vmax.f32 %v1431_v15, 0.0  ;;  %v2400_v26 = vmax.f32 %v1592_v57, 0.0 }
 0x1fc   :  { %v6764_v20 = vpop.f32.mrf.mxu0  ;;  %2815 = vmatpush.msra.mxu3 %v2450_v39  ;;  %v1733_v40 = vadd.f32 %v6760_v30, %v6571_v7  ;;  %v1730_v30 = vadd.f32 %v6726_v38, %v6607_v32  ;;  %v2403_v38 = vmax.f32 %v1661_v51, 0.0 }
 0x1fd   :  { %2756 = vmatpush.msrb.mxu0 %v2391_v29  ;;  %v1687_v29 = vadd.f32 %v6758_v33, %v6571_v7 }
 0x1fe   :  { %v6776_v12 = vpop.f32.mrf.mxu2  ;;  %2816 = vmatpush.msra.mxu3 %v2394_v53  ;;  %5103 = vmatmul.msk.f32.gmra.mxu2 %vm1084_vm1, %v6308_v27  ;;  %v2462_v39 = vmax.f32 %v1733_v40, 0.0  ;;  %v1526_v53 = vadd.f32 %v6709_v37, %v6571_v7  ;;  %v2406_v45 = vmax.f32 %v1730_v30, 0.0  ;;  %v1684_v37 = vadd.f32 %v6724_v5, %v6607_v32 }
 0x200   :  { %5111 = vmatmul.msk.f32.vlgmr.msrb.gmra.mxu1 %vm129_vm0, %v6718_v55  ;;  %v2453_v19 = vmax.f32 %v1526_v53, 0.0  ;;  %v2404_v5 = vmax.f32 %v1684_v37, 0.0 }
 0x201   :  { %2775 = vmatpush.msrb.mxu1 %v2448_v43  ;;  %v2460_v43 = vmax.f32 %v1687_v29, 0.0 }
 0x202   :  { %5114 = vmatmul.msk.f32.vlgmr.msra.gmra.mxu0 %vm129_vm0, %v6718_v55  ;;  %5117 = vmatmul.msk.f32.vlgmr.msrb.gmra.mxu3 %vm129_vm0, %v6718_v55 }
 0x203   :  { %v6786_v0 = vpop.f32.mrf.mxu1  ;;  %v6788_v23 = vpop.f32.mrf.mxu3  ;;  %2835 = vmatpush.msra.mxu0 %v2451_v49  ;;  %2776 = vmatpush.msrb.mxu1 %v2392_v8  ;;  %v1753_v8 = vadd.f32 %v6764_v20, %v6607_v32  ;;  %v1618_v20 = vadd.f32 %v6776_v12, %v6571_v7 }
 0x204   :  { %2895 = vmatpush.msrb.mxu3 %v2454_v56  ;;  %v1776_v35 = vadd.f32 %v6786_v0, %v6607_v32 }
 0x205   :  { %v6796_v27 = vpop.f32.mrf.mxu0  ;;  %2836 = vmatpush.msra.mxu0 %v2395_v18  ;;  %v1822_v18 = vadd.f32 %v6788_v23, %v6607_v32  ;;  %v2407_v23 = vmax.f32 %v1753_v8, 0.0 }
 0x206   :  { %2896 = vmatpush.msrb.mxu3 %v2398_v44  ;;  %v6808_v58 = vpop.f32.mrf.mxu2  ;;  %5108 = vmatmul.msk.f32.vlgmr.msra.gmra.mxu2 %vm129_vm0, %v6718_v55  ;;  %v1756_v41 = vadd.f32 %v6796_v27, %v6571_v7  ;;  %v2408_v0 = vmax.f32 %v1776_v35, 0.0 }
 0x207   :  { %2715 = vmatpush.msra.mxu2 %v2445_v63  ;;  %v2410_v25 = vmax.f32 %v1822_v18, 0.0  ;;  %v1707_v9 = vadd.f32 %v6808_v58, %v6607_v32 }
 0x208   :  { %5115 = vmatmul.msk.f32.vlgmr.msra.gmra.mxu1 %vm129_vm0, %v6718_v55  ;;  %v2463_v56 = vmax.f32 %v1756_v41, 0.0 }
 0x209   :  { %2855 = vmatpush.msra.mxu1 %v2452_v48  ;;  %2716 = vmatpush.msra.mxu2 %v2389_v14  ;;  %v2457_v48 = vmax.f32 %v1618_v20, 0.0  ;;  %v2401_v14 = vmax.f32 %v1615_v6, 0.0  ;;  %v2405_v58 = vmax.f32 %v1707_v9, 0.0 }
 0x20a   :  { %5118 = vmatmul.msk.f32.vlgmr.msrb.gmra.mxu0 %vm129_vm0, %v6718_v55  ;;  %5121 = vmatmul.msk.f32.vlgmr.msra.gmra.mxu3 %vm129_vm0, %v6718_v55 }
 0x20b   :  { %v6820_v61 = vpop.f32.mrf.mxu1  ;;  %v1824_v2 = vpop.f32.mrf.mxu3  ;;  %2856 = vmatpush.msra.mxu1 %v2396_v1  ;;  %2915 = vmatpush.msrb.mxu0 %v2455_v46 }
 0x20c   :  { %2975 = vmatpush.msra.mxu3 %v2458_v22  ;;  %v1825_v52 = vadd.f32 %v1824_v2, %v6571_v7  ;;  %v1779_v62 = vadd.f32 %v6820_v61, %v6571_v7 }
 0x20d   :  { %v6826_v54 = vpop.f32.mrf.mxu0  ;;  %2916 = vmatpush.msrb.mxu0 %v2399_v4 }
 0x20e   :  { %2976 = vmatpush.msra.mxu3 %v2402_v3  ;;  %5112 = vmatmul.msk.f32.vlgmr.msrb.gmra.mxu2 %vm129_vm0, %v6718_v55  ;;  %v2466_v60 = vmax.f32 %v1825_v52, 0.0  ;;  %v2464_v42 = vmax.f32 %v1779_v62, 0.0  ;;  %v1845_v46 = vadd.f32 %v6826_v54, %v6607_v32 }
 0x20f   :  { %v6838_v59 = vpop.f32.mrf.mxu2  ;;  %2795 = vmatpush.msrb.mxu2 %v2449_v17 }
 0x210   :  { %5119 = vmatmul.msk.f32.vlgmr.msrb.gmra.mxu1 %vm129_vm0, %v6718_v55  ;;  %v1710_v61 = vadd.f32 %v6838_v59, %v6571_v7  ;;  %v2411_v54 = vmax.f32 %v1845_v46, 0.0 }
 0x211   :  { %2935 = vmatpush.msrb.mxu1 %v2456_v21  ;;  %2796 = vmatpush.msrb.mxu2 %v2393_v34 }
 0x212   :  { %5122 = vmatmul.msk.f32.vlgmr.msra.gmra.mxu0 %vm129_vm0, %v6718_v55  ;;  %5125 = vmatmul.msk.f32.vlgmr.msrb.gmra.mxu3 %vm129_vm0, %v6718_v55  ;;  %v2461_v57 = vmax.f32 %v1710_v61, 0.0 }
 0x213   :  { %v6852_v31 = vpop.f32.mrf.mxu1  ;;  %v1913_v24 = vpop.f32.mrf.mxu3  ;;  %2936 = vmatpush.msrb.mxu1 %v2400_v26  ;;  %2995 = vmatpush.msra.mxu0 %v2459_v36 }
 0x214   :  { %3055 = vmatpush.msrb.mxu3 %v2462_v39  ;;  %v1914_v11 = vadd.f32 %v1913_v24, %v6607_v32  ;;  %v1868_v3 = vadd.f32 %v6852_v31, %v6607_v32 }
 0x215   :  { %v1847_v33 = vpop.f32.mrf.mxu0  ;;  %2996 = vmatpush.msra.mxu0 %v2403_v38 }
 0x216   :  { %3056 = vmatpush.msrb.mxu3 %v2406_v45  ;;  %5116 = vmatmul.msk.f32.vlgmr.msra.gmra.mxu2 %vm129_vm0, %v6718_v55  ;;  %v1848_v63 = vadd.f32 %v1847_v33, %v6571_v7  ;;  %v2414_v16 = vmax.f32 %v1914_v11, 0.0  ;;  %v2412_v36 = vmax.f32 %v1868_v3, 0.0 }
 0x217   :  { %v6865_v49 = vpop.f32.mrf.mxu2  ;;  %2875 = vmatpush.msra.mxu2 %v2453_v19 }
 0x218   :  { %5123 = vmatmul.msk.f32.vlgmr.msra.gmra.mxu1 %vm129_vm0, %v6718_v55  ;;  %v2467_v1 = vmax.f32 %v1848_v63, 0.0  ;;  %v1799_v29 = vadd.f32 %v6865_v49, %v6607_v32 }
 0x219   :  { %3015 = vmatpush.msra.mxu1 %v2460_v43  ;;  %2876 = vmatpush.msra.mxu2 %v2397_v47 }
 0x21a   :  { %5126 = vmatmul.msk.f32.vlgmr.msrb.gmra.mxu0 %vm129_vm0, %v6718_v55  ;;  %5129 = vmatmul.msk.f32.vlgmr.msra.gmra.mxu3 %vm129_vm0, %v6718_v55  ;;  %v2409_v52 = vmax.f32 %v1799_v29, 0.0 }
 0x21b   :  { %3016 = vmatpush.msra.mxu1 %v2404_v5  ;;  %3075 = vmatpush.msrb.mxu0 %v2463_v56 }
 0x21c   :  { %v1870_v27 = vpop.f32.mrf.mxu1  ;;  %v1916_v44 = vpop.f32.mrf.mxu3  ;;  %3135 = vmatpush.msra.mxu3 %v2466_v60 }
 0x21d   :  { %v1936_v13 = vpop.f32.mrf.mxu0  ;;  %v1917_v12 = vadd.f32 %v1916_v44, %v6571_v7  ;;  %3076 = vmatpush.msrb.mxu0 %v2407_v23  ;;  %v1871_v4 = vadd.f32 %v1870_v27, %v6571_v7 }
 0x21e   :  { %3136 = vmatpush.msra.mxu3 %v2410_v25  ;;  %5120 = vmatmul.msk.f32.vlgmr.msrb.gmra.mxu2 %vm129_vm0, %v6718_v55  ;;  %v1937_v59 = vadd.f32 %v1936_v13, %v6607_v32 }
 0x21f   :  { %v1801_v50 = vpop.f32.mrf.mxu2  ;;  %v2470_v22 = vmax.f32 %v1917_v12, 0.0  ;;  %2955 = vmatpush.msrb.mxu2 %v2457_v48  ;;  %v2468_v17 = vmax.f32 %v1871_v4, 0.0 }
 0x220   :  { %5127 = vmatmul.msk.f32.vlgmr.msrb.gmra.mxu1 %vm129_vm0, %v6718_v55  ;;  %v1802_v34 = vadd.f32 %v1801_v50, %v6571_v7  ;;  %v2415_v30 = vmax.f32 %v1937_v59, 0.0 }
 0x221   :  { %3095 = vmatpush.msrb.mxu1 %v2464_v42  ;;  %2956 = vmatpush.msrb.mxu2 %v2401_v14 }
 0x222   :  { %5130 = vmatmul.msk.f32.vlgmr.msra.gmra.mxu0 %vm129_vm0, %v6718_v55  ;;  %5133 = vmatmul.msk.f32.vlgmr.msrb.gmra.mxu3 %vm129_vm0, %v6718_v55  ;;  %v2465_v41 = vmax.f32 %v1802_v34, 0.0 }
 0x223   :  { %3096 = vmatpush.msrb.mxu1 %v2408_v0  ;;  %3155 = vmatpush.msra.mxu0 %v2467_v1 }
 0x224   :  { %v1959_v2 = vpop.f32.mrf.mxu1  ;;  %v2005_v28 = vpop.f32.mrf.mxu3  ;;  %3215 = vmatpush.msrb.mxu3 %v2470_v22 }
 0x225   :  { %3156 = vmatpush.msra.mxu0 %v2411_v54  ;;  %v1960_v38 = vadd.f32 %v1959_v2, %v6607_v32  ;;  %v2006_v10 = vadd.f32 %v2005_v28, %v6607_v32 }
 0x226   :  { %v1939_v15 = vpop.f32.mrf.mxu0  ;;  %3216 = vmatpush.msrb.mxu3 %v2414_v16  ;;  %5124 = vmatmul.msk.f32.vlgmr.msra.gmra.mxu2 %vm129_vm0, %v6718_v55 }
 0x227   :  { %v1940_v40 = vadd.f32 %v1939_v15, %v6571_v7  ;;  %v1890_v51 = vpop.f32.mrf.mxu2  ;;  %3035 = vmatpush.msra.mxu2 %v2461_v57  ;;  %v2416_v43 = vmax.f32 %v1960_v38, 0.0  ;;  %v2418_v49 = vmax.f32 %v2006_v10, 0.0 }
 0x228   :  { %5131 = vmatmul.msk.f32.vlgmr.msra.gmra.mxu1 %vm129_vm0, %v6718_v55  ;;  %v1891_v47 = vadd.f32 %v1890_v51, %v6607_v32 }
 0x229   :  { %v2471_v21 = vmax.f32 %v1940_v40, 0.0  ;;  %3175 = vmatpush.msra.mxu1 %v2468_v17  ;;  %3036 = vmatpush.msra.mxu2 %v2405_v58 }
 0x22a   :  { %5134 = vmatmul.msk.f32.vlgmr.msrb.gmra.mxu0 %vm129_vm0, %v6718_v55  ;;  %5137 = vmatmul.msk.f32.vlgmr.msra.gmra.mxu3 %vm129_vm0, %v6718_v55  ;;  %v2413_v27 = vmax.f32 %v1891_v47, 0.0 }
 0x22b   :  { %3176 = vmatpush.msra.mxu1 %v2412_v36  ;;  %3235 = vmatpush.msrb.mxu0 %v2471_v21 }
 0x22c   :  { %v1962_v39 = vpop.f32.mrf.mxu1  ;;  %v2008_v26 = vpop.f32.mrf.mxu3 }
 0x22d   :  { %v1963_v31 = vadd.f32 %v1962_v39, %v6571_v7  ;;  %v2009_v24 = vadd.f32 %v2008_v26, %v6571_v7  ;;  %3236 = vmatpush.msrb.mxu0 %v2415_v30 }
 0x22e   :  { %v2028_v53 = vpop.f32.mrf.mxu0  ;;  %5128 = vmatmul.msk.f32.vlgmr.msrb.gmra.mxu2 %vm129_vm0, %v6718_v55 }
 0x22f   :  { %v2472_v33 = vmax.f32 %v1963_v31, 0.0  ;;  %v2474_v45 = vmax.f32 %v2009_v24, 0.0  ;;  %3115 = vmatpush.msrb.mxu2 %v2465_v41  ;;  %v2029_v20 = vadd.f32 %v2028_v53, %v6607_v32 }
 0x230   :  { %5135 = vmatmul.msk.f32.vlgmr.msrb.gmra.mxu1 %vm129_vm0, %v6718_v55  ;;  %v1893_v37 = vpop.f32.mrf.mxu2 }
 0x231   :  { %3255 = vmatpush.msrb.mxu1 %v2472_v33  ;;  %v1894_v19 = vadd.f32 %v1893_v37, %v6571_v7  ;;  %3116 = vmatpush.msrb.mxu2 %v2409_v52  ;;  %v2419_v62 = vmax.f32 %v2029_v20, 0.0 }
 0x232   :  { %5138 = vmatmul.msk.f32.vlgmr.msra.gmra.mxu0 %vm129_vm0, %v6718_v55  ;;  %5141 = vmatmul.msk.f32.vlgmr.msrb.gmra.mxu3 %vm129_vm0, %v6718_v55 }
 0x233   :  { %3295 = vmatpush.msra.mxu3 %v2474_v45  ;;  %3256 = vmatpush.msrb.mxu1 %v2416_v43  ;;  %v2469_v18 = vmax.f32 %v1894_v19, 0.0 }
 0x234   :  { %v2051_v8 = vpop.f32.mrf.mxu1  ;;  %v2097_v56 = vpop.f32.mrf.mxu3 }
 0x235   :  { %3296 = vmatpush.msra.mxu3 %v2418_v49  ;;  %v2052_v25 = vadd.f32 %v2051_v8, %v6607_v32  ;;  %v2098_v48 = vadd.f32 %v2097_v56, %v6607_v32 }
 0x236   :  { %v2031_v60 = vpop.f32.mrf.mxu0  ;;  %5132 = vmatmul.msk.f32.vlgmr.msra.gmra.mxu2 %vm129_vm0, %v6718_v55 }
 0x237   :  { %v2032_v5 = vadd.f32 %v2031_v60, %v6571_v7  ;;  %3195 = vmatpush.msra.mxu2 %v2469_v18  ;;  %v2420_v50 = vmax.f32 %v2052_v25, 0.0  ;;  %v2422_v11 = vmax.f32 %v2098_v48, 0.0 }
 0x238   :  { %5139 = vmatmul.msk.f32.vlgmr.msra.gmra.mxu1 %vm129_vm0, %v6718_v55  ;;  %v1982_v23 = vpop.f32.mrf.mxu2 }
 0x239   :  { %v2475_v44 = vmax.f32 %v2032_v5, 0.0  ;;  %3196 = vmatpush.msra.mxu2 %v2413_v27  ;;  %v1983_v22 = vadd.f32 %v1982_v23, %v6607_v32 }
 0x23a   :  { %5142 = vmatmul.msk.f32.vlgmr.msrb.gmra.mxu0 %vm129_vm0, %v6718_v55  ;;  %5145 = vmatmul.msk.f32.vlgmr.msra.gmra.mxu3 %vm129_vm0, %v6718_v55 }
 0x23b   :  { %3315 = vmatpush.msra.mxu0 %v2475_v44  ;;  %v2417_v28 = vmax.f32 %v1983_v22, 0.0 }
 0x23d   :  { %v2054_v13 = vpop.f32.mrf.mxu1  ;;  %v2100_v6 = vpop.f32.mrf.mxu3  ;;  %3316 = vmatpush.msra.mxu0 %v2419_v62 }
 0x23e   :  { %v2055_v12 = vadd.f32 %v2054_v13, %v6571_v7  ;;  %v2101_v35 = vadd.f32 %v2100_v6, %v6571_v7  ;;  %v2120_v63 = vpop.f32.mrf.mxu0  ;;  %5136 = vmatmul.msk.f32.vlgmr.msrb.gmra.mxu2 %vm129_vm0, %v6718_v55 }
 0x23f   :  { %v2121_v4 = vadd.f32 %v2120_v63, %v6607_v32 }
 0x240   :  { %v2476_v42 = vmax.f32 %v2055_v12, 0.0  ;;  %v2478_v46 = vmax.f32 %v2101_v35, 0.0  ;;  %5143 = vmatmul.msk.f32.vlgmr.msrb.gmra.mxu1 %vm129_vm0, %v6718_v55  ;;  %v1985_v14 = vpop.f32.mrf.mxu2 }
 0x241   :  { %v1986_v0 = vadd.f32 %v1985_v14, %v6571_v7  ;;  %v2423_v3 = vmax.f32 %v2121_v4, 0.0 }
 0x242   :  { %5146 = vmatmul.msk.f32.vlgmr.msra.gmra.mxu0 %vm129_vm0, %v6718_v55  ;;  %3335 = vmatpush.msra.mxu1 %v2476_v42 }
 0x243   :  { %3375 = vmatpush.msrb.mxu3 %v2478_v46  ;;  %v2473_v1 = vmax.f32 %v1986_v0, 0.0 }
 0x244   :  { %3336 = vmatpush.msra.mxu1 %v2420_v50 }
 0x245   :  { %3376 = vmatpush.msrb.mxu3 %v2422_v11  ;;  %v2143_v61 = vpop.f32.mrf.mxu1  ;;  %v2189_v2 = vpop.f32.mrf.mxu3  ;;  %3275 = vmatpush.msrb.mxu2 %v2473_v1 }
 0x246   :  { %5149 = vmatmul.msk.f32.vlgmr.msrb.gmra.mxu3 %vm129_vm0, %v6718_v55  ;;  %5140 = vmatmul.msk.f32.vlgmr.msra.gmra.mxu2 %vm129_vm0, %v6718_v55  ;;  %v2144_v17 = vadd.f32 %v2143_v61, %v6607_v32  ;;  %v2190_v59 = vadd.f32 %v2189_v2, %v6607_v32 }
 0x247   :  { %v2123_v54 = vpop.f32.mrf.mxu0  ;;  %3276 = vmatpush.msrb.mxu2 %v2417_v28 }
 0x248   :  { %v2124_v9 = vadd.f32 %v2123_v54, %v6571_v7  ;;  %5147 = vmatmul.msk.f32.vlgmr.msra.gmra.mxu1 %vm129_vm0, %v6718_v55  ;;  %v2074_v15 = vpop.f32.mrf.mxu2  ;;  %v2424_v30 = vmax.f32 %v2144_v17, 0.0  ;;  %v2426_v39 = vmax.f32 %v2190_v59, 0.0 }
 0x249   :  { %v2075_v29 = vadd.f32 %v2074_v15, %v6607_v32 }
 0x24a   :  { %v2479_v16 = vmax.f32 %v2124_v9, 0.0 }
 0x24b   :  { %v2421_v33 = vmax.f32 %v2075_v29, 0.0 }
 0x24c   :  { %3395 = vmatpush.msrb.mxu0 %v2479_v16 }
 0x24d   :  { %v2146_v40 = vpop.f32.mrf.mxu1  ;;  %v2192_v57 = vpop.f32.mrf.mxu3 }
 0x24e   :  { %3396 = vmatpush.msrb.mxu0 %v2423_v3  ;;  %v2147_v21 = vadd.f32 %v2146_v40, %v6571_v7  ;;  %v2193_v51 = vadd.f32 %v2192_v57, %v6571_v7  ;;  %5144 = vmatmul.msk.f32.vlgmr.msrb.gmra.mxu2 %vm129_vm0, %v6718_v55 }
 0x24f   :  { %v2212_v58 = vpop.f32.mrf.mxu0  ;;  %5150 = vmatmul.msk.f32.vlgmr.msrb.gmra.mxu0 %vm129_vm0, %v6718_v55 }
 0x250   :  { %v2480_v36 = vmax.f32 %v2147_v21, 0.0  ;;  %v2482_v34 = vmax.f32 %v2193_v51, 0.0  ;;  %v2213_v10 = vadd.f32 %v2212_v58, %v6607_v32 }
 0x251   :  { %v2077_v26 = vpop.f32.mrf.mxu2 }
 0x252   :  { %3415 = vmatpush.msrb.mxu1 %v2480_v36  ;;  %3455 = vmatpush.msra.mxu3 %v2482_v34  ;;  %v2078_v31 = vadd.f32 %v2077_v26, %v6571_v7  ;;  %v2427_v43 = vmax.f32 %v2213_v10, 0.0 }
 0x254   :  { %3416 = vmatpush.msrb.mxu1 %v2424_v30  ;;  %3456 = vmatpush.msra.mxu3 %v2426_v39  ;;  %v2477_v24 = vmax.f32 %v2078_v31, 0.0  ;;  %v7014_v31 = vpop.permute.xlu0 %2495 }
 0x255   :  { %v2235_v53 = vpop.f32.mrf.mxu1  ;;  %v2281_v38 = vpop.f32.mrf.mxu3  ;;  %5151 = vmatmul.msk.f32.vlgmr.msrb.gmra.mxu1 %vm129_vm0, %v6718_v55  ;;  %5153 = vmatmul.msk.f32.vlgmr.msra.gmra.mxu3 %vm129_vm0, %v6718_v55 }
 0x256   :  { %3355 = vmatpush.msra.mxu2 %v2477_v24  ;;  %v2236_v8 = vadd.f32 %v2235_v53, %v6607_v32  ;;  %v2282_v56 = vadd.f32 %v2281_v38, %v6607_v32 }
 0x257   :  { %v2215_v41 = vpop.f32.mrf.mxu0 }
 0x258   :  { %v2216_v45 = vadd.f32 %v2215_v41, %v6571_v7  ;;  %3356 = vmatpush.msra.mxu2 %v2421_v33  ;;  %v2428_v27 = vmax.f32 %v2236_v8, 0.0  ;;  %v2430_v44 = vmax.f32 %v2282_v56, 0.0 }
 0x259   :  { %v2166_v37 = vpop.f32.mrf.mxu2  ;;  %5148 = vmatmul.msk.f32.vlgmr.msra.gmra.mxu2 %vm129_vm0, %v6718_v55 }
 0x25a   :  { %v2483_v52 = vmax.f32 %v2216_v45, 0.0  ;;  %v2167_v62 = vadd.f32 %v2166_v37, %v6607_v32 }
 0x25c   :  { %3475 = vmatpush.msra.mxu0 %v2483_v52  ;;  %v2425_v63 = vmax.f32 %v2167_v62, 0.0 }
 0x25d   :  { %v2238_v19 = vpop.f32.mrf.mxu1  ;;  %v2284_v49 = vpop.f32.mrf.mxu3 }
 0x25e   :  { %3476 = vmatpush.msra.mxu0 %v2427_v43  ;;  %v2239_v47 = vadd.f32 %v2238_v19, %v6571_v7  ;;  %v2285_v18 = vadd.f32 %v2284_v49, %v6571_v7 }
 0x25f   :  { %v2304_v60 = vpop.f32.mrf.mxu0  ;;  %5154 = vmatmul.msk.f32.vlgmr.msra.gmra.mxu0 %vm129_vm0, %v6718_v55 }
 0x260   :  { %v2484_v5 = vmax.f32 %v2239_v47, 0.0  ;;  %v2486_v20 = vmax.f32 %v2285_v18, 0.0  ;;  %v2305_v48 = vadd.f32 %v2304_v60, %v6607_v32 }
 0x261   :  { %v2169_v23 = vpop.f32.mrf.mxu2 }
 0x262   :  { %3495 = vmatpush.msra.mxu1 %v2484_v5  ;;  %3535 = vmatpush.msrb.mxu3 %v2486_v20  ;;  %v2170_v13 = vadd.f32 %v2169_v23, %v6571_v7  ;;  %v2431_v14 = vmax.f32 %v2305_v48, 0.0 }
 0x264   :  { %3496 = vmatpush.msra.mxu1 %v2428_v27  ;;  %3536 = vmatpush.msrb.mxu3 %v2430_v44  ;;  %v2481_v6 = vmax.f32 %v2170_v13, 0.0 }
 0x265   :  { %v2327_v25 = vpop.f32.mrf.mxu1  ;;  %v2373_v12 = vpop.f32.mrf.mxu3  ;;  %5155 = vmatmul.msk.f32.vlgmr.msra.gmra.mxu1 %vm129_vm0, %v6718_v55  ;;  %5157 = vmatmul.msk.f32.vlgmr.msrb.gmra.mxu3 %vm129_vm0, %v6718_v55 }
 0x266   :  { %3435 = vmatpush.msrb.mxu2 %v2481_v6  ;;  %v2328_v0 = vadd.f32 %v2327_v25, %v6607_v32  ;;  %v2374_v1 = vadd.f32 %v2373_v12, %v6607_v32 }
 0x267   :  { %v2307_v35 = vpop.f32.mrf.mxu0 }
 0x268   :  { %v2308_v42 = vadd.f32 %v2307_v35, %v6571_v7  ;;  %3436 = vmatpush.msrb.mxu2 %v2425_v63  ;;  %v2432_v9 = vmax.f32 %v2328_v0, 0.0  ;;  %v2434_v16 = vmax.f32 %v2374_v1, 0.0 }
 0x269   :  { %v2258_v50 = vpop.f32.mrf.mxu2  ;;  %5152 = vmatmul.msk.f32.vlgmr.msrb.gmra.mxu2 %vm129_vm0, %v6718_v55 }
 0x26a   :  { %v2487_v46 = vmax.f32 %v2308_v42, 0.0  ;;  %v2259_v3 = vadd.f32 %v2258_v50, %v6607_v32 }
 0x26c   :  { %3555 = vmatpush.msrb.mxu0 %v2487_v46  ;;  %v2429_v21 = vmax.f32 %v2259_v3, 0.0 }
 0x26d   :  { %v2330_v11 = vpop.f32.mrf.mxu1  ;;  %v2376_v22 = vpop.f32.mrf.mxu3 }
 0x26e   :  { %3556 = vmatpush.msrb.mxu0 %v2431_v14  ;;  %v2331_v61 = vadd.f32 %v2330_v11, %v6571_v7  ;;  %v2377_v2 = vadd.f32 %v2376_v22, %v6571_v7  ;;  %v7031_v11 = vld [vmem:[%s7504_s9] sm:$0xff] }
 0x26f   :  { %v2518_v28 = vpop.f32.mrf.mxu0  ;;  %5158 = vmatmul.msk.f32.vlgmr.msrb.gmra.mxu0 %vm129_vm0, %v6718_v55 }
 0x270   :  { %v2488_v54 = vmax.f32 %v2331_v61, 0.0  ;;  %v2490_v4 = vmax.f32 %v2377_v2, 0.0  ;;  %v2519_v41 = vadd.f32 %v2518_v28, %v7014_v31 }
 0x271   :  { %v2261_v15 = vpop.f32.mrf.mxu2 }
 0x272   :  { %3575 = vmatpush.msrb.mxu1 %v2488_v54  ;;  %3615 = vmatpush.msra.mxu3 %v2490_v4  ;;  %v2262_v40 = vadd.f32 %v2261_v15, %v6571_v7 }
 0x274   :  { %3576 = vmatpush.msrb.mxu1 %v2432_v9  ;;  %3616 = vmatpush.msra.mxu3 %v2434_v16  ;;  %v2485_v57 = vmax.f32 %v2262_v40, 0.0 }
 0x275   :  { %v2538_v17 = vpop.f32.mrf.mxu1  ;;  %5159 = vmatmul.msk.f32.vlgmr.msrb.gmra.mxu1 %vm129_vm0, %v6718_v55  ;;  %5161 = vmatmul.msk.f32.vlgmr.msra.gmra.mxu3 %vm129_vm0, %v6718_v55  ;;  %v2578_v59 = vpop.f32.mrf.mxu3 }
 0x276   :  { %3515 = vmatpush.msra.mxu2 %v2485_v57  ;;  %v2539_v24 = vadd.f32 %v2538_v17, %v7014_v31 }
 0x277   :  { %v2598_v51 = vpop.f32.mrf.mxu0 }
 0x278   :  { %3516 = vmatpush.msra.mxu2 %v2429_v21  ;;  %v3622_v10 = vmax.f32 %v2539_v24, 0.0  ;;  %v2599_v49 = vadd.f32 %v2598_v51, %v7014_v31 }
 0x279   :  { %v2350_v58 = vpop.f32.mrf.mxu2  ;;  %5156 = vmatmul.msk.f32.vlgmr.msra.gmra.mxu2 %vm129_vm0, %v6718_v55 }
 0x27a   :  { %v2351_v26 = vadd.f32 %v2350_v58, %v6607_v32  ;;  %v3621_v32 = vmax.f32 %v2519_v41, 0.0  ;;  %v3625_v5 = vmax.f32 %v2599_v49, 0.0 }
 0x27c   :  { %v2433_v33 = vmax.f32 %v2351_v26, 0.0  ;;  %v3677_v19 = vadd.f32 %v3622_v10, %v3621_v32  ;;  %v7055_v10 = vld [vmem:[%s7504_s9 + $0x10] sm:$0xff] }
 0x27d   :  { %v2618_v36 = vpop.f32.mrf.mxu1  ;;  %v2658_v34 = vpop.f32.mrf.mxu3 }
 0x27e   :  { %v2619_v18 = vadd.f32 %v2618_v36, %v7014_v31  ;;  %v2659_v6 = vadd.f32 %v2658_v34, %v7014_v31 }
 0x27f   :  { %v2678_v30 = vpop.f32.mrf.mxu0 }
 0x280   :  { %v3626_v44 = vmax.f32 %v2619_v18, 0.0  ;;  %v3628_v50 = vmax.f32 %v2659_v6, 0.0  ;;  %v7065_v18 = vld [vmem:[%s7504_s9 + $0x18] sm:$0xff] }
 0x281   :  { %v2353_v39 = vpop.f32.mrf.mxu2 }
 0x282   :  { %v2354_v29 = vadd.f32 %v2353_v39, %v6571_v7  ;;  %v2579_v7 = vadd.f32 %v2578_v59, %v7014_v31  ;;  %v7043_v59 = vld [vmem:[%s7504_s9 + $0x8] sm:$0xff] }
 0x284   :  { %v2489_v53 = vmax.f32 %v2354_v29, 0.0  ;;  %v3624_v47 = vmax.f32 %v2579_v7, 0.0 }
 0x285   :  { %v2698_v38 = vpop.f32.mrf.mxu1  ;;  %v2738_v45 = vpop.f32.mrf.mxu3 }
 0x286   :  { %3595 = vmatpush.msrb.mxu2 %v2489_v53  ;;  %v2699_v25 = vadd.f32 %v2698_v38, %v7014_v31  ;;  %v2739_v1 = vadd.f32 %v2738_v45, %v7014_v31 }
 0x287   :  { %v2758_v43 = vpop.f32.mrf.mxu0 }
 0x288   :  { %3596 = vmatpush.msrb.mxu2 %v2433_v33  ;;  %v3630_v14 = vmax.f32 %v2699_v25, 0.0  ;;  %v2759_v28 = vadd.f32 %v2758_v43, %v7014_v31  ;;  %v3632_v9 = vmax.f32 %v2739_v1, 0.0 }
 0x289   :  { %v2558_v52 = vpop.f32.mrf.mxu2  ;;  %5160 = vmatmul.msk.f32.vlgmr.msrb.gmra.mxu2 %vm129_vm0, %v6718_v55  ;;  %v2679_v55 = vadd.f32 %v2678_v30, %v7014_v31 }
 0x28a   :  { %v2559_v37 = vadd.f32 %v2558_v52, %v7014_v31  ;;  %v3633_v40 = vmax.f32 %v2759_v28, 0.0 }
 0x28b   :  { %v3629_v48 = vmax.f32 %v2679_v55, 0.0 }
 0x28c   :  { %v3623_v8 = vmax.f32 %v2559_v37, 0.0 }
 0x28d   :  { %v2778_v56 = vpop.f32.mrf.mxu1  ;;  %v2818_v13 = vpop.f32.mrf.mxu3  ;;  %v3683_v0 = vadd.f32 %v3629_v48, %v3628_v50 }
 0x28e   :  { %v3678_v60 = vadd.f32 %v3677_v19, %v3623_v8  ;;  %v2779_v16 = vadd.f32 %v2778_v56, %v7014_v31  ;;  %v2819_v57 = vadd.f32 %v2818_v13, %v7014_v31 }
 0x28f   :  { %v2838_v63 = vpop.f32.mrf.mxu0  ;;  %v3684_v2 = vadd.f32 %v3683_v0, %v3630_v14 }
 0x290   :  { %v3679_v20 = vadd.f32 %v3678_v60, %v3624_v47  ;;  %v3634_v58 = vmax.f32 %v2779_v16, 0.0  ;;  %v2839_v36 = vadd.f32 %v2838_v63, %v7014_v31  ;;  %v3636_v39 = vmax.f32 %v2819_v57, 0.0 }
 0x291   :  { %v2638_v27 = vpop.f32.mrf.mxu2 }
 0x292   :  { %v2639_v23 = vadd.f32 %v2638_v27, %v7014_v31  ;;  %v3680_v62 = vadd.f32 %v3679_v20, %v3625_v5  ;;  %v3637_v24 = vmax.f32 %v2839_v36, 0.0 }
 0x294   :  { %v3627_v12 = vmax.f32 %v2639_v23, 0.0  ;;  %v3681_v35 = vadd.f32 %v3680_v62, %v3626_v44 }
 0x295   :  { %v2858_v46 = vpop.f32.mrf.mxu1  ;;  %v2898_v4 = vpop.f32.mrf.mxu3 }
 0x296   :  { %v3682_v42 = vadd.f32 %v3681_v35, %v3627_v12  ;;  %v2859_v53 = vadd.f32 %v2858_v46, %v7014_v31  ;;  %v2899_v7 = vadd.f32 %v2898_v4, %v7014_v31 }
 0x297   :  { %v2918_v3 = vpop.f32.mrf.mxu0 }
 0x298   :  { %3761 = vmatpush.msra.mxu0 %v3682_v42  ;;  %v3638_v32 = vmax.f32 %v2859_v53, 0.0  ;;  %v2919_v19 = vadd.f32 %v2918_v3, %v7014_v31  ;;  %v3640_v56 = vmax.f32 %v2899_v7, 0.0 }
 0x299   :  { %v2718_v22 = vpop.f32.mrf.mxu2  ;;  %5162 = vmatmul.msk.f32.vlgmr.msra.gmra.mxu0 %vm3733_vm2, %v7031_v11 }
 0x29a   :  { %v2719_v61 = vadd.f32 %v2718_v22, %v7014_v31  ;;  %v3641_v60 = vmax.f32 %v2919_v19, 0.0 }
 0x29c   :  { %v3631_v54 = vmax.f32 %v2719_v61, 0.0 }
 0x29d   :  { %v2938_v21 = vpop.f32.mrf.mxu1  ;;  %v2978_v41 = vpop.f32.mrf.mxu3 }
 0x29e   :  { %v3685_v15 = vadd.f32 %v3684_v2, %v3631_v54  ;;  %v2939_v5 = vadd.f32 %v2938_v21, %v7014_v31  ;;  %v2979_v55 = vadd.f32 %v2978_v41, %v7014_v31 }
 0x29f   :  { %v2998_v45 = vpop.f32.mrf.mxu0 }
 0x2a0   :  { %v3686_v17 = vadd.f32 %v3685_v15, %v3632_v9  ;;  %v3642_v6 = vmax.f32 %v2939_v5, 0.0  ;;  %v2999_v25 = vadd.f32 %v2998_v45, %v7014_v31  ;;  %v3644_v63 = vmax.f32 %v2979_v55, 0.0 }
 0x2a1   :  { %v2798_v51 = vpop.f32.mrf.mxu2  ;;  %5163 = vmatmul.msk.f32.gmra.mxu0 %vm3733_vm2, %v7043_v59 }
 0x2a2   :  { %v3687_v34 = vadd.f32 %v3686_v17, %v3633_v40  ;;  %v2799_v30 = vadd.f32 %v2798_v51, %v7014_v31  ;;  %v3645_v46 = vmax.f32 %v2999_v25, 0.0 }
 0x2a4   :  { %v3635_v26 = vmax.f32 %v2799_v30, 0.0  ;;  %v3688_v29 = vadd.f32 %v3687_v34, %v3634_v58 }
 0x2a5   :  { %v3018_v43 = vpop.f32.mrf.mxu1  ;;  %v3058_v27 = vpop.f32.mrf.mxu3 }
 0x2a6   :  { %v3689_v38 = vadd.f32 %v3636_v39, %v3635_v26  ;;  %3790 = vmatpush.msra.mxu1 %v3688_v29  ;;  %v3019_v48 = vadd.f32 %v3018_v43, %v7014_v31  ;;  %v3059_v0 = vadd.f32 %v3058_v27, %v7014_v31 }
 0x2a7   :  { %5166 = vmatmul.msk.f32.vlgmr.msra.gmra.mxu1 %vm3733_vm2, %v7031_v11  ;;  %v3078_v13 = vpop.f32.mrf.mxu0 }
 0x2a8   :  { %v3690_v33 = vadd.f32 %v3689_v38, %v3637_v24  ;;  %v3646_v22 = vmax.f32 %v3019_v48, 0.0  ;;  %v3648_v16 = vmax.f32 %v3059_v0, 0.0  ;;  %v3079_v15 = vadd.f32 %v3078_v13, %v7014_v31  ;;  %v5278_v48 = vld [vmem:[#allocation2] sm:$0xff] }
 0x2a9   :  { %v2878_v52 = vpop.f32.mrf.mxu2  ;;  %5164 = vmatmul.msk.f32.gmra.mxu0 %vm3733_vm2, %v7055_v10 }
 0x2aa   :  { %v2879_v37 = vadd.f32 %v2878_v52, %v7014_v31  ;;  %v3691_v8 = vadd.f32 %v3690_v33, %v3638_v32  ;;  %v3649_v51 = vmax.f32 %v3079_v15, 0.0 }
 0x2ac   :  { %v3639_v49 = vmax.f32 %v2879_v37, 0.0 }
 0x2ad   :  { %v3098_v35 = vpop.f32.mrf.mxu1  ;;  %v3138_v2 = vpop.f32.mrf.mxu3 }
 0x2ae   :  { %v3692_v47 = vadd.f32 %v3691_v8, %v3639_v49  ;;  %v3099_v28 = vadd.f32 %v3098_v35, %v7014_v31  ;;  %v3139_v58 = vadd.f32 %v3138_v2, %v7014_v31 }
 0x2af   :  { %5167 = vmatmul.msk.f32.gmra.mxu1 %vm3733_vm2, %v7043_v59  ;;  %v3158_v9 = vpop.f32.mrf.mxu0 }
 0x2b0   :  { %v3693_v20 = vadd.f32 %v3692_v47, %v3640_v56  ;;  %v3650_v57 = vmax.f32 %v3099_v28, 0.0  ;;  %v3159_v30 = vadd.f32 %v3158_v9, %v7014_v31  ;;  %v3652_v29 = vmax.f32 %v3139_v58, 0.0  ;;  %v5284_v58 = vld [vmem:[#allocation2 + $0x50] sm:$0xff] }
 0x2b1   :  { %v2958_v44 = vpop.f32.mrf.mxu2  ;;  %5165 = vmatmul.msk.f32.gmra.mxu0 %vm3733_vm2, %v7065_v18 }
 0x2b2   :  { %v2959_v23 = vadd.f32 %v2958_v44, %v7014_v31  ;;  %v3694_v62 = vadd.f32 %v3693_v20, %v3641_v60  ;;  %v3701_v34 = vadd.f32 %v3650_v57, %v3649_v51  ;;  %v3653_v41 = vmax.f32 %v3159_v30, 0.0 }
 0x2b4   :  { %v3643_v12 = vmax.f32 %v2959_v23, 0.0  ;;  %3819 = vmatpush.msra.mxu2 %v3694_v62 }
 0x2b5   :  { %5170 = vmatmul.msk.f32.vlgmr.msra.gmra.mxu2 %vm3733_vm2, %v7031_v11  ;;  %v3178_v40 = vpop.f32.mrf.mxu1  ;;  %v3218_v26 = vpop.f32.mrf.mxu3 }
 0x2b6   :  { %v3695_v42 = vadd.f32 %v3643_v12, %v3642_v6  ;;  %v3179_v24 = vadd.f32 %v3178_v40, %v7014_v31  ;;  %v3219_v19 = vadd.f32 %v3218_v26, %v7014_v31  ;;  %v5277_v6 = vld [vmem:[#allocation2 + $0x8] sm:$0xff]  ;;  %v5282_v40 = vld [vmem:[#allocation2 + $0x10] sm:$0xff] }
 0x2b7   :  { %5168 = vmatmul.msk.f32.gmra.mxu1 %vm3733_vm2, %v7055_v10  ;;  %v3238_v38 = vpop.f32.mrf.mxu0 }
 0x2b8   :  { %v3696_v50 = vadd.f32 %v3695_v42, %v3644_v63  ;;  %v3654_v32 = vmax.f32 %v3179_v24, 0.0  ;;  %v3239_v7 = vadd.f32 %v3238_v38, %v7014_v31  ;;  %v3656_v20 = vmax.f32 %v3219_v19, 0.0  ;;  %v5279_v42 = vld [vmem:[#allocation2 + $0x48] sm:$0xff] }
 0x2b9   :  { %v3038_v14 = vpop.f32.mrf.mxu2 }
 0x2ba   :  { %v3039_v1 = vadd.f32 %v3038_v14, %v7014_v31  ;;  %v3697_v61 = vadd.f32 %v3696_v50, %v3645_v46  ;;  %v3657_v47 = vmax.f32 %v3239_v7, 0.0 }
 0x2bc   :  { %v3647_v54 = vmax.f32 %v3039_v1, 0.0  ;;  %v3698_v4 = vadd.f32 %v3697_v61, %v3646_v22  ;;  %v3707_v23 = vadd.f32 %v3657_v47, %v3656_v20  ;;  %v5280_v22 = vld [vmem:[#allocation2 + $0x40] sm:$0xff]  ;;  %v5285_v47 = vld [vmem:[#allocation2 + $0x28] sm:$0xff] }
 0x2bd   :  { %5171 = vmatmul.msk.f32.gmra.mxu2 %vm3733_vm2, %v7043_v59  ;;  %v3258_v45 = vpop.f32.mrf.mxu1  ;;  %v3298_v5 = vpop.f32.mrf.mxu3 }
 0x2be   :  { %v3699_v3 = vadd.f32 %v3698_v4, %v3647_v54  ;;  %v3259_v49 = vadd.f32 %v3258_v45, %v7014_v31  ;;  %v3299_v62 = vadd.f32 %v3298_v5, %v7014_v31  ;;  %v7133_v45 = vld [vmem:[%s7503_s8] sm:$0xff] }
 0x2bf   :  { %5169 = vmatmul.msk.f32.gmra.mxu1 %vm3733_vm2, %v7065_v18  ;;  %v3318_v44 = vpop.f32.mrf.mxu0  ;;  %v5286_v5 = vld [vmem:[#allocation2 + $0x20] sm:$0xff] }
 0x2c0   :  { %v3700_v17 = vadd.f32 %v3699_v3, %v3648_v16  ;;  %v3658_v27 = vmax.f32 %v3259_v49, 0.0  ;;  %v3319_v35 = vadd.f32 %v3318_v44, %v7014_v31  ;;  %v3660_v46 = vmax.f32 %v3299_v62, 0.0  ;;  %v5281_v16 = vld [vmem:[#allocation2 + $0x18] sm:$0xff]  ;;  %v7156_v62 = vld [vmem:[%s7503_s8 + $0x10] sm:$0xff] }
 0x2c1   :  { %v3118_v21 = vpop.f32.mrf.mxu2 }
 0x2c2   :  { %v3119_v36 = vadd.f32 %v3118_v21, %v7014_v31  ;;  %3848 = vmatpush.msrb.mxu3 %v3700_v17  ;;  %v3708_v12 = vadd.f32 %v3707_v23, %v3658_v27  ;;  %v3661_v0 = vmax.f32 %v3319_v35, 0.0  ;;  %v5283_v17 = vld [vmem:[#allocation2 + $0x58] sm:$0xff]  ;;  %v5287_v27 = vld [vmem:[#allocation2 + $0x68] sm:$0xff] }
 0x2c3   :  { %5174 = vmatmul.msk.f32.vlgmr.msrb.gmra.mxu3 %vm3733_vm2, %v7031_v11 }
 0x2c4   :  { %v3651_v39 = vmax.f32 %v3119_v36, 0.0 }
 0x2c5   :  { %5172 = vmatmul.msk.f32.gmra.mxu2 %vm3733_vm2, %v7055_v10  ;;  %v3338_v25 = vpop.f32.mrf.mxu1 }
 0x2c6   :  { %v3702_v53 = vadd.f32 %v3701_v34, %v3651_v39  ;;  %v3339_v50 = vadd.f32 %v3338_v25, %v7014_v31 }
 0x2c8   :  { %v3703_v33 = vadd.f32 %v3702_v53, %v3652_v29  ;;  %v3662_v61 = vmax.f32 %v3339_v50, 0.0  ;;  %v7169_v50 = vld [vmem:[%s7503_s8 + $0x18] sm:$0xff] }
 0x2c9   :  { %v3198_v52 = vpop.f32.mrf.mxu2  ;;  %v3378_v4 = vpop.f32.mrf.mxu3 }
 0x2ca   :  { %v3199_v37 = vadd.f32 %v3198_v52, %v7014_v31  ;;  %v3704_v43 = vadd.f32 %v3703_v33, %v3653_v41  ;;  %v3379_v15 = vadd.f32 %v3378_v4, %v7014_v31 }
 0x2cb   :  { %5175 = vmatmul.msk.f32.gmra.mxu3 %vm3733_vm2, %v7043_v59 }
 0x2cc   :  { %v3655_v8 = vmax.f32 %v3199_v37, 0.0  ;;  %v3705_v56 = vadd.f32 %v3704_v43, %v3654_v32  ;;  %v3398_v3 = vpop.f32.mrf.mxu0  ;;  %v3664_v21 = vmax.f32 %v3379_v15, 0.0 }
 0x2cd   :  { %5173 = vmatmul.msk.f32.gmra.mxu2 %vm3733_vm2, %v7065_v18  ;;  %v3399_v51 = vadd.f32 %v3398_v3, %v7014_v31 }
 0x2ce   :  { %v3706_v60 = vadd.f32 %v3705_v56, %v3655_v8  ;;  %v7143_v56 = vld [vmem:[%s7503_s8 + $0x8] sm:$0xff] }
 0x2cf   :  { %v3665_v30 = vmax.f32 %v3399_v51, 0.0 }
 0x2d0   :  { %3877 = vmatpush.msrb.mxu0 %v3706_v60 }
 0x2d1   :  { %v3278_v55 = vpop.f32.mrf.mxu2  ;;  %5178 = vmatmul.msk.f32.vlgmr.msrb.gmra.mxu0 %vm3733_vm2, %v7031_v11 }
 0x2d2   :  { %v3279_v13 = vadd.f32 %v3278_v55, %v7014_v31  ;;  %4004 = vmatpush.msra.mxu0 %v5277_v6  ;;  %v3418_v36 = vpop.f32.mrf.mxu1 }
 0x2d3   :  { %5176 = vmatmul.msk.f32.gmra.mxu3 %vm3733_vm2, %v7055_v10  ;;  %v3419_v39 = vadd.f32 %v3418_v36, %v7014_v31 }
 0x2d4   :  { %v3659_v63 = vmax.f32 %v3279_v13, 0.0  ;;  %4005 = vmatpush.msra.mxu0 %v5278_v48  ;;  %v5288_v13 = vld [vmem:[#allocation2 + $0x60] sm:$0xff] }
 0x2d5   :  { %v3666_v38 = vmax.f32 %v3419_v39, 0.0 }
 0x2d6   :  { %4120 = vmatpush.msrb.mxu0 %v5279_v42  ;;  %v3709_v14 = vadd.f32 %v3708_v12, %v3659_v63 }
 0x2d8   :  { %4121 = vmatpush.msrb.mxu0 %v5280_v22  ;;  %v3710_v1 = vadd.f32 %v3709_v14, %v3660_v46  ;;  %v3458_v26 = vpop.f32.mrf.mxu3 }
 0x2d9   :  { %5179 = vmatmul.msk.f32.gmra.mxu0 %vm3733_vm2, %v7043_v59  ;;  %v3459_v41 = vadd.f32 %v3458_v26, %v7014_v31 }
 0x2da   :  { %v3711_v2 = vadd.f32 %v3710_v1, %v3661_v0 }
 0x2db   :  { %5177 = vmatmul.msk.f32.gmra.mxu3 %vm3733_vm2, %v7065_v18  ;;  %v3668_v37 = vmax.f32 %v3459_v41, 0.0 }
 0x2dc   :  { %v3358_v28 = vpop.f32.mrf.mxu2  ;;  %v3712_v54 = vadd.f32 %v3711_v2, %v3662_v61  ;;  %v3478_v24 = vpop.f32.mrf.mxu0 }
 0x2dd   :  { %v3359_v9 = vadd.f32 %v3358_v28, %v7014_v31  ;;  %v3479_v52 = vadd.f32 %v3478_v24, %v7014_v31 }
 0x2de   :  { %3906 = vmatpush.msrb.mxu1 %v3712_v54 }
 0x2df   :  { %5182 = vmatmul.msk.f32.vlgmr.msrb.gmra.mxu1 %vm3733_vm2, %v7031_v11  ;;  %v3663_v57 = vmax.f32 %v3359_v9, 0.0  ;;  %v3669_v19 = vmax.f32 %v3479_v52, 0.0 }
 0x2e0   :  { %4033 = vmatpush.msra.mxu1 %v5281_v16 }
 0x2e1   :  { %5180 = vmatmul.msk.f32.gmra.mxu0 %vm3733_vm2, %v7055_v10  ;;  %v3713_v34 = vadd.f32 %v3664_v21, %v3663_v57  ;;  %v5290_v57 = vld [vmem:[#allocation2 + $0x30] sm:$0xff] }
 0x2e2   :  { %4034 = vmatpush.msra.mxu1 %v5282_v40  ;;  %v3498_v60 = vpop.f32.mrf.mxu1  ;;  %v5292_v21 = vld [vmem:[#allocation2 + $0x70] sm:$0xff] }
 0x2e3   :  { %v3714_v29 = vadd.f32 %v3713_v34, %v3665_v30  ;;  %v3499_v44 = vadd.f32 %v3498_v60, %v7014_v31 }
 0x2e4   :  { %4149 = vmatpush.msrb.mxu1 %v5283_v17  ;;  %v5291_v17 = vld [vmem:[#allocation2 + $0x78] sm:$0xff] }
 0x2e5   :  { %v3715_v7 = vadd.f32 %v3714_v29, %v3666_v38  ;;  %v3670_v25 = vmax.f32 %v3499_v44, 0.0 }
 0x2e6   :  { %4150 = vmatpush.msrb.mxu1 %v5284_v58 }
 0x2e7   :  { %5183 = vmatmul.msk.f32.gmra.mxu1 %vm3733_vm2, %v7043_v59 }
 0x2e8   :  { %v3538_v23 = vpop.f32.mrf.mxu3 }
 0x2e9   :  { %5181 = vmatmul.msk.f32.gmra.mxu0 %vm3733_vm2, %v7065_v18  ;;  %v3539_v12 = vadd.f32 %v3538_v23, %v7014_v31 }
 0x2eb   :  { %v3672_v48 = vmax.f32 %v3539_v12, 0.0  ;;  %v7286_v12 = vpop.permute.xlu0 %4233 }
 0x2ec   :  { %v3438_v53 = vpop.f32.mrf.mxu2  ;;  %v3558_v35 = vpop.f32.mrf.mxu0 }
 0x2ed   :  { %v3439_v33 = vadd.f32 %v3438_v53, %v7014_v31  ;;  %v3559_v42 = vadd.f32 %v3558_v35, %v7014_v31 }
 0x2ef   :  { %v3667_v32 = vmax.f32 %v3439_v33, 0.0  ;;  %5184 = vmatmul.msk.f32.gmra.mxu1 %vm3733_vm2, %v7055_v10  ;;  %v3673_v22 = vmax.f32 %v3559_v42, 0.0 }
 0x2f1   :  { %v3716_v43 = vadd.f32 %v3715_v7, %v3667_v32  ;;  %5194 = vmatmul.msk.f32.vlgmr.msra.gmra.mxu0 %vm129_vm0, %v7133_v45 }
 0x2f2   :  { %v3578_v46 = vpop.f32.mrf.mxu1 }
 0x2f3   :  { %v3717_v49 = vadd.f32 %v3716_v43, %v3668_v37  ;;  %v3579_v0 = vadd.f32 %v3578_v46, %v7014_v31 }
 0x2f5   :  { %v3718_v8 = vadd.f32 %v3717_v49, %v3669_v19  ;;  %v3674_v28 = vmax.f32 %v3579_v0, 0.0 }
 0x2f7   :  { %5185 = vmatmul.msk.f32.gmra.mxu1 %vm3733_vm2, %v7065_v18  ;;  %3935 = vmatpush.msrb.mxu2 %v3718_v8 }
 0x2f8   :  { %5186 = vmatmul.msk.f32.vlgmr.msrb.gmra.mxu2 %vm3733_vm2, %v7031_v11  ;;  %v3618_v1 = vpop.f32.mrf.mxu3 }
 0x2f9   :  { %5195 = vmatmul.msk.f32.gmra.mxu0 %vm129_vm0, %v7143_v56  ;;  %4062 = vmatpush.msra.mxu2 %v5285_v47  ;;  %v3619_v54 = vadd.f32 %v3618_v1, %v7014_v31  ;;  %v7276_v47 = vpop.permute.xlu1 %4243 }
 0x2fb   :  { %4063 = vmatpush.msra.mxu2 %v5286_v5  ;;  %v3676_v15 = vmax.f32 %v3619_v54, 0.0 }
 0x2fc   :  { %v3518_v20 = vpop.f32.mrf.mxu2 }
 0x2fd   :  { %4178 = vmatpush.msrb.mxu2 %v5287_v27  ;;  %v3519_v55 = vadd.f32 %v3518_v20, %v7014_v31 }
 0x2ff   :  { %4179 = vmatpush.msrb.mxu2 %v5288_v13  ;;  %v3671_v6 = vmax.f32 %v3519_v55, 0.0  ;;  %5198 = vmatmul.msk.f32.vlgmr.msra.gmra.mxu1 %vm129_vm0, %v7133_v45 }
 0x300   :  { %5187 = vmatmul.msk.f32.gmra.mxu2 %vm3733_vm2, %v7043_v59 }
 0x301   :  { %5196 = vmatmul.msk.f32.gmra.mxu0 %vm129_vm0, %v7156_v62  ;;  %v3719_v63 = vadd.f32 %v3671_v6, %v3670_v25  ;;  %v7291_v42 = vpop.permute.xlu1 %4228 }
 0x303   :  { %v3720_v14 = vadd.f32 %v3719_v63, %v3672_v48 }
 0x305   :  { %v3721_v61 = vadd.f32 %v3720_v14, %v3673_v22 }
 0x307   :  { %5199 = vmatmul.msk.f32.gmra.mxu1 %vm129_vm0, %v7143_v56  ;;  %v3722_v16 = vadd.f32 %v3721_v61, %v3674_v28 }
 0x308   :  { %5188 = vmatmul.msk.f32.gmra.mxu2 %vm3733_vm2, %v7055_v10 }
 0x309   :  { %5197 = vmatmul.msk.f32.gmra.mxu0 %vm129_vm0, %v7169_v50 }
 0x30c   :  { %v3598_v2 = vpop.f32.mrf.mxu2 }
 0x30d   :  { %v3599_v4 = vadd.f32 %v3598_v2, %v7014_v31  ;;  %v5289_v31 = vld [vmem:[#allocation2 + $0x38] sm:$0xff]  ;;  %v7299_v2 = vld [vmem:[%s7506_s11] sm:$0xff] }
 0x30f   :  { %v3675_v9 = vmax.f32 %v3599_v4, 0.0  ;;  %5200 = vmatmul.msk.f32.gmra.mxu1 %vm129_vm0, %v7156_v62 }
 0x310   :  { %5189 = vmatmul.msk.f32.gmra.mxu2 %vm3733_vm2, %v7065_v18 }
 0x311   :  { %v3723_v3 = vadd.f32 %v3722_v16, %v3675_v9  ;;  %5210 = vmatmul.msk.f32.vlgmr.msrb.gmra.mxu0 %vm129_vm0, %v7133_v45 }
 0x313   :  { %v3724_v40 = vadd.f32 %v3723_v3, %v3676_v15 }
 0x315   :  { %3964 = vmatpush.msra.mxu3 %v3724_v40 }
 0x316   :  { %5190 = vmatmul.msk.f32.vlgmr.msra.gmra.mxu3 %vm3733_vm2, %v7031_v11  ;;  %v3763_v11 = vpop.f32.mrf.mxu0 }
 0x317   :  { %5201 = vmatmul.msk.f32.gmra.mxu1 %vm129_vm0, %v7169_v50  ;;  %4091 = vmatpush.msrb.mxu3 %v5289_v31 }
 0x318   :  { %5202 = vmatmul.msk.f32.vlgmr.msra.gmra.mxu2 %vm129_vm0, %v7133_v45 }
 0x319   :  { %5211 = vmatmul.msk.f32.gmra.mxu0 %vm129_vm0, %v7143_v56  ;;  %4092 = vmatpush.msrb.mxu3 %v5290_v57 }
 0x31b   :  { %4207 = vmatpush.msra.mxu3 %v5291_v17 }
 0x31d   :  { %4208 = vmatpush.msra.mxu3 %v5292_v21 }
 0x31e   :  { %5191 = vmatmul.msk.f32.gmra.mxu3 %vm3733_vm2, %v7043_v59  ;;  %v3766_v59 = vpop.f32.mrf.mxu0 }
 0x31f   :  { %5214 = vmatmul.msk.f32.vlgmr.msrb.gmra.mxu1 %vm129_vm0, %v7133_v45 }
 0x320   :  { %5203 = vmatmul.msk.f32.gmra.mxu2 %vm129_vm0, %v7143_v56 }
 0x321   :  { %5212 = vmatmul.msk.f32.gmra.mxu0 %vm129_vm0, %v7156_v62 }
 0x326   :  { %5192 = vmatmul.msk.f32.gmra.mxu3 %vm3733_vm2, %v7055_v10  ;;  %v7216_v10 = vpop.f32.mrf.mxu1  ;;  %v3769_v51 = vpop.f32.mrf.mxu0 }
 0x327   :  { %5215 = vmatmul.msk.f32.gmra.mxu1 %vm129_vm0, %v7143_v56 }
 0x328   :  { %5204 = vmatmul.msk.f32.gmra.mxu2 %vm129_vm0, %v7156_v62 }
 0x329   :  { %5213 = vmatmul.msk.f32.gmra.mxu0 %vm129_vm0, %v7169_v50 }
 0x32e   :  { %5193 = vmatmul.msk.f32.gmra.mxu3 %vm3733_vm2, %v7065_v18  ;;  %v7226_v18 = vpop.f32.mrf.mxu1  ;;  %v3772_v58 = vpop.f32.mrf.mxu0 }
 0x32f   :  { %5216 = vmatmul.msk.f32.gmra.mxu1 %vm129_vm0, %v7156_v62 }
 0x330   :  { %5205 = vmatmul.msk.f32.gmra.mxu2 %vm129_vm0, %v7169_v50 }
 0x336   :  { %5206 = vmatmul.msk.f32.vlgmr.msrb.gmra.mxu3 %vm129_vm0, %v7133_v45  ;;  %v3798_v36 = vpop.f32.mrf.mxu1 }
 0x337   :  { %5217 = vmatmul.msk.f32.gmra.mxu1 %vm129_vm0, %v7169_v50 }
 0x338   :  { %5218 = vmatmul.msk.f32.vlgmr.msrb.gmra.mxu2 %vm129_vm0, %v7133_v45  ;;  %v7240_v39 = vpop.f32.mrf.mxu2 }
 0x33e   :  { %5207 = vmatmul.msk.f32.gmra.mxu3 %vm129_vm0, %v7143_v56  ;;  %v3801_v30 = vpop.f32.mrf.mxu1 }
 0x340   :  { %5219 = vmatmul.msk.f32.gmra.mxu2 %vm129_vm0, %v7143_v56  ;;  %v7248_v24 = vpop.f32.mrf.mxu2 }
 0x346   :  { %5208 = vmatmul.msk.f32.gmra.mxu3 %vm129_vm0, %v7156_v62  ;;  %v7268_v7 = vpop.f32.mrf.mxu3 }
 0x348   :  { %5220 = vmatmul.msk.f32.gmra.mxu2 %vm129_vm0, %v7156_v62  ;;  %v7260_v33 = vpop.f32.mrf.mxu2 }
 0x34e   :  { %v7234_v34 = vpop.f32.mrf.mxu0  ;;  %5209 = vmatmul.msk.f32.gmra.mxu3 %vm129_vm0, %v7169_v50  ;;  %v7274_v49 = vpop.f32.mrf.mxu3 }
 0x350   :  { %5221 = vmatmul.msk.f32.gmra.mxu2 %vm129_vm0, %v7169_v50  ;;  %v7266_v32 = vpop.f32.mrf.mxu2 }
 0x356   :  { %v7242_v26 = vpop.f32.mrf.mxu0  ;;  %5222 = vmatmul.msk.f32.vlgmr.msra.gmra.mxu3 %vm129_vm0, %v7133_v45  ;;  %v7280_v27 = vpop.f32.mrf.mxu3 }
 0x35c   :  { %v7246_v29 = vpop.f32.mrf.mxu1 }
 0x35e   :  { %v7250_v53 = vpop.f32.mrf.mxu0  ;;  %5223 = vmatmul.msk.f32.gmra.mxu3 %vm129_vm0, %v7143_v56  ;;  %v7294_v1 = vpop.f32.mrf.mxu3 }
 0x364   :  { %v7254_v38 = vpop.f32.mrf.mxu1 }
 0x366   :  { %v7256_v41 = vpop.f32.mrf.mxu0  ;;  %5224 = vmatmul.msk.f32.gmra.mxu3 %vm129_vm0, %v7156_v62  ;;  %v7282_v62 = vpop.permute.xlu2 %4238 }
 0x36c   :  { %v7262_v52 = vpop.f32.mrf.mxu1 }
 0x36e   :  { %v4007_v45 = vpop.f32.mrf.mxu0  ;;  %5225 = vmatmul.msk.f32.gmra.mxu3 %vm129_vm0, %v7169_v50 }
 0x36f   :  { %v4008_v13 = vadd.f32 %v4007_v45, %v3763_v11  ;;  %v7315_v11 = vld [vmem:[%s7506_s11 + $0x8] sm:$0xff] }
 0x371   :  { %v4246_v50 = vadd.f32 %v7291_v42, %v4008_v13 }
 0x373   :  { %v4278_v61 = vmax.f32 %v4246_v50, 0.0 }
 0x374   :  { %v7270_v37 = vpop.f32.mrf.mxu1 }
 0x376   :  { %v4010_v43 = vpop.f32.mrf.mxu0 }
 0x377   :  { %v4011_v55 = vadd.f32 %v4010_v43, %v3766_v59 }
 0x379   :  { %v4254_v35 = vadd.f32 %v7286_v12, %v4011_v55 }
 0x37b   :  { %v7272_v19 = vpop.f32.mrf.mxu2  ;;  %v4286_v0 = vmax.f32 %v4254_v35, 0.0 }
 0x37c   :  { %v4036_v8 = vpop.f32.mrf.mxu1 }
 0x37d   :  { %v4037_v3 = vadd.f32 %v4036_v8, %v7216_v10 }
 0x37e   :  { %v4013_v56 = vpop.f32.mrf.mxu0 }
 0x37f   :  { %v4014_v20 = vadd.f32 %v4013_v56, %v3769_v51  ;;  %v4247_v59 = vadd.f32 %v7291_v42, %v4037_v3 }
 0x381   :  { %v4262_v6 = vadd.f32 %v7282_v62, %v4014_v20 }
 0x383   :  { %v7278_v60 = vpop.f32.mrf.mxu2  ;;  %v4294_v14 = vmax.f32 %v4262_v6, 0.0 }
 0x384   :  { %v4039_v5 = vpop.f32.mrf.mxu1 }
 0x385   :  { %v4040_v9 = vadd.f32 %v4039_v5, %v7226_v18 }
 0x386   :  { %v4016_v44 = vpop.f32.mrf.mxu0 }
 0x387   :  { %v4017_v23 = vadd.f32 %v4016_v44, %v3772_v58  ;;  %v4255_v57 = vadd.f32 %v7286_v12, %v4040_v9 }
 0x389   :  { %v4270_v25 = vadd.f32 %v7276_v47, %v4017_v23  ;;  %v4287_v58 = vmax.f32 %v4255_v57, 0.0 }
 0x38b   :  { %v4302_v63 = vmax.f32 %v4270_v25, 0.0  ;;  %v7289_v48 = vpop.f32.mrf.mxu2 }
 0x38c   :  { %v4042_v46 = vpop.f32.mrf.mxu1 }
 0x38d   :  { %4342 = vmatpush.msra.mxu0 %v4302_v63  ;;  %v4043_v28 = vadd.f32 %v4042_v46, %v3798_v36 }
 0x38e   :  { %v4123_v22 = vpop.f32.mrf.mxu0 }
 0x38f   :  { %4343 = vmatpush.msra.mxu0 %v4294_v14  ;;  %v4263_v40 = vadd.f32 %v7282_v62, %v4043_v28  ;;  %v4124_v55 = vadd.f32 %v4123_v22, %v7234_v34 }
 0x391   :  { %4344 = vmatpush.msra.mxu0 %v4286_v0  ;;  %v4295_v51 = vmax.f32 %v4263_v40, 0.0 }
 0x393   :  { %v7301_v54 = vpop.f32.mrf.mxu2  ;;  %4345 = vmatpush.msra.mxu0 %v4278_v61 }
 0x394   :  { %v4045_v4 = vpop.f32.mrf.mxu1  ;;  %5226 = vmatmul.msk.f32.vlgmr.msra.gmra.mxu0 %vm1084_vm1, %v7299_v2 }
 0x395   :  { %v4046_v16 = vadd.f32 %v4045_v4, %v3801_v30  ;;  %v4279_v30 = vmax.f32 %v4247_v59, 0.0 }
 0x396   :  { %v4126_v15 = vpop.f32.mrf.mxu0 }
 0x397   :  { %v4271_v31 = vadd.f32 %v7276_v47, %v4046_v16  ;;  %v4127_v20 = vadd.f32 %v4126_v15, %v7242_v26  ;;  %v4250_v26 = vadd.f32 %v7291_v42, %v4124_v55 }
 0x399   :  { %v4303_v17 = vmax.f32 %v4271_v31, 0.0  ;;  %v7310_v21 = vpop.f32.mrf.mxu3  ;;  %v4258_v25 = vadd.f32 %v7286_v12, %v4127_v20  ;;  %v4282_v34 = vmax.f32 %v4250_v26, 0.0 }
 0x39b   :  { %v4065_v18 = vpop.f32.mrf.mxu2  ;;  %4365 = vmatpush.msra.mxu1 %v4303_v17 }
 0x39c   :  { %v4152_v10 = vpop.f32.mrf.mxu1  ;;  %5227 = vmatmul.msk.f32.gmra.mxu0 %vm1084_vm1, %v7315_v11  ;;  %v4066_v15 = vadd.f32 %v4065_v18, %v7240_v39 }
 0x39d   :  { %4366 = vmatpush.msra.mxu1 %v4295_v51  ;;  %v4153_v3 = vadd.f32 %v4152_v10, %v7246_v29 }
 0x39e   :  { %v4129_v36 = vpop.f32.mrf.mxu0 }
 0x39f   :  { %4367 = vmatpush.msra.mxu1 %v4287_v58  ;;  %v4130_v56 = vadd.f32 %v4129_v36, %v7250_v53  ;;  %v4251_v59 = vadd.f32 %v7291_v42, %v4153_v3 }
 0x3a1   :  { %v7320_v45 = vpop.f32.mrf.mxu3  ;;  %4368 = vmatpush.msra.mxu1 %v4279_v30  ;;  %v4266_v23 = vadd.f32 %v7282_v62, %v4130_v56  ;;  %v4283_v36 = vmax.f32 %v4251_v59, 0.0 }
 0x3a2   :  { %5228 = vmatmul.msk.f32.vlgmr.msra.gmra.mxu1 %vm1084_vm1, %v7299_v2 }
 0x3a3   :  { %v4068_v43 = vpop.f32.mrf.mxu2  ;;  %v4298_v46 = vmax.f32 %v4266_v23, 0.0 }
 0x3a4   :  { %v4155_v8 = vpop.f32.mrf.mxu1  ;;  %v4069_v61 = vadd.f32 %v4068_v43, %v7248_v24 }
 0x3a5   :  { %v4156_v9 = vadd.f32 %v4155_v8, %v7254_v38 }
 0x3a6   :  { %v4132_v5 = vpop.f32.mrf.mxu0  ;;  %v4256_v40 = vadd.f32 %v7286_v12, %v4069_v61 }
 0x3a7   :  { %v4133_v44 = vadd.f32 %v4132_v5, %v7256_v41  ;;  %v4290_v41 = vmax.f32 %v4258_v25, 0.0  ;;  %v4259_v57 = vadd.f32 %v7286_v12, %v4156_v9 }
 0x3a8   :  { %v4288_v29 = vmax.f32 %v4256_v40, 0.0 }
 0x3a9   :  { %v4274_v13 = vadd.f32 %v7276_v47, %v4133_v44  ;;  %v7330_v6 = vpop.f32.mrf.mxu3  ;;  %v4291_v10 = vmax.f32 %v4259_v57, 0.0 }
 0x3aa   :  { %5229 = vmatmul.msk.f32.gmra.mxu1 %vm1084_vm1, %v7315_v11 }
 0x3ab   :  { %v4306_v35 = vmax.f32 %v4274_v13, 0.0  ;;  %v4071_v53 = vpop.f32.mrf.mxu2 }
 0x3ac   :  { %v4158_v63 = vpop.f32.mrf.mxu1  ;;  %v4072_v14 = vadd.f32 %v4071_v53, %v7260_v33 }
 0x3ad   :  { %4434 = vmatpush.msrb.mxu0 %v4306_v35  ;;  %v4159_v22 = vadd.f32 %v4158_v63, %v7262_v52 }
 0x3ae   :  { %v4264_v33 = vadd.f32 %v7282_v62, %v4072_v14 }
 0x3af   :  { %4435 = vmatpush.msrb.mxu0 %v4298_v46  ;;  %v4267_v24 = vadd.f32 %v7282_v62, %v4159_v22 }
 0x3b0   :  { %v4296_v39 = vmax.f32 %v4264_v33, 0.0 }
 0x3b1   :  { %v7336_v50 = vpop.f32.mrf.mxu3  ;;  %4436 = vmatpush.msrb.mxu0 %v4290_v41  ;;  %v4299_v51 = vmax.f32 %v4267_v24, 0.0 }
 0x3b3   :  { %v4074_v0 = vpop.f32.mrf.mxu2  ;;  %4437 = vmatpush.msrb.mxu0 %v4282_v34 }
 0x3b4   :  { %v4075_v28 = vadd.f32 %v4074_v0, %v7266_v32  ;;  %v4161_v4 = vpop.f32.mrf.mxu1  ;;  %5234 = vmatmul.msk.f32.vlgmr.msrb.gmra.mxu0 %vm1084_vm1, %v7299_v2 }
 0x3b5   :  { %v4162_v16 = vadd.f32 %v4161_v4, %v7270_v37  ;;  %v4248_v37 = vadd.f32 %v7291_v42, %v4066_v15 }
 0x3b6   :  { %v4272_v52 = vadd.f32 %v7276_v47, %v4075_v28 }
 0x3b7   :  { %v4275_v32 = vadd.f32 %v7276_v47, %v4162_v16  ;;  %v4280_v58 = vmax.f32 %v4248_v37, 0.0 }
 0x3b8   :  { %v4304_v31 = vmax.f32 %v4272_v52, 0.0 }
 0x3b9   :  { %v4307_v38 = vmax.f32 %v4275_v32, 0.0  ;;  %v4094_v17 = vpop.f32.mrf.mxu3 }
 0x3ba   :  { %4388 = vmatpush.msra.mxu2 %v4304_v31  ;;  %v4095_v13 = vadd.f32 %v4094_v17, %v7268_v7 }
 0x3bb   :  { %v4181_v18 = vpop.f32.mrf.mxu2  ;;  %4457 = vmatpush.msrb.mxu1 %v4307_v38 }
 0x3bc   :  { %4389 = vmatpush.msra.mxu2 %v4296_v39  ;;  %5235 = vmatmul.msk.f32.gmra.mxu0 %vm1084_vm1, %v7315_v11  ;;  %v4249_v7 = vadd.f32 %v7291_v42, %v4095_v13 }
 0x3bd   :  { %4458 = vmatpush.msrb.mxu1 %v4299_v51 }
 0x3be   :  { %4390 = vmatpush.msra.mxu2 %v4288_v29 }
 0x3bf   :  { %4459 = vmatpush.msrb.mxu1 %v4291_v10 }
 0x3c0   :  { %4391 = vmatpush.msra.mxu2 %v4280_v58 }
 0x3c1   :  { %v4097_v30 = vpop.f32.mrf.mxu3  ;;  %5230 = vmatmul.msk.f32.vlgmr.msra.gmra.mxu2 %vm1084_vm1, %v7299_v2  ;;  %4460 = vmatpush.msrb.mxu1 %v4283_v36 }
 0x3c2   :  { %5236 = vmatmul.msk.f32.vlgmr.msrb.gmra.mxu1 %vm1084_vm1, %v7299_v2  ;;  %v4098_v44 = vadd.f32 %v4097_v30, %v7274_v49 }
 0x3c3   :  { %v4184_v43 = vpop.f32.mrf.mxu2 }
 0x3c4   :  { %v4185_v35 = vadd.f32 %v4184_v43, %v7278_v60  ;;  %v4257_v46 = vadd.f32 %v7286_v12, %v4098_v44 }
 0x3c6   :  { %v4260_v41 = vadd.f32 %v7286_v12, %v4185_v35 }
 0x3c8   :  { %v4292_v61 = vmax.f32 %v4260_v41, 0.0 }
 0x3c9   :  { %v4100_v8 = vpop.f32.mrf.mxu3  ;;  %5231 = vmatmul.msk.f32.gmra.mxu2 %vm1084_vm1, %v7315_v11 }
 0x3ca   :  { %5237 = vmatmul.msk.f32.gmra.mxu1 %vm1084_vm1, %v7315_v11  ;;  %v4101_v5 = vadd.f32 %v4100_v8, %v7280_v27  ;;  %v4182_v27 = vadd.f32 %v4181_v18, %v7272_v19  ;;  %v4281_v19 = vmax.f32 %v4249_v7, 0.0 }
 0x3cb   :  { %v4187_v56 = vpop.f32.mrf.mxu2 }
 0x3cc   :  { %v4188_v55 = vadd.f32 %v4187_v56, %v7289_v48  ;;  %v4265_v53 = vadd.f32 %v7282_v62, %v4101_v5  ;;  %v4252_v22 = vadd.f32 %v7291_v42, %v4182_v27 }
 0x3ce   :  { %v4268_v49 = vadd.f32 %v7282_v62, %v4188_v55  ;;  %v4297_v60 = vmax.f32 %v4265_v53, 0.0  ;;  %v4284_v28 = vmax.f32 %v4252_v22, 0.0 }
 0x3d0   :  { %v4300_v0 = vmax.f32 %v4268_v49, 0.0 }
 0x3d1   :  { %v4103_v20 = vpop.f32.mrf.mxu3 }
 0x3d2   :  { %v4104_v23 = vadd.f32 %v4103_v20, %v7294_v1 }
 0x3d3   :  { %v4190_v25 = vpop.f32.mrf.mxu2 }
 0x3d4   :  { %v4273_v63 = vadd.f32 %v7276_v47, %v4104_v23  ;;  %v4191_v26 = vadd.f32 %v4190_v25, %v7301_v54  ;;  %v4289_v54 = vmax.f32 %v4257_v46, 0.0 }
 0x3d6   :  { %v4305_v48 = vmax.f32 %v4273_v63, 0.0  ;;  %v4276_v1 = vadd.f32 %v7276_v47, %v4191_v26 }
 0x3d8   :  { %v4308_v34 = vmax.f32 %v4276_v1, 0.0  ;;  %4411 = vmatpush.msrb.mxu3 %v4305_v48 }
 0x3d9   :  { %v4210_v14 = vpop.f32.mrf.mxu3 }
 0x3da   :  { %4412 = vmatpush.msrb.mxu3 %v4297_v60  ;;  %4480 = vmatpush.msrb.mxu2 %v4308_v34  ;;  %v4211_v3 = vadd.f32 %v4210_v14, %v7310_v21 }
 0x3dc   :  { %4413 = vmatpush.msrb.mxu3 %v4289_v54  ;;  %4481 = vmatpush.msrb.mxu2 %v4300_v0  ;;  %v4253_v57 = vadd.f32 %v7291_v42, %v4211_v3 }
 0x3de   :  { %4414 = vmatpush.msrb.mxu3 %v4281_v19  ;;  %4482 = vmatpush.msrb.mxu2 %v4292_v61 }
 0x3df   :  { %5232 = vmatmul.msk.f32.vlgmr.msrb.gmra.mxu3 %vm1084_vm1, %v7299_v2 }
 0x3e0   :  { %4483 = vmatpush.msrb.mxu2 %v4284_v28 }
 0x3e1   :  { %v4213_v4 = vpop.f32.mrf.mxu3  ;;  %5238 = vmatmul.msk.f32.vlgmr.msrb.gmra.mxu2 %vm1084_vm1, %v7299_v2 }
 0x3e2   :  { %v4214_v33 = vadd.f32 %v4213_v4, %v7320_v45 }
 0x3e4   :  { %v4261_v40 = vadd.f32 %v7286_v12, %v4214_v33  ;;  %v7404_v12 = vpop.permute.xlu2 %4321 }
 0x3e6   :  { %v4293_v17 = vmax.f32 %v4261_v40, 0.0 }
 0x3e7   :  { %5233 = vmatmul.msk.f32.gmra.mxu3 %vm1084_vm1, %v7315_v11 }
 0x3e9   :  { %v4216_v9 = vpop.f32.mrf.mxu3  ;;  %5239 = vmatmul.msk.f32.gmra.mxu2 %vm1084_vm1, %v7315_v11 }
 0x3ea   :  { %v4217_v16 = vadd.f32 %v4216_v9, %v7330_v6  ;;  %v4285_v6 = vmax.f32 %v4253_v57, 0.0  ;;  %v4542_v57 = vpop.permute.xlu1 %4541 }
 0x3ec   :  { %v4269_v24 = vadd.f32 %v7282_v62, %v4217_v16 }
 0x3ee   :  { %v4301_v38 = vmax.f32 %v4269_v24, 0.0 }
 0x3f1   :  { %v4219_v15 = vpop.f32.mrf.mxu3 }
 0x3f2   :  { %v4220_v52 = vadd.f32 %v4219_v15, %v7336_v50 }
 0x3f4   :  { %v4277_v32 = vadd.f32 %v7276_v47, %v4220_v52  ;;  %v7402_v47 = vpop.permute.xlu0 %4316 }
 0x3f6   :  { %v4309_v31 = vmax.f32 %v4277_v32, 0.0 }
 0x3f8   :  { %4503 = vmatpush.msra.mxu3 %v4309_v31 }
 0x3fa   :  { %4504 = vmatpush.msra.mxu3 %v4301_v38  ;;  %v4537_v38 = vpop.permute.xlu2 %4536 }
 0x3fc   :  { %4505 = vmatpush.msra.mxu3 %v4293_v17 }
 0x3fe   :  { %4506 = vmatpush.msra.mxu3 %v4285_v6 }
 0x3ff   :  { %5240 = vmatmul.msk.f32.vlgmr.msra.gmra.mxu3 %vm1084_vm1, %v7299_v2  ;;  %v7411_v2 = vld [vmem:[%s7508_s13] sm:$0xff] }
 0x407   :  { %5241 = vmatmul.msk.f32.gmra.mxu3 %vm1084_vm1, %v7315_v11  ;;  %v7418_v11 = vld [vmem:[%s7508_s13 + $0x8] sm:$0xff] }
 0x411   :  { %v4347_v62 = vpop.f32.mrf.mxu0 }
 0x412   :  { %v4348_v42 = vadd.f32 %v4347_v62, %v7402_v47 }
 0x414   :  { %v4514_v37 = vmax.f32 %v4348_v42, 0.0 }
 0x419   :  { %v4350_v21 = vpop.f32.mrf.mxu0 }
 0x41a   :  { %v4351_v45 = vadd.f32 %v4350_v21, %v7404_v12 }
 0x41c   :  { %v4522_v50 = vmax.f32 %v4351_v45, 0.0 }
 0x41e   :  { %4564 = vmatpush.msra.mxu0 %v4522_v50 }
 0x41f   :  { %v4370_v39 = vpop.f32.mrf.mxu1 }
 0x420   :  { %4565 = vmatpush.msra.mxu0 %v4514_v37  ;;  %v4371_v51 = vadd.f32 %v4370_v39, %v7402_v47 }
 0x421   :  { %5242 = vmatmul.msk.f32.vlgmr.msra.gmra.mxu0 %vm129_vm0, %v7411_v2 }
 0x422   :  { %v4515_v10 = vmax.f32 %v4371_v51, 0.0 }
 0x427   :  { %v4373_v59 = vpop.f32.mrf.mxu1 }
 0x428   :  { %v4374_v18 = vadd.f32 %v4373_v59, %v7404_v12 }
 0x429   :  { %5243 = vmatmul.msk.f32.gmra.mxu0 %vm129_vm0, %v7418_v11 }
 0x42a   :  { %v4523_v29 = vmax.f32 %v4374_v18, 0.0 }
 0x42c   :  { %4587 = vmatpush.msra.mxu1 %v4523_v29 }
 0x42e   :  { %4588 = vmatpush.msra.mxu1 %v4515_v10 }
 0x42f   :  { %5244 = vmatmul.msk.f32.vlgmr.msra.gmra.mxu1 %vm129_vm0, %v7411_v2 }
 0x431   :  { %v4439_v58 = vpop.f32.mrf.mxu0 }
 0x432   :  { %v4440_v30 = vadd.f32 %v4439_v58, %v7402_v47 }
 0x434   :  { %v4518_v56 = vmax.f32 %v4440_v30, 0.0 }
 0x437   :  { %5245 = vmatmul.msk.f32.gmra.mxu1 %vm129_vm0, %v7418_v11 }
 0x439   :  { %v4442_v36 = vpop.f32.mrf.mxu0 }
 0x43a   :  { %v4443_v43 = vadd.f32 %v4442_v36, %v7404_v12 }
 0x43c   :  { %v4526_v8 = vmax.f32 %v4443_v43, 0.0 }
 0x43e   :  { %4656 = vmatpush.msrb.mxu0 %v4526_v8 }
 0x43f   :  { %v4462_v5 = vpop.f32.mrf.mxu1 }
 0x440   :  { %4657 = vmatpush.msrb.mxu0 %v4518_v56  ;;  %v4463_v55 = vadd.f32 %v4462_v5, %v7402_v47 }
 0x441   :  { %5250 = vmatmul.msk.f32.vlgmr.msrb.gmra.mxu0 %vm129_vm0, %v7411_v2 }
 0x442   :  { %v4519_v25 = vmax.f32 %v4463_v55, 0.0 }
 0x444   :  { %v4393_v20 = vpop.f32.mrf.mxu2 }
 0x445   :  { %v4394_v53 = vadd.f32 %v4393_v20, %v7402_v47 }
 0x447   :  { %v4465_v44 = vpop.f32.mrf.mxu1  ;;  %v4516_v27 = vmax.f32 %v4394_v53, 0.0 }
 0x448   :  { %v4466_v23 = vadd.f32 %v4465_v44, %v7404_v12 }
 0x449   :  { %5251 = vmatmul.msk.f32.gmra.mxu0 %vm129_vm0, %v7418_v11 }
 0x44a   :  { %v4527_v13 = vmax.f32 %v4466_v23, 0.0 }
 0x44c   :  { %v4396_v35 = vpop.f32.mrf.mxu2  ;;  %4679 = vmatpush.msrb.mxu1 %v4527_v13 }
 0x44d   :  { %v4397_v63 = vadd.f32 %v4396_v35, %v7404_v12 }
 0x44e   :  { %4680 = vmatpush.msrb.mxu1 %v4519_v25 }
 0x44f   :  { %v4524_v26 = vmax.f32 %v4397_v63, 0.0  ;;  %5252 = vmatmul.msk.f32.vlgmr.msrb.gmra.mxu1 %vm129_vm0, %v7411_v2 }
 0x451   :  { %4610 = vmatpush.msra.mxu2 %v4524_v26 }
 0x453   :  { %4611 = vmatpush.msra.mxu2 %v4516_v27 }
 0x454   :  { %5246 = vmatmul.msk.f32.vlgmr.msra.gmra.mxu2 %vm129_vm0, %v7411_v2 }
 0x457   :  { %5253 = vmatmul.msk.f32.gmra.mxu1 %vm129_vm0, %v7418_v11 }
 0x45c   :  { %5247 = vmatmul.msk.f32.gmra.mxu2 %vm129_vm0, %v7418_v11 }
 0x462   :  { %v4416_v46 = vpop.f32.mrf.mxu3 }
 0x463   :  { %v4417_v1 = vadd.f32 %v4416_v46, %v7402_v47 }
 0x464   :  { %v4485_v49 = vpop.f32.mrf.mxu2 }
 0x465   :  { %v4486_v60 = vadd.f32 %v4485_v49, %v7402_v47  ;;  %v4517_v22 = vmax.f32 %v4417_v1, 0.0 }
 0x467   :  { %v4520_v0 = vmax.f32 %v4486_v60, 0.0 }
 0x46a   :  { %v4419_v48 = vpop.f32.mrf.mxu3 }
 0x46b   :  { %v4420_v7 = vadd.f32 %v4419_v48, %v7404_v12 }
 0x46c   :  { %v4488_v41 = vpop.f32.mrf.mxu2 }
 0x46d   :  { %v4525_v34 = vmax.f32 %v4420_v7, 0.0  ;;  %v4489_v14 = vadd.f32 %v4488_v41, %v7404_v12 }
 0x46f   :  { %v4528_v54 = vmax.f32 %v4489_v14, 0.0  ;;  %4633 = vmatpush.msrb.mxu3 %v4525_v34 }
 0x471   :  { %4634 = vmatpush.msrb.mxu3 %v4517_v22  ;;  %4702 = vmatpush.msrb.mxu2 %v4528_v54 }
 0x472   :  { %5248 = vmatmul.msk.f32.vlgmr.msrb.gmra.mxu3 %vm129_vm0, %v7411_v2 }
 0x473   :  { %4703 = vmatpush.msrb.mxu2 %v4520_v0 }
 0x474   :  { %5254 = vmatmul.msk.f32.vlgmr.msrb.gmra.mxu2 %vm129_vm0, %v7411_v2 }
 0x47a   :  { %5249 = vmatmul.msk.f32.gmra.mxu3 %vm129_vm0, %v7418_v11 }
 0x47c   :  { %5255 = vmatmul.msk.f32.gmra.mxu2 %vm129_vm0, %v7418_v11 }
 0x482   :  { %v4508_v19 = vpop.f32.mrf.mxu3 }
 0x483   :  { %v4509_v28 = vadd.f32 %v4508_v19, %v7402_v47 }
 0x485   :  { %v4521_v16 = vmax.f32 %v4509_v28, 0.0 }
 0x48a   :  { %v4511_v61 = vpop.f32.mrf.mxu3 }
 0x48b   :  { %v4512_v4 = vadd.f32 %v4511_v61, %v7404_v12 }
 0x48d   :  { %v4529_v9 = vmax.f32 %v4512_v4, 0.0 }
 0x48f   :  { %4725 = vmatpush.msra.mxu3 %v4529_v9 }
 0x491   :  { %4726 = vmatpush.msra.mxu3 %v4521_v16 }
 0x492   :  { %5256 = vmatmul.msk.f32.vlgmr.msra.gmra.mxu3 %vm129_vm0, %v7411_v2 }
 0x49a   :  { %5257 = vmatmul.msk.f32.gmra.mxu3 %vm129_vm0, %v7418_v11 }
 0x49e   :  { %v4567_v15 = vpop.f32.mrf.mxu0 }
 0x49f   :  { %v4568_v42 = vadd.f32 %v4567_v15, %v4537_v38  ;;  %v4764_v15 = vld [vmem:[%s7510_s15] sm:$0xff] }
 0x4a1   :  { %v4734_v29 = vmax.f32 %v4568_v42, 0.0 }
 0x4a6   :  { %v4570_v3 = vpop.f32.mrf.mxu0 }
 0x4a7   :  { %v4571_v47 = vadd.f32 %v4570_v3, %v4542_v57  ;;  %v4767_v3 = vld [vmem:[%s7510_s15 + $0x18] sm:$0xff] }
 0x4a9   :  { %v4742_v39 = vmax.f32 %v4571_v47, 0.0 }
 0x4ac   :  { %v4590_v33 = vpop.f32.mrf.mxu1 }
 0x4ad   :  { %v4591_v12 = vadd.f32 %v4590_v33, %v4537_v38  ;;  %v4765_v33 = vld [vmem:[%s7510_s15 + $0x8] sm:$0xff] }
 0x4af   :  { %v4735_v11 = vmax.f32 %v4591_v12, 0.0 }
 0x4b1   :  { %v4750_v30 = vadd.f32 %v4735_v11, %v4734_v29 }
 0x4b4   :  { %v4593_v32 = vpop.f32.mrf.mxu1 }
 0x4b5   :  { %v4594_v17 = vadd.f32 %v4593_v32, %v4542_v57 }
 0x4b7   :  { %v4743_v45 = vmax.f32 %v4594_v17, 0.0 }
 0x4b9   :  { %v4751_v10 = vadd.f32 %v4743_v45, %v4742_v39  ;;  %v4838_v39 = vld [vmem:[%s7512_s17 + $0x8] sm:$0xff] }
 0x4be   :  { %v4659_v40 = vpop.f32.mrf.mxu0 }
 0x4bf   :  { %v4660_v20 = vadd.f32 %v4659_v40, %v4537_v38 }
 0x4c1   :  { %v4738_v63 = vmax.f32 %v4660_v20, 0.0 }
 0x4c6   :  { %v4662_v18 = vpop.f32.mrf.mxu0 }
 0x4c7   :  { %v4663_v43 = vadd.f32 %v4662_v18, %v4542_v57 }
 0x4c9   :  { %v4746_v13 = vmax.f32 %v4663_v43, 0.0 }
 0x4cc   :  { %v4682_v6 = vpop.f32.mrf.mxu1 }
 0x4cd   :  { %v4683_v26 = vadd.f32 %v4682_v6, %v4537_v38 }
 0x4cf   :  { %v4739_v1 = vmax.f32 %v4683_v26, 0.0 }
 0x4d4   :  { %v4685_v5 = vpop.f32.mrf.mxu1 }
 0x4d5   :  { %v4686_v25 = vadd.f32 %v4685_v5, %v4542_v57 }
 0x4d7   :  { %v4613_v52 = vpop.f32.mrf.mxu2  ;;  %v4747_v46 = vmax.f32 %v4686_v25, 0.0 }
 0x4d8   :  { %v4614_v50 = vadd.f32 %v4613_v52, %v4537_v38  ;;  %v4766_v52 = vld [vmem:[%s7510_s15 + $0x10] sm:$0xff] }
 0x4da   :  { %v4736_v58 = vmax.f32 %v4614_v50, 0.0 }
 0x4dc   :  { %v4752_v44 = vadd.f32 %v4750_v30, %v4736_v58  ;;  %v4882_v30 = vld [vmem:[%s7514_s19] sm:$0xf] }
 0x4df   :  { %v4616_v31 = vpop.f32.mrf.mxu2 }
 0x4e0   :  { %v4617_v21 = vadd.f32 %v4616_v31, %v4542_v57  ;;  %v4790_v31 = vpop.permute.xlu0 %4789 }
 0x4e2   :  { %v4744_v59 = vmax.f32 %v4617_v21, 0.0 }
 0x4e4   :  { %v4753_v8 = vadd.f32 %v4751_v10, %v4744_v59 }
 0x4e8   :  { %v4775_v21 = vpop.permute.xlu0 %4774 }
 0x4f0   :  { %v4887_v43 = vpop.permute.xlu0 %4886 }
 0x4f5   :  { %v4636_v24 = vpop.f32.mrf.mxu3 }
 0x4f6   :  { %v4637_v51 = vadd.f32 %v4636_v24, %v4537_v38 }
 0x4f7   :  { %v4705_v2 = vpop.f32.mrf.mxu2 }
 0x4f8   :  { %v4737_v56 = vmax.f32 %v4637_v51, 0.0  ;;  %v4706_v7 = vadd.f32 %v4705_v2, %v4537_v38  ;;  %v4837_v2 = vld [vmem:[%s7512_s17] sm:$0xff]  ;;  %s4918_s17 = sshll.u32 %s5349_s10, 4  ;;  %s4919_s17 = int_to_ptr.vmem [resolvable:$true] %s4918_s17 }
 0x4fa   :  { %v4754_v35 = vadd.f32 %v4752_v44, %v4737_v56  ;;  %v4740_v0 = vmax.f32 %v4706_v7, 0.0 }
 0x4fc   :  { %v4756_v49 = vadd.f32 %v4754_v35, %v4738_v63 }
 0x4fd   :  { %v4639_v62 = vpop.f32.mrf.mxu3 }
 0x4fe   :  { %v4640_v37 = vadd.f32 %v4639_v62, %v4542_v57  ;;  %v4758_v14 = vadd.f32 %v4756_v49, %v4739_v1  ;;  %v4780_v62 = vpop.permute.xlu2 %4779 }
 0x4ff   :  { %v4708_v53 = vpop.f32.mrf.mxu2 }
 0x500   :  { %v4745_v36 = vmax.f32 %v4640_v37, 0.0  ;;  %v4709_v48 = vadd.f32 %v4708_v53, %v4542_v57  ;;  %v4760_v4 = vadd.f32 %v4758_v14, %v4740_v0 }
 0x502   :  { %v4755_v55 = vadd.f32 %v4753_v8, %v4745_v36  ;;  %v4748_v22 = vmax.f32 %v4709_v48, 0.0 }
 0x504   :  { %v4757_v27 = vadd.f32 %v4755_v55, %v4746_v13 }
 0x506   :  { %v4759_v41 = vadd.f32 %v4757_v27, %v4747_v46  ;;  %v4844_v51 = vpop.permute.xlu2 %4843 }
 0x508   :  { %v4761_v19 = vadd.f32 %v4759_v41, %v4748_v22 }
 0x515   :  { %v4728_v23 = vpop.f32.mrf.mxu3 }
 0x516   :  { %v4729_v60 = vadd.f32 %v4728_v23, %v4537_v38 }
 0x518   :  { %v4741_v61 = vmax.f32 %v4729_v60, 0.0 }
 0x51a   :  { %v4762_v16 = vadd.f32 %v4760_v4, %v4741_v61 }
 0x51d   :  { %v4731_v34 = vpop.f32.mrf.mxu3 }
 0x51e   :  { %v4732_v54 = vadd.f32 %v4731_v34, %v4542_v57  ;;  %v4785_v57 = vpop.permute.xlu1 %4784 }
 0x520   :  { %v4749_v28 = vmax.f32 %v4732_v54, 0.0 }
 0x522   :  { %v4763_v9 = vadd.f32 %v4761_v19, %v4749_v28 }
 0x524   :  { %4818 = vmatpush.msra.mxu0 %v4763_v9 }
 0x526   :  { %4819 = vmatpush.msra.mxu0 %v4762_v16  ;;  %v4849_v59 = vpop.permute.xlu1 %4848 }
 0x527   :  { %5258 = vmatmul.msk.f32.vlgmr.msra.gmra.mxu0 %vm129_vm0, %v4764_v15 }
 0x52f   :  { %5259 = vmatmul.msk.f32.gmra.mxu0 %vm129_vm0, %v4765_v33 }
 0x537   :  { %5260 = vmatmul.msk.f32.gmra.mxu0 %vm129_vm0, %v4766_v52 }
 0x53f   :  { %5261 = vmatmul.msk.f32.gmra.mxu0 %vm129_vm0, %v4767_v3 }
 0x5a4   :  { %v4821_v24 = vpop.f32.mrf.mxu0 }
 0x5a5   :  { %v4822_v42 = vadd.f32 %v4821_v24, %v4775_v21 }
 0x5a7   :  { %v4833_v37 = vmax.f32 %v4822_v42, 0.0 }
 0x5ac   :  { %v4824_v32 = vpop.f32.mrf.mxu0 }
 0x5ad   :  { %v4825_v47 = vadd.f32 %v4824_v32, %v4780_v62 }
 0x5af   :  { %v4834_v50 = vmax.f32 %v4825_v47, 0.0 }
 0x5b4   :  { %v4827_v40 = vpop.f32.mrf.mxu0 }
 0x5b5   :  { %v4828_v17 = vadd.f32 %v4827_v40, %v4785_v57 }
 0x5b7   :  { %v4835_v45 = vmax.f32 %v4828_v17, 0.0 }
 0x5bc   :  { %v4830_v38 = vpop.f32.mrf.mxu0 }
 0x5bd   :  { %v4831_v6 = vadd.f32 %v4830_v38, %v4790_v31 }
 0x5bf   :  { %v4836_v12 = vmax.f32 %v4831_v6, 0.0 }
 0x5c1   :  { %4869 = vmatpush.msra.mxu1 %v4836_v12 }
 0x5c3   :  { %4870 = vmatpush.msra.mxu1 %v4835_v45 }
 0x5c5   :  { %4871 = vmatpush.msra.mxu1 %v4834_v50 }
 0x5c7   :  { %4872 = vmatpush.msra.mxu1 %v4833_v37 }
 0x5c8   :  { %5262 = vmatmul.msk.f32.vlgmr.msra.gmra.mxu1 %vm1084_vm1, %v4837_v2 }
 0x5d0   :  { %5263 = vmatmul.msk.f32.gmra.mxu1 %vm1084_vm1, %v4838_v39 }
 0x645   :  { %v4874_v11 = vpop.f32.mrf.mxu1 }
 0x646   :  { %v4875_v29 = vadd.f32 %v4874_v11, %v4844_v51 }
 0x648   :  { %v4880_v36 = vmax.f32 %v4875_v29, 0.0 }
 0x64d   :  { %v4877_v18 = vpop.f32.mrf.mxu1 }
 0x64e   :  { %v4878_v10 = vadd.f32 %v4877_v18, %v4849_v59 }
 0x650   :  { %v4881_v58 = vmax.f32 %v4878_v10, 0.0 }
 0x652   :  { %4906 = vmatpush.msra.mxu2 %v4881_v58 }
 0x654   :  { %4907 = vmatpush.msra.mxu2 %v4880_v36 }
 0x655   :  { %5264 = vmatmul.msk.f32.vlgmr.msra.gmra.mxu2 %vm129_vm0, %v4882_v30 }
 0x6d8   :  { %v4909_v8 = vpop.f32.mrf.mxu2 }
 0x6d9   :  { %v4910_v56 = vadd.f32 %v4909_v8, %v4887_v43 }
 0x6db   :  { %4912 = vst [vmem:[#allocation5] sm:$0xf] %v4910_v56 }
 0x6dc   :  { %4923 = dma.vmem_to_hbm [thread:$0]  %s4919_s17, 64, %s4921_s7, [#allocation4]  }
 0x6dd   :  { %5343 = dma.done.wait [#allocation4], 64  }
 0x6de   :  { %5344 = vsyncadd [#allocation4], 4294967232 }
 0x6df   :  { %4928 = vsyncpa [#allocation3], 1 }
 0x6e0   :  { %4929 = vsyncpa [#allocation4], 1 }

</bundles_post_ra>
